<compile_context>
chip_gen: v5e
topology: v5e:2x2
jax: 0.10.0
libtpu: 0.0.40
codegen_flags: <defaults>
</compile_context>

<pallas_src>
import functools

import jax
import jax.numpy as jnp
from jax import lax
from jax.experimental import pallas as pl
from jax.experimental.pallas import tpu as pltpu


def _round_up(x, m):
    return (x + m - 1) // m * m


# ----------------------------- Pallas kernel ------------------------------- #

def _lstm_stack_step(x_bf16, layers, h_ref, c_ref, hid_dim):
    """One timestep through all LSTM layers.

    layers: list of (w_ih_ref [in,4H] bf16, w_hh_ref [H,4H] bf16, b [1,4H] f32)
    where b is a value hoisted outside the time loop.  h_ref / c_ref are
    [L, B, H] f32 scratch refs updated in place.  PyTorch gate order (i,f,g,o);
    H is a multiple of 128 so gate slices stay lane-aligned.
    """
    H = hid_dim
    for l, (w_ih_ref, w_hh_ref, b) in enumerate(layers):
        h = h_ref[l]
        c = c_ref[l]
        # Split [x||h] @ [W_ih;W_hh] into two MXU matmuls -> no per-step concat.
        gates = (jnp.dot(x_bf16, w_ih_ref[...], preferred_element_type=jnp.float32)
                 + jnp.dot(h.astype(jnp.bfloat16), w_hh_ref[...],
                           preferred_element_type=jnp.float32)
                 + b)
        i_g = jax.nn.sigmoid(gates[:, 0 * H:1 * H])
        f_g = jax.nn.sigmoid(gates[:, 1 * H:2 * H])
        g_g = jnp.tanh(gates[:, 2 * H:3 * H])
        o_g = jax.nn.sigmoid(gates[:, 3 * H:4 * H])
        c_new = f_g * c + i_g * g_g
        h_new = o_g * jnp.tanh(c_new)
        h_ref[l] = h_new
        c_ref[l] = c_new
        x_bf16 = h_new.astype(jnp.bfloat16)
    return x_bf16


def _make_seq2seq_kernel(n_layers, hid_dim, src_len, trg_len, vocab, vocab_pad):
    def kernel(*refs):
        tf_ref = refs[0]                                # SMEM [T] int32 (prefetch)
        src_emb_ref = refs[1]                           # [S, B, E] bf16 (resident)
        trg_emb_ref = refs[2]                           # [T, B, E] bf16 (teacher path)
        emb_ref = refs[3]                               # [Vp, E] bf16 (greedy embed)
        enc_refs = refs[4:4 + 3 * n_layers]             # per layer: w_ih, w_hh, b
        dec_refs = refs[4 + 3 * n_layers:4 + 6 * n_layers]
        fcw_ref = refs[4 + 6 * n_layers]                # [H, Vp] bf16
        fcb_ref = refs[5 + 6 * n_layers]                # [1, Vp] f32
        out_ref = refs[6 + 6 * n_layers]                # [T-1, B, Vp] f32
        h_s, c_s, x_s = refs[7 + 6 * n_layers:]         # VMEM scratch

        batch = h_s.shape[1]

        # Hoisted out of the time loops (JAX does not CSE broadcast/iota).
        enc_layers = [(enc_refs[3 * l], enc_refs[3 * l + 1], enc_refs[3 * l + 2][...])
                      for l in range(n_layers)]
        dec_layers = [(dec_refs[3 * l], dec_refs[3 * l + 1], dec_refs[3 * l + 2][...])
                      for l in range(n_layers)]
        fcb = fcb_ref[...]
        col = lax.broadcasted_iota(jnp.int32, (batch, vocab_pad), 1)
        colf = col.astype(jnp.float32)
        valid = col < vocab                             # hide zero-padded vocab lanes

        # ------------------------------ encoder ------------------------------
        h_s[...] = jnp.zeros_like(h_s)
        c_s[...] = jnp.zeros_like(c_s)

        def enc_step(t, carry):
            _lstm_stack_step(src_emb_ref[t], enc_layers, h_s, c_s, hid_dim)
            return carry

        lax.fori_loop(0, src_len, enc_step, 0)

        # ------------------------------ decoder ------------------------------
        x_s[...] = trg_emb_ref[0]                       # input = trg[0]
        n_steps = trg_len - 1

        def dec_step(step, carry):
            top = _lstm_stack_step(x_s[...], dec_layers, h_s, c_s, hid_dim)
            logits = jnp.dot(top, fcw_ref[...],
                             preferred_element_type=jnp.float32) + fcb
            out_ref[step] = logits                      # outputs[t], t = step + 1

            # Next decoder input; skipped entirely on the dead last step.
            t = step + 1
            not_last = step < n_steps - 1
            teacher = tf_ref[t] != 0

            @pl.when(jnp.logical_and(not_last, teacher))
            def _():                                    # teacher forcing: trg[t]
                x_s[...] = trg_emb_ref[t]

            @pl.when(jnp.logical_and(not_last, jnp.logical_not(teacher)))
            def _():                                    # greedy: masked argmax
                masked = jnp.where(valid, logits, -jnp.inf)
                m = jnp.max(masked, axis=1, keepdims=True)
                idx = jnp.min(jnp.where(masked == m, colf, float(vocab_pad)),
                              axis=1, keepdims=True)    # first argmax (PyTorch tie-break)
                pred_oh = (colf == idx).astype(jnp.bfloat16)
                # TODO(synk): at large vocab replace the one-hot @ emb MXU matmul
                # with a scalar argmax + per-row dynamic-slice gather from emb_ref.
                x_s[...] = jnp.dot(pred_oh, emb_ref[...],
                                   preferred_element_type=jnp.float32
                                   ).astype(jnp.bfloat16)
            return carry

        lax.fori_loop(0, n_steps, dec_step, 0)

    return kernel


# ------------------------------ Wrappers ------------------------------------ #

def seq2seq_fused_forward(params, src_emb, trg_emb, tf_mask_i32, trg_vocab):
    n_layers = len(params["enc_lstm"])
    S, B, E = src_emb.shape
    T = trg_emb.shape[0]
    H = params["fc_w"].shape[0]
    Vp = params["fc_w"].shape[1]

    in_specs = []
    args = []

    def resident(x):
        # Full-array blocks, constant index_map -> DMA'd into VMEM once.
        in_specs.append(pl.BlockSpec(x.shape, lambda i, tf, n=x.ndim: (0,) * n))
        args.append(x)

    resident(src_emb)
    resident(trg_emb)
    resident(params["dec_emb"])
    for lp in params["enc_lstm"] + params["dec_lstm"]:
        resident(lp["w_ih"])
        resident(lp["w_hh"])
        resident(lp["b"])
    resident(params["fc_w"])
    resident(params["fc_b"])

    logits = pl.pallas_call(
        _make_seq2seq_kernel(n_layers, H, S, T, trg_vocab, Vp),
        grid_spec=pltpu.PrefetchScalarGridSpec(
            num_scalar_prefetch=1,
            grid=(1,),                                   # whole sequence in-kernel
            in_specs=in_specs,
            out_specs=pl.BlockSpec((T - 1, B, Vp), lambda i, tf: (0, 0, 0)),
            scratch_shapes=[pltpu.VMEM((n_layers, B, H), jnp.float32),   # h
                            pltpu.VMEM((n_layers, B, H), jnp.float32),   # c
                            pltpu.VMEM((B, E), jnp.bfloat16)]),          # next input
        out_shape=jax.ShapeDtypeStruct((T - 1, B, Vp), jnp.float32),
        compiler_params=pltpu.CompilerParams(
            dimension_semantics=("arbitrary",),
            vmem_limit_bytes=32 * 1024 * 1024),
    )(tf_mask_i32, *args)
    return logits


def seq2seq_forward(params, src, trg, tf_mask, *, trg_vocab):
    S, B = src.shape
    T, _ = trg.shape
    Bp = _round_up(B, 8)                                 # f32 sublane alignment

    # One-shot XLA gathers outside the kernel.  The teacher path is pre-embedded
    # so the kernel never needs a resident [T, B, Vp] one-hot tensor.
    src_emb = params["enc_emb"][src]                     # [S, B, E] bf16
    trg_emb = params["dec_emb"][trg]                     # [T, B, E] bf16
    if Bp != B:
        src_emb = jnp.pad(src_emb, ((0, 0), (0, Bp - B), (0, 0)))
        trg_emb = jnp.pad(trg_emb, ((0, 0), (0, Bp - B), (0, 0)))

    logits = seq2seq_fused_forward(params, src_emb, trg_emb,
                                   tf_mask.astype(jnp.int32), trg_vocab)

    out = logits[:, :B, :trg_vocab]
    return jnp.concatenate(
        [jnp.zeros((1, B, trg_vocab), jnp.float32), out], axis=0)   # outputs[0] = 0


# ------------------------- Parameter construction -------------------------- #

def init_params(key, src_vocab, trg_vocab, emb_dim, hid_dim, n_layers):
    vocab_pad = _round_up(trg_vocab, 128)                # lane-dense logits

    def nrm(k, shape, dtype=jnp.float32, scale=0.1):
        return (scale * jax.random.normal(k, shape, dtype=jnp.float32)).astype(dtype)

    keys = iter(jax.random.split(key, 64))
    dec_emb = nrm(next(keys), (trg_vocab, emb_dim))
    fc_w = nrm(next(keys), (hid_dim, trg_vocab))
    fc_b = nrm(next(keys), (1, trg_vocab))
    params = {
        # Weights stored in bf16 (MXU operand dtype) -> no in-kernel casts.
        "enc_emb": nrm(next(keys), (src_vocab, emb_dim), dtype=jnp.bfloat16),
        # Zero-padded to the 128-lane-aligned vocab; padded lanes never selected
        # (argmax is masked inside the kernel, wrapper slices them off).
        "dec_emb": jnp.pad(dec_emb, ((0, vocab_pad - trg_vocab), (0, 0))
                           ).astype(jnp.bfloat16),
        "fc_w": jnp.pad(fc_w, ((0, 0), (0, vocab_pad - trg_vocab))
                        ).astype(jnp.bfloat16),
        "fc_b": jnp.pad(fc_b, ((0, 0), (0, vocab_pad - trg_vocab))),   # f32
        "enc_lstm": [],
        "dec_lstm": [],
    }
    for which in ("enc_lstm", "dec_lstm"):
        for l in range(n_layers):
            in_dim = emb_dim if l == 0 else hid_dim
            params[which].append({
                "w_ih": nrm(next(keys), (in_dim, 4 * hid_dim), dtype=jnp.bfloat16),
                "w_hh": nrm(next(keys), (hid_dim, 4 * hid_dim), dtype=jnp.bfloat16),
                # combined b_ih + b_hh, kept 2D f32 for TPU-friendly broadcast
                "b": nrm(next(keys), (1, 4 * hid_dim)),
            })
    return params


# ---------------------------------- Main ----------------------------------- #

if __name__ == "__main__":
    SRC_VOCAB, TRG_VOCAB = 20, 24
    EMB_DIM, HID_DIM, N_LAYERS = 128, 128, 2             # 128-lane-aligned widths
    SRC_LEN, TRG_LEN, BATCH = 6, 8, 4
    TEACHER_FORCING_RATIO = 0.5

    key = jax.random.PRNGKey(0)
    k_par, k_src, k_trg, k_tf = jax.random.split(key, 4)

    params = init_params(k_par, SRC_VOCAB, TRG_VOCAB, EMB_DIM, HID_DIM, N_LAYERS)
    src = jax.random.randint(k_src, (SRC_LEN, BATCH), 0, SRC_VOCAB, dtype=jnp.int32)
    trg = jax.random.randint(k_trg, (TRG_LEN, BATCH), 0, TRG_VOCAB, dtype=jnp.int32)

    # Deterministic stand-in for `random.random() < teacher_forcing_ratio` per step.
    tf_mask = jax.random.uniform(k_tf, (TRG_LEN,)) < TEACHER_FORCING_RATIO

    fwd = jax.jit(functools.partial(seq2seq_forward, trg_vocab=TRG_VOCAB))
    out = jax.block_until_ready(fwd(params, src, trg, tf_mask))

    assert out.shape == (TRG_LEN, BATCH, TRG_VOCAB)
    assert bool(jnp.all(out[0] == 0.0))
    assert bool(jnp.all(jnp.isfinite(out)))
    print("KERNEL_OK")
</pallas_src>

<mosaic_0001>
module attributes {stable_mosaic.version = 11 : i64} {
  func.func @kernel(%arg0: i32, %arg1: memref<8xi32, #tpu.memory_space<smem>>, %arg2: memref<6x8x128xbf16, #tpu.memory_space<vmem>>, %arg3: memref<8x8x128xbf16, #tpu.memory_space<vmem>>, %arg4: memref<128x128xbf16, #tpu.memory_space<vmem>>, %arg5: memref<128x512xbf16, #tpu.memory_space<vmem>>, %arg6: memref<128x512xbf16, #tpu.memory_space<vmem>>, %arg7: memref<1x512xf32, #tpu.memory_space<vmem>>, %arg8: memref<128x512xbf16, #tpu.memory_space<vmem>>, %arg9: memref<128x512xbf16, #tpu.memory_space<vmem>>, %arg10: memref<1x512xf32, #tpu.memory_space<vmem>>, %arg11: memref<128x512xbf16, #tpu.memory_space<vmem>>, %arg12: memref<128x512xbf16, #tpu.memory_space<vmem>>, %arg13: memref<1x512xf32, #tpu.memory_space<vmem>>, %arg14: memref<128x512xbf16, #tpu.memory_space<vmem>>, %arg15: memref<128x512xbf16, #tpu.memory_space<vmem>>, %arg16: memref<1x512xf32, #tpu.memory_space<vmem>>, %arg17: memref<128x128xbf16, #tpu.memory_space<vmem>>, %arg18: memref<1x128xf32, #tpu.memory_space<vmem>>, %arg19: memref<7x8x128xf32, #tpu.memory_space<vmem>>, %arg20: memref<2x8x128xf32, #tpu.memory_space<vmem>>, %arg21: memref<2x8x128xf32, #tpu.memory_space<vmem>>, %arg22: memref<8x128xbf16, #tpu.memory_space<vmem>>) attributes {dimension_semantics = [#tpu.dimension_semantics<arbitrary>], iteration_bounds = array<i64: 1>, scalar_prefetch = 1 : i64, scratch_operands = 3 : i64, tpu.core_type = #tpu.core_type<tc>, window_params = [{pipeline_mode = #tpu.pipeline_mode<synchronous>, transform_indices = @transform_0, window_bounds = array<i64: 6, 8, 128>}, {pipeline_mode = #tpu.pipeline_mode<synchronous>, transform_indices = @transform_1, window_bounds = array<i64: 8, 8, 128>}, {pipeline_mode = #tpu.pipeline_mode<synchronous>, transform_indices = @transform_2, window_bounds = array<i64: 128, 128>}, {pipeline_mode = #tpu.pipeline_mode<synchronous>, transform_indices = @transform_3, window_bounds = array<i64: 128, 512>}, {pipeline_mode = #tpu.pipeline_mode<synchronous>, transform_indices = @transform_4, window_bounds = array<i64: 128, 512>}, {pipeline_mode = #tpu.pipeline_mode<synchronous>, transform_indices = @transform_5, window_bounds = array<i64: 1, 512>}, {pipeline_mode = #tpu.pipeline_mode<synchronous>, transform_indices = @transform_6, window_bounds = array<i64: 128, 512>}, {pipeline_mode = #tpu.pipeline_mode<synchronous>, transform_indices = @transform_7, window_bounds = array<i64: 128, 512>}, {pipeline_mode = #tpu.pipeline_mode<synchronous>, transform_indices = @transform_8, window_bounds = array<i64: 1, 512>}, {pipeline_mode = #tpu.pipeline_mode<synchronous>, transform_indices = @transform_9, window_bounds = array<i64: 128, 512>}, {pipeline_mode = #tpu.pipeline_mode<synchronous>, transform_indices = @transform_10, window_bounds = array<i64: 128, 512>}, {pipeline_mode = #tpu.pipeline_mode<synchronous>, transform_indices = @transform_11, window_bounds = array<i64: 1, 512>}, {pipeline_mode = #tpu.pipeline_mode<synchronous>, transform_indices = @transform_12, window_bounds = array<i64: 128, 512>}, {pipeline_mode = #tpu.pipeline_mode<synchronous>, transform_indices = @transform_13, window_bounds = array<i64: 128, 512>}, {pipeline_mode = #tpu.pipeline_mode<synchronous>, transform_indices = @transform_14, window_bounds = array<i64: 1, 512>}, {pipeline_mode = #tpu.pipeline_mode<synchronous>, transform_indices = @transform_15, window_bounds = array<i64: 128, 128>}, {pipeline_mode = #tpu.pipeline_mode<synchronous>, transform_indices = @transform_16, window_bounds = array<i64: 1, 128>}, {pipeline_mode = #tpu.pipeline_mode<synchronous>, transform_indices = @transform_17, window_bounds = array<i64: 7, 8, 128>}]} {
    %c0 = arith.constant 0 : index
    %c0_0 = arith.constant 0 : index
    %0 = vector.load %arg7[%c0, %c0_0] : memref<1x512xf32, #tpu.memory_space<vmem>>, vector<1x512xf32>
    %c0_1 = arith.constant 0 : index
    %c0_2 = arith.constant 0 : index
    %1 = vector.load %arg10[%c0_1, %c0_2] : memref<1x512xf32, #tpu.memory_space<vmem>>, vector<1x512xf32>
    %c0_3 = arith.constant 0 : index
    %c0_4 = arith.constant 0 : index
    %2 = vector.load %arg13[%c0_3, %c0_4] : memref<1x512xf32, #tpu.memory_space<vmem>>, vector<1x512xf32>
    %c0_5 = arith.constant 0 : index
    %c0_6 = arith.constant 0 : index
    %3 = vector.load %arg16[%c0_5, %c0_6] : memref<1x512xf32, #tpu.memory_space<vmem>>, vector<1x512xf32>
    %c0_7 = arith.constant 0 : index
    %c0_8 = arith.constant 0 : index
    %4 = vector.load %arg18[%c0_7, %c0_8] : memref<1x128xf32, #tpu.memory_space<vmem>>, vector<1x128xf32>
    %5 = tpu.iota {dimensions = array<i32: 1>} : vector<8x128xi32>
    %6 = arith.sitofp %5 : vector<8x128xi32> to vector<8x128xf32>
    %c24_i32 = arith.constant 24 : i32
    %7 = vector.broadcast %c24_i32 : i32 to vector<8x128xi32>
    %8 = arith.cmpi slt, %5, %7 : vector<8x128xi32>
    %cst = arith.constant 0.000000e+00 : f32
    %9 = vector.broadcast %cst : f32 to vector<2x8x128xf32>
    %c0_9 = arith.constant 0 : index
    %c0_10 = arith.constant 0 : index
    %c0_11 = arith.constant 0 : index
    %10 = vector.load %arg20[%c0_9, %c0_10, %c0_11] : memref<2x8x128xf32, #tpu.memory_space<vmem>>, vector<2x8x128xf32>
    tpu.vector_store %arg20[%c0_9, %c0_10, %c0_11], %9 {strides = array<i32>} : memref<2x8x128xf32, #tpu.memory_space<vmem>>, vector<2x8x128xf32>,
    %cst_12 = arith.constant 0.000000e+00 : f32
    %11 = vector.broadcast %cst_12 : f32 to vector<2x8x128xf32>
    %c0_13 = arith.constant 0 : index
    %c0_14 = arith.constant 0 : index
    %c0_15 = arith.constant 0 : index
    %12 = vector.load %arg21[%c0_13, %c0_14, %c0_15] : memref<2x8x128xf32, #tpu.memory_space<vmem>>, vector<2x8x128xf32>
    tpu.vector_store %arg21[%c0_13, %c0_14, %c0_15], %11 {strides = array<i32>} : memref<2x8x128xf32, #tpu.memory_space<vmem>>, vector<2x8x128xf32>,
    %c0_i32 = arith.constant 0 : i32
    %c6_i32 = arith.constant 6 : i32
    %13 = arith.addi %c0_i32, %c6_i32 : i32
    %c1_i32 = arith.constant 1 : i32
    scf.for %arg23 = %c0_i32 to %13 step %c1_i32  : i32 {
      %18 = arith.index_cast %arg23 : i32 to index
      %c0_25 = arith.constant 0 : index
      %c0_26 = arith.constant 0 : index
      %19 = vector.load %arg2[%18, %c0_25, %c0_26] : memref<6x8x128xbf16, #tpu.memory_space<vmem>>, vector<1x8x128xbf16>
      %20 = vector.shape_cast %19 : vector<1x8x128xbf16> to vector<8x128xbf16>
      %c0_27 = arith.constant 0 : index
      %c0_28 = arith.constant 0 : index
      %c0_29 = arith.constant 0 : index
      %21 = vector.load %arg20[%c0_27, %c0_28, %c0_29] : memref<2x8x128xf32, #tpu.memory_space<vmem>>, vector<1x8x128xf32>
      %22 = vector.shape_cast %21 : vector<1x8x128xf32> to vector<8x128xf32>
      %c0_30 = arith.constant 0 : index
      %c0_31 = arith.constant 0 : index
      %c0_32 = arith.constant 0 : index
      %23 = vector.load %arg21[%c0_30, %c0_31, %c0_32] : memref<2x8x128xf32, #tpu.memory_space<vmem>>, vector<1x8x128xf32>
      %24 = vector.shape_cast %23 : vector<1x8x128xf32> to vector<8x128xf32>
      %c0_33 = arith.constant 0 : index
      %c0_34 = arith.constant 0 : index
      %25 = vector.load %arg5[%c0_33, %c0_34] : memref<128x512xbf16, #tpu.memory_space<vmem>>, vector<128x512xbf16>
      %cst_35 = arith.constant dense<0.000000e+00> : vector<8x512xf32>
      %26 = tpu.matmul %20, %25, %cst_35 {dimension_numbers = #tpu.dot_dimension_numbers<[1], [0], [0], [1], [0, 0, 1, 1], [], []>} : vector<8x128xbf16>, vector<128x512xbf16>, vector<8x512xf32> -> vector<8x512xf32>
      %27 = arith.truncf %22 : vector<8x128xf32> to vector<8x128xbf16>
      %c0_36 = arith.constant 0 : index
      %c0_37 = arith.constant 0 : index
      %28 = vector.load %arg6[%c0_36, %c0_37] : memref<128x512xbf16, #tpu.memory_space<vmem>>, vector<128x512xbf16>
      %cst_38 = arith.constant dense<0.000000e+00> : vector<8x512xf32>
      %29 = tpu.matmul %27, %28, %cst_38 {dimension_numbers = #tpu.dot_dimension_numbers<[1], [0], [0], [1], [0, 0, 1, 1], [], []>} : vector<8x128xbf16>, vector<128x512xbf16>, vector<8x512xf32> -> vector<8x512xf32>
      %30 = arith.addf %26, %29 : vector<8x512xf32>
      %31 = vector.broadcast %0 : vector<1x512xf32> to vector<8x512xf32>
      %32 = arith.addf %30, %31 : vector<8x512xf32>
      %33 = vector.extract_strided_slice %32 {offsets = [0, 0], sizes = [8, 128], strides = [1, 1]} : vector<8x512xf32> to vector<8x128xf32>
      %34 = arith.negf %33 : vector<8x128xf32>
      %35 = math.exp %34 : vector<8x128xf32>
      %cst_39 = arith.constant 1.000000e+00 : f32
      %36 = vector.broadcast %cst_39 : f32 to vector<8x128xf32>
      %37 = arith.addf %36, %35 : vector<8x128xf32>
      %38 = arith.divf %36, %37 : vector<8x128xf32>
      %39 = vector.extract_strided_slice %32 {offsets = [0, 128], sizes = [8, 128], strides = [1, 1]} : vector<8x512xf32> to vector<8x128xf32>
      %40 = arith.negf %39 : vector<8x128xf32>
      %41 = math.exp %40 : vector<8x128xf32>
      %cst_40 = arith.constant 1.000000e+00 : f32
      %42 = vector.broadcast %cst_40 : f32 to vector<8x128xf32>
      %43 = arith.addf %42, %41 : vector<8x128xf32>
      %44 = arith.divf %42, %43 : vector<8x128xf32>
      %45 = vector.extract_strided_slice %32 {offsets = [0, 256], sizes = [8, 128], strides = [1, 1]} : vector<8x512xf32> to vector<8x128xf32>
      %46 = math.tanh %45 : vector<8x128xf32>
      %47 = vector.extract_strided_slice %32 {offsets = [0, 384], sizes = [8, 128], strides = [1, 1]} : vector<8x512xf32> to vector<8x128xf32>
      %48 = arith.negf %47 : vector<8x128xf32>
      %49 = math.exp %48 : vector<8x128xf32>
      %cst_41 = arith.constant 1.000000e+00 : f32
      %50 = vector.broadcast %cst_41 : f32 to vector<8x128xf32>
      %51 = arith.addf %50, %49 : vector<8x128xf32>
      %52 = arith.divf %50, %51 : vector<8x128xf32>
      %53 = arith.mulf %44, %24 : vector<8x128xf32>
      %54 = arith.mulf %38, %46 : vector<8x128xf32>
      %55 = arith.addf %53, %54 : vector<8x128xf32>
      %56 = math.tanh %55 : vector<8x128xf32>
      %57 = arith.mulf %52, %56 : vector<8x128xf32>
      %c0_42 = arith.constant 0 : index
      %c0_43 = arith.constant 0 : index
      %c0_44 = arith.constant 0 : index
      %58 = vector.load %arg20[%c0_42, %c0_43, %c0_44] : memref<2x8x128xf32, #tpu.memory_space<vmem>>, vector<1x8x128xf32>
      %59 = vector.shape_cast %58 : vector<1x8x128xf32> to vector<8x128xf32>
      %60 = vector.shape_cast %57 : vector<8x128xf32> to vector<1x8x128xf32>
      tpu.vector_store %arg20[%c0_42, %c0_43, %c0_44], %60 {strides = array<i32>} : memref<2x8x128xf32, #tpu.memory_space<vmem>>, vector<1x8x128xf32>,
      %c0_45 = arith.constant 0 : index
      %c0_46 = arith.constant 0 : index
      %c0_47 = arith.constant 0 : index
      %61 = vector.load %arg21[%c0_45, %c0_46, %c0_47] : memref<2x8x128xf32, #tpu.memory_space<vmem>>, vector<1x8x128xf32>
      %62 = vector.shape_cast %61 : vector<1x8x128xf32> to vector<8x128xf32>
      %63 = vector.shape_cast %55 : vector<8x128xf32> to vector<1x8x128xf32>
      tpu.vector_store %arg21[%c0_45, %c0_46, %c0_47], %63 {strides = array<i32>} : memref<2x8x128xf32, #tpu.memory_space<vmem>>, vector<1x8x128xf32>,
      %64 = arith.truncf %57 : vector<8x128xf32> to vector<8x128xbf16>
      %c1 = arith.constant 1 : index
      %c0_48 = arith.constant 0 : index
      %c0_49 = arith.constant 0 : index
      %65 = vector.load %arg20[%c1, %c0_48, %c0_49] : memref<2x8x128xf32, #tpu.memory_space<vmem>>, vector<1x8x128xf32>
      %66 = vector.shape_cast %65 : vector<1x8x128xf32> to vector<8x128xf32>
      %c1_50 = arith.constant 1 : index
      %c0_51 = arith.constant 0 : index
      %c0_52 = arith.constant 0 : index
      %67 = vector.load %arg21[%c1_50, %c0_51, %c0_52] : memref<2x8x128xf32, #tpu.memory_space<vmem>>, vector<1x8x128xf32>
      %68 = vector.shape_cast %67 : vector<1x8x128xf32> to vector<8x128xf32>
      %c0_53 = arith.constant 0 : index
      %c0_54 = arith.constant 0 : index
      %69 = vector.load %arg8[%c0_53, %c0_54] : memref<128x512xbf16, #tpu.memory_space<vmem>>, vector<128x512xbf16>
      %cst_55 = arith.constant dense<0.000000e+00> : vector<8x512xf32>
      %70 = tpu.matmul %64, %69, %cst_55 {dimension_numbers = #tpu.dot_dimension_numbers<[1], [0], [0], [1], [0, 0, 1, 1], [], []>} : vector<8x128xbf16>, vector<128x512xbf16>, vector<8x512xf32> -> vector<8x512xf32>
      %71 = arith.truncf %66 : vector<8x128xf32> to vector<8x128xbf16>
      %c0_56 = arith.constant 0 : index
      %c0_57 = arith.constant 0 : index
      %72 = vector.load %arg9[%c0_56, %c0_57] : memref<128x512xbf16, #tpu.memory_space<vmem>>, vector<128x512xbf16>
      %cst_58 = arith.constant dense<0.000000e+00> : vector<8x512xf32>
      %73 = tpu.matmul %71, %72, %cst_58 {dimension_numbers = #tpu.dot_dimension_numbers<[1], [0], [0], [1], [0, 0, 1, 1], [], []>} : vector<8x128xbf16>, vector<128x512xbf16>, vector<8x512xf32> -> vector<8x512xf32>
      %74 = arith.addf %70, %73 : vector<8x512xf32>
      %75 = vector.broadcast %1 : vector<1x512xf32> to vector<8x512xf32>
      %76 = arith.addf %74, %75 : vector<8x512xf32>
      %77 = vector.extract_strided_slice %76 {offsets = [0, 0], sizes = [8, 128], strides = [1, 1]} : vector<8x512xf32> to vector<8x128xf32>
      %78 = arith.negf %77 : vector<8x128xf32>
      %79 = math.exp %78 : vector<8x128xf32>
      %cst_59 = arith.constant 1.000000e+00 : f32
      %80 = vector.broadcast %cst_59 : f32 to vector<8x128xf32>
      %81 = arith.addf %80, %79 : vector<8x128xf32>
      %82 = arith.divf %80, %81 : vector<8x128xf32>
      %83 = vector.extract_strided_slice %76 {offsets = [0, 128], sizes = [8, 128], strides = [1, 1]} : vector<8x512xf32> to vector<8x128xf32>
      %84 = arith.negf %83 : vector<8x128xf32>
      %85 = math.exp %84 : vector<8x128xf32>
      %cst_60 = arith.constant 1.000000e+00 : f32
      %86 = vector.broadcast %cst_60 : f32 to vector<8x128xf32>
      %87 = arith.addf %86, %85 : vector<8x128xf32>
      %88 = arith.divf %86, %87 : vector<8x128xf32>
      %89 = vector.extract_strided_slice %76 {offsets = [0, 256], sizes = [8, 128], strides = [1, 1]} : vector<8x512xf32> to vector<8x128xf32>
      %90 = math.tanh %89 : vector<8x128xf32>
      %91 = vector.extract_strided_slice %76 {offsets = [0, 384], sizes = [8, 128], strides = [1, 1]} : vector<8x512xf32> to vector<8x128xf32>
      %92 = arith.negf %91 : vector<8x128xf32>
      %93 = math.exp %92 : vector<8x128xf32>
      %cst_61 = arith.constant 1.000000e+00 : f32
      %94 = vector.broadcast %cst_61 : f32 to vector<8x128xf32>
      %95 = arith.addf %94, %93 : vector<8x128xf32>
      %96 = arith.divf %94, %95 : vector<8x128xf32>
      %97 = arith.mulf %88, %68 : vector<8x128xf32>
      %98 = arith.mulf %82, %90 : vector<8x128xf32>
      %99 = arith.addf %97, %98 : vector<8x128xf32>
      %100 = math.tanh %99 : vector<8x128xf32>
      %101 = arith.mulf %96, %100 : vector<8x128xf32>
      %c1_62 = arith.constant 1 : index
      %c0_63 = arith.constant 0 : index
      %c0_64 = arith.constant 0 : index
      %102 = vector.load %arg20[%c1_62, %c0_63, %c0_64] : memref<2x8x128xf32, #tpu.memory_space<vmem>>, vector<1x8x128xf32>
      %103 = vector.shape_cast %102 : vector<1x8x128xf32> to vector<8x128xf32>
      %104 = vector.shape_cast %101 : vector<8x128xf32> to vector<1x8x128xf32>
      tpu.vector_store %arg20[%c1_62, %c0_63, %c0_64], %104 {strides = array<i32>} : memref<2x8x128xf32, #tpu.memory_space<vmem>>, vector<1x8x128xf32>,
      %c1_65 = arith.constant 1 : index
      %c0_66 = arith.constant 0 : index
      %c0_67 = arith.constant 0 : index
      %105 = vector.load %arg21[%c1_65, %c0_66, %c0_67] : memref<2x8x128xf32, #tpu.memory_space<vmem>>, vector<1x8x128xf32>
      %106 = vector.shape_cast %105 : vector<1x8x128xf32> to vector<8x128xf32>
      %107 = vector.shape_cast %99 : vector<8x128xf32> to vector<1x8x128xf32>
      tpu.vector_store %arg21[%c1_65, %c0_66, %c0_67], %107 {strides = array<i32>} : memref<2x8x128xf32, #tpu.memory_space<vmem>>, vector<1x8x128xf32>,
    }
    %c6_i32_16 = arith.constant 6 : i32
    %c0_17 = arith.constant 0 : index
    %c0_18 = arith.constant 0 : index
    %c0_19 = arith.constant 0 : index
    %14 = vector.load %arg3[%c0_17, %c0_18, %c0_19] : memref<8x8x128xbf16, #tpu.memory_space<vmem>>, vector<1x8x128xbf16>
    %15 = vector.shape_cast %14 : vector<1x8x128xbf16> to vector<8x128xbf16>
    %c0_20 = arith.constant 0 : index
    %c0_21 = arith.constant 0 : index
    %16 = vector.load %arg22[%c0_20, %c0_21] : memref<8x128xbf16, #tpu.memory_space<vmem>>, vector<8x128xbf16>
    tpu.vector_store %arg22[%c0_20, %c0_21], %15 {strides = array<i32>} : memref<8x128xbf16, #tpu.memory_space<vmem>>, vector<8x128xbf16>,
    %c0_i32_22 = arith.constant 0 : i32
    %c7_i32 = arith.constant 7 : i32
    %17 = arith.addi %c0_i32_22, %c7_i32 : i32
    %c1_i32_23 = arith.constant 1 : i32
    scf.for %arg23 = %c0_i32_22 to %17 step %c1_i32_23  : i32 {
      %c0_25 = arith.constant 0 : index
      %c0_26 = arith.constant 0 : index
      %18 = vector.load %arg22[%c0_25, %c0_26] : memref<8x128xbf16, #tpu.memory_space<vmem>>, vector<8x128xbf16>
      %c0_27 = arith.constant 0 : index
      %c0_28 = arith.constant 0 : index
      %c0_29 = arith.constant 0 : index
      %19 = vector.load %arg20[%c0_27, %c0_28, %c0_29] : memref<2x8x128xf32, #tpu.memory_space<vmem>>, vector<1x8x128xf32>
      %20 = vector.shape_cast %19 : vector<1x8x128xf32> to vector<8x128xf32>
      %c0_30 = arith.constant 0 : index
      %c0_31 = arith.constant 0 : index
      %c0_32 = arith.constant 0 : index
      %21 = vector.load %arg21[%c0_30, %c0_31, %c0_32] : memref<2x8x128xf32, #tpu.memory_space<vmem>>, vector<1x8x128xf32>
      %22 = vector.shape_cast %21 : vector<1x8x128xf32> to vector<8x128xf32>
      %c0_33 = arith.constant 0 : index
      %c0_34 = arith.constant 0 : index
      %23 = vector.load %arg11[%c0_33, %c0_34] : memref<128x512xbf16, #tpu.memory_space<vmem>>, vector<128x512xbf16>
      %cst_35 = arith.constant dense<0.000000e+00> : vector<8x512xf32>
      %24 = tpu.matmul %18, %23, %cst_35 {dimension_numbers = #tpu.dot_dimension_numbers<[1], [0], [0], [1], [0, 0, 1, 1], [], []>} : vector<8x128xbf16>, vector<128x512xbf16>, vector<8x512xf32> -> vector<8x512xf32>
      %25 = arith.truncf %20 : vector<8x128xf32> to vector<8x128xbf16>
      %c0_36 = arith.constant 0 : index
      %c0_37 = arith.constant 0 : index
      %26 = vector.load %arg12[%c0_36, %c0_37] : memref<128x512xbf16, #tpu.memory_space<vmem>>, vector<128x512xbf16>
      %cst_38 = arith.constant dense<0.000000e+00> : vector<8x512xf32>
      %27 = tpu.matmul %25, %26, %cst_38 {dimension_numbers = #tpu.dot_dimension_numbers<[1], [0], [0], [1], [0, 0, 1, 1], [], []>} : vector<8x128xbf16>, vector<128x512xbf16>, vector<8x512xf32> -> vector<8x512xf32>
      %28 = arith.addf %24, %27 : vector<8x512xf32>
      %29 = vector.broadcast %2 : vector<1x512xf32> to vector<8x512xf32>
      %30 = arith.addf %28, %29 : vector<8x512xf32>
      %31 = vector.extract_strided_slice %30 {offsets = [0, 0], sizes = [8, 128], strides = [1, 1]} : vector<8x512xf32> to vector<8x128xf32>
      %32 = arith.negf %31 : vector<8x128xf32>
      %33 = math.exp %32 : vector<8x128xf32>
      %cst_39 = arith.constant 1.000000e+00 : f32
      %34 = vector.broadcast %cst_39 : f32 to vector<8x128xf32>
      %35 = arith.addf %34, %33 : vector<8x128xf32>
      %36 = arith.divf %34, %35 : vector<8x128xf32>
      %37 = vector.extract_strided_slice %30 {offsets = [0, 128], sizes = [8, 128], strides = [1, 1]} : vector<8x512xf32> to vector<8x128xf32>
      %38 = arith.negf %37 : vector<8x128xf32>
      %39 = math.exp %38 : vector<8x128xf32>
      %cst_40 = arith.constant 1.000000e+00 : f32
      %40 = vector.broadcast %cst_40 : f32 to vector<8x128xf32>
      %41 = arith.addf %40, %39 : vector<8x128xf32>
      %42 = arith.divf %40, %41 : vector<8x128xf32>
      %43 = vector.extract_strided_slice %30 {offsets = [0, 256], sizes = [8, 128], strides = [1, 1]} : vector<8x512xf32> to vector<8x128xf32>
      %44 = math.tanh %43 : vector<8x128xf32>
      %45 = vector.extract_strided_slice %30 {offsets = [0, 384], sizes = [8, 128], strides = [1, 1]} : vector<8x512xf32> to vector<8x128xf32>
      %46 = arith.negf %45 : vector<8x128xf32>
      %47 = math.exp %46 : vector<8x128xf32>
      %cst_41 = arith.constant 1.000000e+00 : f32
      %48 = vector.broadcast %cst_41 : f32 to vector<8x128xf32>
      %49 = arith.addf %48, %47 : vector<8x128xf32>
      %50 = arith.divf %48, %49 : vector<8x128xf32>
      %51 = arith.mulf %42, %22 : vector<8x128xf32>
      %52 = arith.mulf %36, %44 : vector<8x128xf32>
      %53 = arith.addf %51, %52 : vector<8x128xf32>
      %54 = math.tanh %53 : vector<8x128xf32>
      %55 = arith.mulf %50, %54 : vector<8x128xf32>
      %c0_42 = arith.constant 0 : index
      %c0_43 = arith.constant 0 : index
      %c0_44 = arith.constant 0 : index
      %56 = vector.load %arg20[%c0_42, %c0_43, %c0_44] : memref<2x8x128xf32, #tpu.memory_space<vmem>>, vector<1x8x128xf32>
      %57 = vector.shape_cast %56 : vector<1x8x128xf32> to vector<8x128xf32>
      %58 = vector.shape_cast %55 : vector<8x128xf32> to vector<1x8x128xf32>
      tpu.vector_store %arg20[%c0_42, %c0_43, %c0_44], %58 {strides = array<i32>} : memref<2x8x128xf32, #tpu.memory_space<vmem>>, vector<1x8x128xf32>,
      %c0_45 = arith.constant 0 : index
      %c0_46 = arith.constant 0 : index
      %c0_47 = arith.constant 0 : index
      %59 = vector.load %arg21[%c0_45, %c0_46, %c0_47] : memref<2x8x128xf32, #tpu.memory_space<vmem>>, vector<1x8x128xf32>
      %60 = vector.shape_cast %59 : vector<1x8x128xf32> to vector<8x128xf32>
      %61 = vector.shape_cast %53 : vector<8x128xf32> to vector<1x8x128xf32>
      tpu.vector_store %arg21[%c0_45, %c0_46, %c0_47], %61 {strides = array<i32>} : memref<2x8x128xf32, #tpu.memory_space<vmem>>, vector<1x8x128xf32>,
      %62 = arith.truncf %55 : vector<8x128xf32> to vector<8x128xbf16>
      %c1 = arith.constant 1 : index
      %c0_48 = arith.constant 0 : index
      %c0_49 = arith.constant 0 : index
      %63 = vector.load %arg20[%c1, %c0_48, %c0_49] : memref<2x8x128xf32, #tpu.memory_space<vmem>>, vector<1x8x128xf32>
      %64 = vector.shape_cast %63 : vector<1x8x128xf32> to vector<8x128xf32>
      %c1_50 = arith.constant 1 : index
      %c0_51 = arith.constant 0 : index
      %c0_52 = arith.constant 0 : index
      %65 = vector.load %arg21[%c1_50, %c0_51, %c0_52] : memref<2x8x128xf32, #tpu.memory_space<vmem>>, vector<1x8x128xf32>
      %66 = vector.shape_cast %65 : vector<1x8x128xf32> to vector<8x128xf32>
      %c0_53 = arith.constant 0 : index
      %c0_54 = arith.constant 0 : index
      %67 = vector.load %arg14[%c0_53, %c0_54] : memref<128x512xbf16, #tpu.memory_space<vmem>>, vector<128x512xbf16>
      %cst_55 = arith.constant dense<0.000000e+00> : vector<8x512xf32>
      %68 = tpu.matmul %62, %67, %cst_55 {dimension_numbers = #tpu.dot_dimension_numbers<[1], [0], [0], [1], [0, 0, 1, 1], [], []>} : vector<8x128xbf16>, vector<128x512xbf16>, vector<8x512xf32> -> vector<8x512xf32>
      %69 = arith.truncf %64 : vector<8x128xf32> to vector<8x128xbf16>
      %c0_56 = arith.constant 0 : index
      %c0_57 = arith.constant 0 : index
      %70 = vector.load %arg15[%c0_56, %c0_57] : memref<128x512xbf16, #tpu.memory_space<vmem>>, vector<128x512xbf16>
      %cst_58 = arith.constant dense<0.000000e+00> : vector<8x512xf32>
      %71 = tpu.matmul %69, %70, %cst_58 {dimension_numbers = #tpu.dot_dimension_numbers<[1], [0], [0], [1], [0, 0, 1, 1], [], []>} : vector<8x128xbf16>, vector<128x512xbf16>, vector<8x512xf32> -> vector<8x512xf32>
      %72 = arith.addf %68, %71 : vector<8x512xf32>
      %73 = vector.broadcast %3 : vector<1x512xf32> to vector<8x512xf32>
      %74 = arith.addf %72, %73 : vector<8x512xf32>
      %75 = vector.extract_strided_slice %74 {offsets = [0, 0], sizes = [8, 128], strides = [1, 1]} : vector<8x512xf32> to vector<8x128xf32>
      %76 = arith.negf %75 : vector<8x128xf32>
      %77 = math.exp %76 : vector<8x128xf32>
      %cst_59 = arith.constant 1.000000e+00 : f32
      %78 = vector.broadcast %cst_59 : f32 to vector<8x128xf32>
      %79 = arith.addf %78, %77 : vector<8x128xf32>
      %80 = arith.divf %78, %79 : vector<8x128xf32>
      %81 = vector.extract_strided_slice %74 {offsets = [0, 128], sizes = [8, 128], strides = [1, 1]} : vector<8x512xf32> to vector<8x128xf32>
      %82 = arith.negf %81 : vector<8x128xf32>
      %83 = math.exp %82 : vector<8x128xf32>
      %cst_60 = arith.constant 1.000000e+00 : f32
      %84 = vector.broadcast %cst_60 : f32 to vector<8x128xf32>
      %85 = arith.addf %84, %83 : vector<8x128xf32>
      %86 = arith.divf %84, %85 : vector<8x128xf32>
      %87 = vector.extract_strided_slice %74 {offsets = [0, 256], sizes = [8, 128], strides = [1, 1]} : vector<8x512xf32> to vector<8x128xf32>
      %88 = math.tanh %87 : vector<8x128xf32>
      %89 = vector.extract_strided_slice %74 {offsets = [0, 384], sizes = [8, 128], strides = [1, 1]} : vector<8x512xf32> to vector<8x128xf32>
      %90 = arith.negf %89 : vector<8x128xf32>
      %91 = math.exp %90 : vector<8x128xf32>
      %cst_61 = arith.constant 1.000000e+00 : f32
      %92 = vector.broadcast %cst_61 : f32 to vector<8x128xf32>
      %93 = arith.addf %92, %91 : vector<8x128xf32>
      %94 = arith.divf %92, %93 : vector<8x128xf32>
      %95 = arith.mulf %86, %66 : vector<8x128xf32>
      %96 = arith.mulf %80, %88 : vector<8x128xf32>
      %97 = arith.addf %95, %96 : vector<8x128xf32>
      %98 = math.tanh %97 : vector<8x128xf32>
      %99 = arith.mulf %94, %98 : vector<8x128xf32>
      %c1_62 = arith.constant 1 : index
      %c0_63 = arith.constant 0 : index
      %c0_64 = arith.constant 0 : index
      %100 = vector.load %arg20[%c1_62, %c0_63, %c0_64] : memref<2x8x128xf32, #tpu.memory_space<vmem>>, vector<1x8x128xf32>
      %101 = vector.shape_cast %100 : vector<1x8x128xf32> to vector<8x128xf32>
      %102 = vector.shape_cast %99 : vector<8x128xf32> to vector<1x8x128xf32>
      tpu.vector_store %arg20[%c1_62, %c0_63, %c0_64], %102 {strides = array<i32>} : memref<2x8x128xf32, #tpu.memory_space<vmem>>, vector<1x8x128xf32>,
      %c1_65 = arith.constant 1 : index
      %c0_66 = arith.constant 0 : index
      %c0_67 = arith.constant 0 : index
      %103 = vector.load %arg21[%c1_65, %c0_66, %c0_67] : memref<2x8x128xf32, #tpu.memory_space<vmem>>, vector<1x8x128xf32>
      %104 = vector.shape_cast %103 : vector<1x8x128xf32> to vector<8x128xf32>
      %105 = vector.shape_cast %97 : vector<8x128xf32> to vector<1x8x128xf32>
      tpu.vector_store %arg21[%c1_65, %c0_66, %c0_67], %105 {strides = array<i32>} : memref<2x8x128xf32, #tpu.memory_space<vmem>>, vector<1x8x128xf32>,
      %106 = arith.truncf %99 : vector<8x128xf32> to vector<8x128xbf16>
      %c0_68 = arith.constant 0 : index
      %c0_69 = arith.constant 0 : index
      %107 = vector.load %arg17[%c0_68, %c0_69] : memref<128x128xbf16, #tpu.memory_space<vmem>>, vector<128x128xbf16>
      %cst_70 = arith.constant dense<0.000000e+00> : vector<8x128xf32>
      %108 = tpu.matmul %106, %107, %cst_70 {dimension_numbers = #tpu.dot_dimension_numbers<[1], [0], [0], [1], [0, 0, 1, 1], [], []>} : vector<8x128xbf16>, vector<128x128xbf16>, vector<8x128xf32> -> vector<8x128xf32>
      %109 = vector.broadcast %4 : vector<1x128xf32> to vector<8x128xf32>
      %110 = arith.addf %108, %109 : vector<8x128xf32>
      %111 = arith.index_cast %arg23 : i32 to index
      %c0_71 = arith.constant 0 : index
      %c0_72 = arith.constant 0 : index
      %112 = vector.load %arg19[%111, %c0_71, %c0_72] : memref<7x8x128xf32, #tpu.memory_space<vmem>>, vector<1x8x128xf32>
      %113 = vector.shape_cast %112 : vector<1x8x128xf32> to vector<8x128xf32>
      %114 = vector.shape_cast %110 : vector<8x128xf32> to vector<1x8x128xf32>
      tpu.vector_store %arg19[%111, %c0_71, %c0_72], %114 {strides = array<i32>} : memref<7x8x128xf32, #tpu.memory_space<vmem>>, vector<1x8x128xf32>,
      %c1_i32_73 = arith.constant 1 : i32
      %115 = arith.addi %arg23, %c1_i32_73 : i32
      %c6_i32_74 = arith.constant 6 : i32
      %116 = arith.cmpi slt, %arg23, %c6_i32_74 : i32
      %117 = arith.index_cast %115 : i32 to index
      %118 = memref.load %arg1[%117] : memref<8xi32, #tpu.memory_space<smem>>
      %c0_i32_75 = arith.constant 0 : i32
      %119 = arith.cmpi ne, %118, %c0_i32_75 : i32
      %120 = arith.andi %116, %119 : i1
      %121 = arith.extui %120 : i1 to i32
      %c0_i32_76 = arith.constant 0 : i32
      %122 = arith.cmpi ne, %121, %c0_i32_76 : i32
      scf.if %122 {
        %127 = arith.index_cast %115 : i32 to index
        %c0_78 = arith.constant 0 : index
        %c0_79 = arith.constant 0 : index
        %128 = vector.load %arg3[%127, %c0_78, %c0_79] : memref<8x8x128xbf16, #tpu.memory_space<vmem>>, vector<1x8x128xbf16>
        %129 = vector.shape_cast %128 : vector<1x8x128xbf16> to vector<8x128xbf16>
        %c0_80 = arith.constant 0 : index
        %c0_81 = arith.constant 0 : index
        %130 = vector.load %arg22[%c0_80, %c0_81] : memref<8x128xbf16, #tpu.memory_space<vmem>>, vector<8x128xbf16>
        tpu.vector_store %arg22[%c0_80, %c0_81], %129 {strides = array<i32>} : memref<8x128xbf16, #tpu.memory_space<vmem>>, vector<8x128xbf16>,
      } else {
      }
      %true = arith.constant true
      %123 = arith.xori %119, %true : i1
      %124 = arith.andi %116, %123 : i1
      %125 = arith.extui %124 : i1 to i32
      %c0_i32_77 = arith.constant 0 : i32
      %126 = arith.cmpi ne, %125, %c0_i32_77 : i32
      scf.if %126 {
        %cst_78 = arith.constant 0xFF800000 : f32
        %127 = vector.broadcast %cst_78 : f32 to vector<8x128xf32>
        %128 = arith.select %8, %110, %127 : vector<8x128xi1>, vector<8x128xf32>
        %cst_79 = arith.constant dense<0xFF800000> : vector<8xf32>
        %129 = vector.multi_reduction <maximumf>, %128, %cst_79 [1] : vector<8x128xf32> to vector<8xf32>
        %130 = vector.shape_cast %129 : vector<8xf32> to vector<8x1xf32>
        %131 = vector.broadcast %130 : vector<8x1xf32> to vector<8x128xf32>
        %132 = arith.cmpf oeq, %128, %131 : vector<8x128xf32>
        %cst_80 = arith.constant 1.280000e+02 : f32
        %133 = vector.broadcast %cst_80 : f32 to vector<8x128xf32>
        %134 = arith.select %132, %6, %133 : vector<8x128xi1>, vector<8x128xf32>
        %cst_81 = arith.constant dense<0x7F800000> : vector<8xf32>
        %135 = vector.multi_reduction <minimumf>, %134, %cst_81 [1] : vector<8x128xf32> to vector<8xf32>
        %136 = vector.shape_cast %135 : vector<8xf32> to vector<8x1xf32>
        %137 = vector.broadcast %136 : vector<8x1xf32> to vector<8x128xf32>
        %138 = arith.cmpf oeq, %6, %137 : vector<8x128xf32>
        %139 = arith.extui %138 : vector<8x128xi1> to vector<8x128xi32>
        %140 = arith.sitofp %139 : vector<8x128xi32> to vector<8x128xf32>
        %141 = arith.truncf %140 : vector<8x128xf32> to vector<8x128xbf16>
        %c0_82 = arith.constant 0 : index
        %c0_83 = arith.constant 0 : index
        %142 = vector.load %arg4[%c0_82, %c0_83] : memref<128x128xbf16, #tpu.memory_space<vmem>>, vector<128x128xbf16>
        %cst_84 = arith.constant dense<0.000000e+00> : vector<8x128xf32>
        %143 = tpu.matmul %141, %142, %cst_84 {dimension_numbers = #tpu.dot_dimension_numbers<[1], [0], [0], [1], [0, 0, 1, 1], [], []>} : vector<8x128xbf16>, vector<128x128xbf16>, vector<8x128xf32> -> vector<8x128xf32>
        %144 = arith.truncf %143 : vector<8x128xf32> to vector<8x128xbf16>
        %c0_85 = arith.constant 0 : index
        %c0_86 = arith.constant 0 : index
        %145 = vector.load %arg22[%c0_85, %c0_86] : memref<8x128xbf16, #tpu.memory_space<vmem>>, vector<8x128xbf16>
        tpu.vector_store %arg22[%c0_85, %c0_86], %144 {strides = array<i32>} : memref<8x128xbf16, #tpu.memory_space<vmem>>, vector<8x128xbf16>,
      } else {
      }
    }
    %c7_i32_24 = arith.constant 7 : i32
    return
  }
  func.func @transform_0(%arg0: i32, %arg1: memref<8xi32, #tpu.memory_space<smem>>) -> (i32, i32, i32) {
    %c0_i32 = arith.constant 0 : i32
    %c0_i32_0 = arith.constant 0 : i32
    %c0_i32_1 = arith.constant 0 : i32
    %c0_i32_2 = arith.constant 0 : i32
    return %c0_i32, %c0_i32_0, %c0_i32_1 : i32, i32, i32
  }
  func.func @transform_1(%arg0: i32, %arg1: memref<8xi32, #tpu.memory_space<smem>>) -> (i32, i32, i32) {
    %c0_i32 = arith.constant 0 : i32
    %c0_i32_0 = arith.constant 0 : i32
    %c0_i32_1 = arith.constant 0 : i32
    %c0_i32_2 = arith.constant 0 : i32
    return %c0_i32, %c0_i32_0, %c0_i32_1 : i32, i32, i32
  }
  func.func @transform_2(%arg0: i32, %arg1: memref<8xi32, #tpu.memory_space<smem>>) -> (i32, i32) {
    %c0_i32 = arith.constant 0 : i32
    %c0_i32_0 = arith.constant 0 : i32
    %c0_i32_1 = arith.constant 0 : i32
    return %c0_i32, %c0_i32_0 : i32, i32
  }
  func.func @transform_3(%arg0: i32, %arg1: memref<8xi32, #tpu.memory_space<smem>>) -> (i32, i32) {
    %c0_i32 = arith.constant 0 : i32
    %c0_i32_0 = arith.constant 0 : i32
    %c0_i32_1 = arith.constant 0 : i32
    return %c0_i32, %c0_i32_0 : i32, i32
  }
  func.func @transform_4(%arg0: i32, %arg1: memref<8xi32, #tpu.memory_space<smem>>) -> (i32, i32) {
    %c0_i32 = arith.constant 0 : i32
    %c0_i32_0 = arith.constant 0 : i32
    %c0_i32_1 = arith.constant 0 : i32
    return %c0_i32, %c0_i32_0 : i32, i32
  }
  func.func @transform_5(%arg0: i32, %arg1: memref<8xi32, #tpu.memory_space<smem>>) -> (i32, i32) {
    %c0_i32 = arith.constant 0 : i32
    %c0_i32_0 = arith.constant 0 : i32
    %c0_i32_1 = arith.constant 0 : i32
    return %c0_i32, %c0_i32_0 : i32, i32
  }
  func.func @transform_6(%arg0: i32, %arg1: memref<8xi32, #tpu.memory_space<smem>>) -> (i32, i32) {
    %c0_i32 = arith.constant 0 : i32
    %c0_i32_0 = arith.constant 0 : i32
    %c0_i32_1 = arith.constant 0 : i32
    return %c0_i32, %c0_i32_0 : i32, i32
  }
  func.func @transform_7(%arg0: i32, %arg1: memref<8xi32, #tpu.memory_space<smem>>) -> (i32, i32) {
    %c0_i32 = arith.constant 0 : i32
    %c0_i32_0 = arith.constant 0 : i32
    %c0_i32_1 = arith.constant 0 : i32
    return %c0_i32, %c0_i32_0 : i32, i32
  }
  func.func @transform_8(%arg0: i32, %arg1: memref<8xi32, #tpu.memory_space<smem>>) -> (i32, i32) {
    %c0_i32 = arith.constant 0 : i32
    %c0_i32_0 = arith.constant 0 : i32
    %c0_i32_1 = arith.constant 0 : i32
    return %c0_i32, %c0_i32_0 : i32, i32
  }
  func.func @transform_9(%arg0: i32, %arg1: memref<8xi32, #tpu.memory_space<smem>>) -> (i32, i32) {
    %c0_i32 = arith.constant 0 : i32
    %c0_i32_0 = arith.constant 0 : i32
    %c0_i32_1 = arith.constant 0 : i32
    return %c0_i32, %c0_i32_0 : i32, i32
  }
  func.func @transform_10(%arg0: i32, %arg1: memref<8xi32, #tpu.memory_space<smem>>) -> (i32, i32) {
    %c0_i32 = arith.constant 0 : i32
    %c0_i32_0 = arith.constant 0 : i32
    %c0_i32_1 = arith.constant 0 : i32
    return %c0_i32, %c0_i32_0 : i32, i32
  }
  func.func @transform_11(%arg0: i32, %arg1: memref<8xi32, #tpu.memory_space<smem>>) -> (i32, i32) {
    %c0_i32 = arith.constant 0 : i32
    %c0_i32_0 = arith.constant 0 : i32
    %c0_i32_1 = arith.constant 0 : i32
    return %c0_i32, %c0_i32_0 : i32, i32
  }
  func.func @transform_12(%arg0: i32, %arg1: memref<8xi32, #tpu.memory_space<smem>>) -> (i32, i32) {
    %c0_i32 = arith.constant 0 : i32
    %c0_i32_0 = arith.constant 0 : i32
    %c0_i32_1 = arith.constant 0 : i32
    return %c0_i32, %c0_i32_0 : i32, i32
  }
  func.func @transform_13(%arg0: i32, %arg1: memref<8xi32, #tpu.memory_space<smem>>) -> (i32, i32) {
    %c0_i32 = arith.constant 0 : i32
    %c0_i32_0 = arith.constant 0 : i32
    %c0_i32_1 = arith.constant 0 : i32
    return %c0_i32, %c0_i32_0 : i32, i32
  }
  func.func @transform_14(%arg0: i32, %arg1: memref<8xi32, #tpu.memory_space<smem>>) -> (i32, i32) {
    %c0_i32 = arith.constant 0 : i32
    %c0_i32_0 = arith.constant 0 : i32
    %c0_i32_1 = arith.constant 0 : i32
    return %c0_i32, %c0_i32_0 : i32, i32
  }
  func.func @transform_15(%arg0: i32, %arg1: memref<8xi32, #tpu.memory_space<smem>>) -> (i32, i32) {
    %c0_i32 = arith.constant 0 : i32
    %c0_i32_0 = arith.constant 0 : i32
    %c0_i32_1 = arith.constant 0 : i32
    return %c0_i32, %c0_i32_0 : i32, i32
  }
  func.func @transform_16(%arg0: i32, %arg1: memref<8xi32, #tpu.memory_space<smem>>) -> (i32, i32) {
    %c0_i32 = arith.constant 0 : i32
    %c0_i32_0 = arith.constant 0 : i32
    %c0_i32_1 = arith.constant 0 : i32
    return %c0_i32, %c0_i32_0 : i32, i32
  }
  func.func @transform_17(%arg0: i32, %arg1: memref<8xi32, #tpu.memory_space<smem>>) -> (i32, i32, i32) {
    %c0_i32 = arith.constant 0 : i32
    %c0_i32_0 = arith.constant 0 : i32
    %c0_i32_1 = arith.constant 0 : i32
    %c0_i32_2 = arith.constant 0 : i32
    return %c0_i32, %c0_i32_0, %c0_i32_1 : i32, i32, i32
  }
}

</mosaic_0001>

<bundles_post_ra>
// kernel: seq2seq_forward.1
= control target key start
LH: loop header
LB: loop body
LE: loop exit
PB: predicated region body
PF: predicated region fallthrough
CT: control target
= control target key end

     0   :  { %s4380_s30 = smov [#allocation6]   ;;  %s4889_s0 = inlined_call_operand.vmem [shape: s32[8], index: 0, kind: input, shape index: {}]   ;;  %s4890_s1 = inlined_call_operand.vmem [shape: bf16[6,8,128], index: 1, kind: input, shape index: {}]   ;;  %s4891_s2 = inlined_call_operand.vmem [shape: bf16[8,8,128], index: 2, kind: input, shape index: {}]   ;;  %s4892_s3 = inlined_call_operand.vmem [shape: bf16[128,128], index: 3, kind: input, shape index: {}]   ;;  %s4893_s4 = inlined_call_operand.vmem [shape: bf16[128,512], index: 4, kind: input, shape index: {}]   ;;  %s4894_s5 = inlined_call_operand.hbm [shape: bf16[128,512], index: 5, kind: input, shape index: {}]   ;;  %s4895_s6 = inlined_call_operand.vmem [shape: f32[1,512], index: 6, kind: input, shape index: {}]   ;;  %s4896_s7 = inlined_call_operand.hbm [shape: bf16[128,512], index: 7, kind: input, shape index: {}]   ;;  %s4897_s8 = inlined_call_operand.hbm [shape: bf16[128,512], index: 8, kind: input, shape index: {}]   ;;  %s4898_s9 = inlined_call_operand.vmem [shape: f32[1,512], index: 9, kind: input, shape index: {}]   ;;  %s4899_s10 = inlined_call_operand.hbm [shape: bf16[128,512], index: 10, kind: input, shape index: {}]   ;;  %s4900_s11 = inlined_call_operand.hbm [shape: bf16[128,512], index: 11, kind: input, shape index: {}]   ;;  %s4901_s12 = inlined_call_operand.vmem [shape: f32[1,512], index: 12, kind: input, shape index: {}]   ;;  %s4902_s13 = inlined_call_operand.hbm [shape: bf16[128,512], index: 13, kind: input, shape index: {}]   ;;  %s4903_s14 = inlined_call_operand.hbm [shape: bf16[128,512], index: 14, kind: input, shape index: {}]   ;;  %s4904_s15 = inlined_call_operand.vmem [shape: f32[1,512], index: 15, kind: input, shape index: {}]   ;;  %s4905_s16 = inlined_call_operand.vmem [shape: bf16[128,128], index: 16, kind: input, shape index: {}]   ;;  %s4906_s17 = inlined_call_operand.vmem [shape: f32[1,128], index: 17, kind: input, shape index: {}]   ;;  %s4907_s18 = inlined_call_operand.vmem [shape: f32[7,8,128], index: 18, kind: output, shape index: {}]  }
   0x1   :  { %4909 = sst [smem:[#allocation23_spill]] %s4889_s0 }
   0x2   :  { %4910 = sst [smem:[#allocation24_spill]] %s4890_s1 }
   0x3   :  { %4911 = sst [smem:[#allocation25_spill]] %s4891_s2 }
   0x4   :  { %4912 = sst [smem:[#allocation26_spill]] %s4892_s3 }
   0x5   :  { %s4913_s29 = sld [smem:[#allocation23_spill]] }
   0xb   :  { %s24_s3 = sshll.u32 %s4913_s29, 4  ;;  %s25_s3 = int_to_ptr.vmem [resolvable:$true] %s24_s3 }
   0xc   :  { %27 = dma.vmem_to_smem %s25_s3, 16, %s4380_s30, [#allocation5] }
   0xd   :  { %4362 = dma.done.wait [#allocation5], 16 }
   0xe   :  { %4363 = vsyncadd [#allocation5], 4294967280 }
   0xf   :  { %30 = sfence }
  0x10   :  { %31 = vsyncpa [#allocation8], 0 }
  0x11   :  { %32 = vsyncpa [#allocation10], 0 }
  0x12   :  { %33 = vsyncpa [#allocation13], 0 }
  0x13   :  { %34 = vsyncpa [#allocation16], 0  ;;  %s62_s1 = sshll.u32 %s4896_s7, 4  ;;  %s4381_s20 = smov [#allocation9]   ;;  %s63_s1 = int_to_ptr.hbm [resolvable:$true] %s62_s1 }
  0x14   :  { %s64_s21 = sshll.u32 %s4381_s20, 4  ;;  %s90_s23 = sshll.u32 %s4899_s10, 4  ;;  %s65_s21 = int_to_ptr.vmem [resolvable:$true] %s64_s21  ;;  %s91_s23 = int_to_ptr.hbm [resolvable:$true] %s90_s23 }
  0x15   :  { %s4382_s3 = smov 256   ;;  %s4383_s24 = smov 16  }
  0x16   :  { %70 = dma.hbm_to_vmem [thread:$0]  %s63_s1, 4096, %s65_s21, [#allocation10], %s4382_s3, %s4382_s3, %s4383_s24  }
  0x17   :  { %s4384_s25 = smov [#allocation12]   ;;  %s118_s7 = sshll.u32 %s4902_s13, 4  ;;  %s119_s7 = int_to_ptr.hbm [resolvable:$true] %s118_s7 }
  0x18   :  { %s92_s26 = sshll.u32 %s4384_s25, 4  ;;  %s47_s30 = sshll.u32 %s4894_s5, 4  ;;  %s93_s26 = int_to_ptr.vmem [resolvable:$true] %s92_s26  ;;  %s48_s30 = int_to_ptr.hbm [resolvable:$true] %s47_s30 }
  0x19   :  { %98 = dma.hbm_to_vmem [thread:$0]  %s91_s23, 4096, %s93_s26, [#allocation13], %s4382_s3, %s4382_s3, %s4383_s24  }
  0x1a   :  { %s4385_s0 = smov [#allocation15]   ;;  %s4386_s1 = smov [#allocation7]  }
  0x1b   :  { %s120_s19 = sshll.u32 %s4385_s0, 4  ;;  %s49_s13 = sshll.u32 %s4386_s1, 4  ;;  %s121_s19 = int_to_ptr.vmem [resolvable:$true] %s120_s19  ;;  %s50_s13 = int_to_ptr.vmem [resolvable:$true] %s49_s13 }
  0x1c   :  { %126 = dma.hbm_to_vmem [thread:$0]  %s119_s7, 4096, %s121_s19, [#allocation16], %s4382_s3, %s4382_s3, %s4383_s24  }
  0x1d   :  { %s75_s22 = sshll.u32 %s4897_s8, 4  ;;  %s103_s23 = sshll.u32 %s4900_s11, 4  ;;  %s76_s22 = int_to_ptr.hbm [resolvable:$true] %s75_s22  ;;  %s104_s23 = int_to_ptr.hbm [resolvable:$true] %s103_s23 }
  0x1e   :  { %55 = dma.hbm_to_vmem [thread:$0]  %s48_s30, 4096, %s50_s13, [#allocation8], %s4382_s3, %s4382_s3, %s4383_s24  }
  0x1f   :  { %s4387_s25 = smov [#allocation11]   ;;  %s4388_s27 = smov [#allocation14]  }
  0x20   :  { %s77_s26 = sshll.u32 %s4387_s25, 4  ;;  %s105_s8 = sshll.u32 %s4388_s27, 4  ;;  %s78_s26 = int_to_ptr.vmem [resolvable:$true] %s77_s26  ;;  %s106_s8 = int_to_ptr.vmem [resolvable:$true] %s105_s8 }
  0x21   :  { %83 = dma.hbm_to_vmem [thread:$0]  %s76_s22, 4096, %s78_s26, [#allocation10], %s4382_s3, %s4382_s3, %s4383_s24  }
  0x22   :  { %s131_s10 = sshll.u32 %s4903_s14, 4  ;;  %s4389_s11 = smov [#allocation17]   ;;  %s132_s10 = int_to_ptr.hbm [resolvable:$true] %s131_s10 }
  0x23   :  { %111 = dma.hbm_to_vmem [thread:$0]  %s104_s23, 4096, %s106_s8, [#allocation13], %s4382_s3, %s4382_s3, %s4383_s24  }
  0x24   :  { %s133_s29 = sshll.u32 %s4389_s11, 4  ;;  %s134_s29 = int_to_ptr.vmem [resolvable:$true] %s133_s29 }
  0x25   :  { %139 = dma.hbm_to_vmem [thread:$0]  %s132_s10, 4096, %s134_s29, [#allocation16], %s4382_s3, %s4382_s3, %s4383_s24  }
  0x26   :  { %4364 = dma.done.wait [#allocation8], 4096  }
  0x27   :  { %4365 = vsyncadd [#allocation8], 4294963200 }
  0x28   :  { %4366 = dma.done.wait [#allocation10], 8192  }
  0x29   :  { %4367 = vsyncadd [#allocation10], 4294959104 }
  0x2a   :  { %4368 = dma.done.wait [#allocation13], 8192  }
  0x2b   :  { %4369 = vsyncadd [#allocation13], 4294959104 }
  0x2c   :  { %4370 = dma.done.wait [#allocation16], 8192  }
  0x2d   :  { %4371 = vsyncadd [#allocation16], 4294959104  ;;  %v179_v0 = vlaneseq  ;;  %v4390_v1 = vmov 0.0   ;;  %v4539_v4 = vld [vmem:[%s4895_s6] sm:$0xf]  ;;  %s4561_s6 = smov 0  }
  0x2e   :  { %183 = vst [vmem:[#allocation2] sm:$0xff] %v4390_v1  ;;  %v4544_v5 = vld [vmem:[%s4898_s9] sm:$0xf] }
  0x2f   :  { %v4532_v2 = vand.u32 127, %v179_v0  ;;  %184 = vst [vmem:[#allocation2 + $0x8] sm:$0xff] %v4390_v1  ;;  %v4549_v6 = vld [vmem:[%s4901_s12] sm:$0xf] }
  0x30   :  { %185 = vst [vmem:[#allocation3 + $0x8] sm:$0xff] %v4390_v1  ;;  %v4554_v7 = vld [vmem:[%s4904_s15] sm:$0xf] }
  0x31   :  { %v181_v3 = vcvt.s32.f32 %v4532_v2  ;;  %vm182_vm0 = vcmp.lt.s32.totalorder %v4532_v2, 24  ;;  %186 = vst [vmem:[#allocation3] sm:$0xff] %v4390_v1  ;;  %v4559_v8 = vld [vmem:[%s4906_s17] sm:$0x1] }
  0x32 LB: > { %v2818_v9 = vld [vmem:[#allocation7 + $0xe0] sm:$0xf]  ;;  %v3872_v10 = vld [vmem:[#allocation7 + $0xec] sm:$0xf0]  ;;  %v3870_v11 = vld [vmem:[#allocation7 + $0xe4] sm:$0xf]  ;;  %s4374_s6 = sphi %s4561_s6, %s192_s6  }
  0x33   : > { %v2819_v12 = vor.u32 %v3872_v10, %v2818_v9  ;;  %v2820_v13 = vld [vmem:[#allocation7 + $0xf0] sm:$0xf0]  ;;  %v2826_v14 = vld [vmem:[#allocation7 + $0xe8] sm:$0xf]  ;;  %v3873_v15 = vld [vmem:[#allocation7 + $0xf4] sm:$0xf0] }
  0x34   : > { %v2823_v16 = vor.u32 %v3870_v11, %v2820_v13  ;;  %v2827_v17 = vor.u32 %v3873_v15, %v2826_v14  ;;  %v3871_v18 = vld [vmem:[#allocation7 + $0xec] sm:$0xf]  ;;  %v2828_v19 = vld [vmem:[#allocation7 + $0xf8] sm:$0xf0]  ;;  %v2802_v20 = vld [vmem:[#allocation7 + $0xc0] sm:$0xf] }
  0x35   : > { %423 = vmatpush.bf16.msra.mxu0 %v2819_v12  ;;  %v2831_v21 = vor.u32 %v3871_v18, %v2828_v19  ;;  %v3868_v22 = vld [vmem:[#allocation7 + $0xcc] sm:$0xf0]  ;;  %v3866_v23 = vld [vmem:[#allocation7 + $0xc4] sm:$0xf]  ;;  %v2804_v24 = vld [vmem:[#allocation7 + $0xd0] sm:$0xf0] }
  0x36   : > { %436 = vmatpush.bf16.msra.mxu1 %v2823_v16  ;;  %449 = vmatpush.bf16.msra.mxu2 %v2827_v17  ;;  %v2803_v25 = vor.u32 %v3868_v22, %v2802_v20  ;;  %v2807_v26 = vor.u32 %v3866_v23, %v2804_v24  ;;  %v2810_v27 = vld [vmem:[#allocation7 + $0xc8] sm:$0xf]  ;;  %v3869_v28 = vld [vmem:[#allocation7 + $0xd4] sm:$0xf0]  ;;  %v3867_v29 = vld [vmem:[#allocation7 + $0xcc] sm:$0xf] }
  0x37   : > { %462 = vmatpush.bf16.msra.mxu3 %v2831_v21  ;;  %v2811_v30 = vor.u32 %v3869_v28, %v2810_v27  ;;  %v2812_v31 = vld [vmem:[#allocation7 + $0xd8] sm:$0xf0]  ;;  %v2786_v32 = vld [vmem:[#allocation7 + $0xa0] sm:$0xf]  ;;  %v3864_v33 = vld [vmem:[#allocation7 + $0xac] sm:$0xf0] }
  0x38   : > { %v2815_v34 = vor.u32 %v3867_v29, %v2812_v31  ;;  %v3862_v35 = vld [vmem:[#allocation7 + $0xa4] sm:$0xf]  ;;  %v2788_v36 = vld [vmem:[#allocation7 + $0xb0] sm:$0xf0]  ;;  %v2794_v37 = vld [vmem:[#allocation7 + $0xa8] sm:$0xf]  ;;  %v2787_v38 = vor.u32 %v3864_v33, %v2786_v32 }
  0x39   : > { %424 = vmatpush.bf16.msra.mxu0 %v2803_v25  ;;  %v3865_v39 = vld [vmem:[#allocation7 + $0xb4] sm:$0xf0]  ;;  %v3863_v40 = vld [vmem:[#allocation7 + $0xac] sm:$0xf]  ;;  %v2796_v41 = vld [vmem:[#allocation7 + $0xb8] sm:$0xf0]  ;;  %v2791_v42 = vor.u32 %v3862_v35, %v2788_v36 }
  0x3a   : > { %437 = vmatpush.bf16.msra.mxu1 %v2807_v26  ;;  %450 = vmatpush.bf16.msra.mxu2 %v2811_v30  ;;  %v2795_v43 = vor.u32 %v3865_v39, %v2794_v37  ;;  %v2770_v44 = vld [vmem:[#allocation7 + $0x80] sm:$0xf]  ;;  %v3860_v45 = vld [vmem:[#allocation7 + $0x8c] sm:$0xf0]  ;;  %v3858_v46 = vld [vmem:[#allocation7 + $0x84] sm:$0xf]  ;;  %v2799_v47 = vor.u32 %v3863_v40, %v2796_v41 }
  0x3b   : > { %463 = vmatpush.bf16.msra.mxu3 %v2815_v34  ;;  %v2772_v48 = vld [vmem:[#allocation7 + $0x90] sm:$0xf0]  ;;  %v2778_v49 = vld [vmem:[#allocation7 + $0x88] sm:$0xf]  ;;  %v3861_v50 = vld [vmem:[#allocation7 + $0x94] sm:$0xf0]  ;;  %v2771_v53 = vor.u32 %v3860_v45, %v2770_v44 }
  0x3c   : > { %v3859_v51 = vld [vmem:[#allocation7 + $0x8c] sm:$0xf]  ;;  %v2780_v52 = vld [vmem:[#allocation7 + $0x98] sm:$0xf0]  ;;  %v2775_v54 = vor.u32 %v3858_v46, %v2772_v48  ;;  %v2779_v55 = vor.u32 %v3861_v50, %v2778_v49  ;;  %v2754_v56 = vld [vmem:[#allocation7 + $0x60] sm:$0xf] }
  0x3d   : > { %425 = vmatpush.bf16.msra.mxu0 %v2787_v38  ;;  %v3856_v57 = vld [vmem:[#allocation7 + $0x6c] sm:$0xf0]  ;;  %v3854_v58 = vld [vmem:[#allocation7 + $0x64] sm:$0xf]  ;;  %v2783_v59 = vor.u32 %v3859_v51, %v2780_v52  ;;  %v2756_v60 = vld [vmem:[#allocation7 + $0x70] sm:$0xf0] }
  0x3e   : > { %438 = vmatpush.bf16.msra.mxu1 %v2791_v42  ;;  %451 = vmatpush.bf16.msra.mxu2 %v2795_v43  ;;  %v2762_v61 = vld [vmem:[#allocation7 + $0x68] sm:$0xf]  ;;  %v3857_v62 = vld [vmem:[#allocation7 + $0x74] sm:$0xf0]  ;;  %v3855_v63 = vld [vmem:[#allocation7 + $0x6c] sm:$0xf]  ;;  %v2755_v1 = vor.u32 %v3856_v57, %v2754_v56  ;;  %v2759_v9 = vor.u32 %v3854_v58, %v2756_v60 }
  0x3f   : > { %464 = vmatpush.bf16.msra.mxu3 %v2799_v47  ;;  %v2764_v0 = vld [vmem:[#allocation7 + $0x78] sm:$0xf0]  ;;  %v2763_v10 = vor.u32 %v3857_v62, %v2762_v61  ;;  %v2738_v11 = vld [vmem:[#allocation7 + $0x40] sm:$0xf]  ;;  %v3852_v12 = vld [vmem:[#allocation7 + $0x4c] sm:$0xf0] }
  0x40   : > { %v3850_v13 = vld [vmem:[#allocation7 + $0x44] sm:$0xf]  ;;  %v2767_v14 = vor.u32 %v3855_v63, %v2764_v0  ;;  %v2740_v15 = vld [vmem:[#allocation7 + $0x50] sm:$0xf0]  ;;  %v2746_v16 = vld [vmem:[#allocation7 + $0x48] sm:$0xf]  ;;  %v2739_v20 = vor.u32 %v3852_v12, %v2738_v11 }
  0x41   : > { %426 = vmatpush.bf16.msra.mxu0 %v2771_v53  ;;  %v3853_v17 = vld [vmem:[#allocation7 + $0x54] sm:$0xf0]  ;;  %v3851_v18 = vld [vmem:[#allocation7 + $0x4c] sm:$0xf]  ;;  %v2748_v19 = vld [vmem:[#allocation7 + $0x58] sm:$0xf0]  ;;  %v2743_v21 = vor.u32 %v3850_v13, %v2740_v15 }
  0x42   : > { %439 = vmatpush.bf16.msra.mxu1 %v2775_v54  ;;  %452 = vmatpush.bf16.msra.mxu2 %v2779_v55  ;;  %v2747_v22 = vor.u32 %v3853_v17, %v2746_v16  ;;  %v2722_v23 = vld [vmem:[#allocation7 + $0x20] sm:$0xf]  ;;  %v3848_v24 = vld [vmem:[#allocation7 + $0x2c] sm:$0xf0]  ;;  %v3846_v25 = vld [vmem:[#allocation7 + $0x24] sm:$0xf]  ;;  %v2751_v26 = vor.u32 %v3851_v18, %v2748_v19 }
  0x43   : > { %465 = vmatpush.bf16.msra.mxu3 %v2783_v59  ;;  %v2724_v27 = vld [vmem:[#allocation7 + $0x30] sm:$0xf0]  ;;  %v2730_v28 = vld [vmem:[#allocation7 + $0x28] sm:$0xf]  ;;  %v3849_v29 = vld [vmem:[#allocation7 + $0x34] sm:$0xf0]  ;;  %v2723_v32 = vor.u32 %v3848_v24, %v2722_v23 }
  0x44   : > { %v3847_v30 = vld [vmem:[#allocation7 + $0x2c] sm:$0xf]  ;;  %v2732_v31 = vld [vmem:[#allocation7 + $0x38] sm:$0xf0]  ;;  %v2706_v33 = vld [vmem:[#allocation7] sm:$0xf]  ;;  %v2727_v35 = vor.u32 %v3846_v25, %v2724_v27  ;;  %v2731_v36 = vor.u32 %v3849_v29, %v2730_v28 }
  0x45   : > { %427 = vmatpush.bf16.msra.mxu0 %v2755_v1  ;;  %v3844_v34 = vld [vmem:[#allocation7 + $0xc] sm:$0xf0]  ;;  %v3842_v37 = vld [vmem:[#allocation7 + $0x4] sm:$0xf]  ;;  %v2708_v38 = vld [vmem:[#allocation7 + $0x10] sm:$0xf0]  ;;  %v2735_v40 = vor.u32 %v3847_v30, %v2732_v31 }
  0x46   : > { %440 = vmatpush.bf16.msra.mxu1 %v2759_v9  ;;  %453 = vmatpush.bf16.msra.mxu2 %v2763_v10  ;;  %v2714_v39 = vld [vmem:[#allocation7 + $0x8] sm:$0xf]  ;;  %v3845_v41 = vld [vmem:[#allocation7 + $0x14] sm:$0xf0]  ;;  %v3843_v42 = vld [vmem:[#allocation7 + $0xc] sm:$0xf]  ;;  %v2707_v47 = vor.u32 %v3844_v34, %v2706_v33  ;;  %v2711_v51 = vor.u32 %v3842_v37, %v2708_v38 }
  0x47   : > { %466 = vmatpush.bf16.msra.mxu3 %v2767_v14  ;;  %v2716_v43 = vld [vmem:[#allocation7 + $0x18] sm:$0xf0]  ;;  %v3840_v45 = vld [vmem:[%s4893_s4 + $0xec] sm:$0xf0]  ;;  %v3838_v46 = vld [vmem:[%s4893_s4 + $0xe4] sm:$0xf]  ;;  %v2715_v52 = vor.u32 %v3845_v41, %v2714_v39 }
  0x48   : > { %v2946_v44 = vld [vmem:[%s4893_s4 + $0xe0] sm:$0xf]  ;;  %v2948_v48 = vld [vmem:[%s4893_s4 + $0xf0] sm:$0xf0]  ;;  %v2954_v49 = vld [vmem:[%s4893_s4 + $0xe8] sm:$0xf]  ;;  %v2719_v56 = vor.u32 %v3843_v42, %v2716_v43 }
  0x49   : > { %428 = vmatpush.bf16.msra.mxu0 %v2739_v20  ;;  %v3841_v50 = vld [vmem:[%s4893_s4 + $0xf4] sm:$0xf0]  ;;  %v3839_v53 = vld [vmem:[%s4893_s4 + $0xec] sm:$0xf]  ;;  %v2956_v54 = vld [vmem:[%s4893_s4 + $0xf8] sm:$0xf0]  ;;  %v2947_v57 = vor.u32 %v3840_v45, %v2946_v44  ;;  %v2951_v58 = vor.u32 %v3838_v46, %v2948_v48 }
  0x4a   : > { %441 = vmatpush.bf16.msra.mxu1 %v2743_v21  ;;  %454 = vmatpush.bf16.msra.mxu2 %v2747_v22  ;;  %v196_v55 = vld [vmem:[#allocation2] sm:$0xff]  ;;  %v2955_v59 = vor.u32 %v3841_v50, %v2954_v49  ;;  %v3836_v61 = vld [vmem:[%s4893_s4 + $0xcc] sm:$0xf0]  ;;  %v2959_v63 = vor.u32 %v3839_v53, %v2956_v54  ;;  %v2932_v0 = vld [vmem:[%s4893_s4 + $0xd0] sm:$0xf0]  ;;  %s2703_s22 = sshll.u32 %s4374_s6, 2 }
  0x4b   : > { %467 = vmatpush.bf16.msra.mxu3 %v2751_v26  ;;  %v2930_v60 = vld [vmem:[%s4893_s4 + $0xc0] sm:$0xf]  ;;  %v3834_v62 = vld [vmem:[%s4893_s4 + $0xc4] sm:$0xf]  ;;  %v2938_v1 = vld [vmem:[%s4893_s4 + $0xc8] sm:$0xf]  ;;  %v230_v10 = vpack.c.bf16 %v196_v55, %v196_v55 }
  0x4c   : > { %v3837_v9 = vld [vmem:[%s4893_s4 + $0xd4] sm:$0xf0]  ;;  %v3835_v11 = vld [vmem:[%s4893_s4 + $0xcc] sm:$0xf]  ;;  %v2940_v12 = vld [vmem:[%s4893_s4 + $0xd8] sm:$0xf0]  ;;  %v2931_v13 = vor.u32 %v3836_v61, %v2930_v60  ;;  %v2935_v14 = vor.u32 %v3834_v62, %v2932_v0 }
  0x4d   : > { %429 = vmatpush.bf16.msra.mxu0 %v2723_v32  ;;  %v2939_v15 = vor.u32 %v3837_v9, %v2938_v1  ;;  %v2914_v16 = vld [vmem:[%s4893_s4 + $0xa0] sm:$0xf]  ;;  %v3832_v17 = vld [vmem:[%s4893_s4 + $0xac] sm:$0xf0]  ;;  %v3830_v18 = vld [vmem:[%s4893_s4 + $0xa4] sm:$0xf]  ;;  %v2943_v19 = vor.u32 %v3835_v11, %v2940_v12 }
  0x4e   : > { %442 = vmatpush.bf16.msra.mxu1 %v2727_v35  ;;  %455 = vmatpush.bf16.msra.mxu2 %v2731_v36  ;;  %v2916_v20 = vld [vmem:[%s4893_s4 + $0xb0] sm:$0xf0]  ;;  %v2922_v21 = vld [vmem:[%s4893_s4 + $0xa8] sm:$0xf]  ;;  %v3833_v22 = vld [vmem:[%s4893_s4 + $0xb4] sm:$0xf0]  ;;  %v2915_v25 = vor.u32 %v3832_v17, %v2914_v16 }
  0x4f   : > { %468 = vmatpush.bf16.msra.mxu3 %v2735_v40  ;;  %v3831_v23 = vld [vmem:[%s4893_s4 + $0xac] sm:$0xf]  ;;  %v2924_v24 = vld [vmem:[%s4893_s4 + $0xb8] sm:$0xf0]  ;;  %v2919_v26 = vor.u32 %v3830_v18, %v2916_v20  ;;  %v2923_v27 = vor.u32 %v3833_v22, %v2922_v21  ;;  %v2898_v28 = vld [vmem:[%s4893_s4 + $0x80] sm:$0xf] }
  0x50   : > { %v3828_v29 = vld [vmem:[%s4893_s4 + $0x8c] sm:$0xf0]  ;;  %v3826_v30 = vld [vmem:[%s4893_s4 + $0x84] sm:$0xf]  ;;  %v2927_v31 = vor.u32 %v3831_v23, %v2924_v24  ;;  %v2900_v32 = vld [vmem:[%s4893_s4 + $0x90] sm:$0xf0] }
  0x51   : > { %430 = vmatpush.bf16.msra.mxu0 %v2707_v47  ;;  %v2906_v33 = vld [vmem:[%s4893_s4 + $0x88] sm:$0xf]  ;;  %v3829_v34 = vld [vmem:[%s4893_s4 + $0x94] sm:$0xf0]  ;;  %v3827_v35 = vld [vmem:[%s4893_s4 + $0x8c] sm:$0xf]  ;;  %v2899_v37 = vor.u32 %v3828_v29, %v2898_v28  ;;  %v2903_v38 = vor.u32 %v3826_v30, %v2900_v32 }
  0x52   : > { %443 = vmatpush.bf16.msra.mxu1 %v2711_v51  ;;  %456 = vmatpush.bf16.msra.mxu2 %v2715_v52  ;;  %v2908_v36 = vld [vmem:[%s4893_s4 + $0x98] sm:$0xf0]  ;;  %v2907_v39 = vor.u32 %v3829_v34, %v2906_v33  ;;  %v2882_v40 = vld [vmem:[%s4893_s4 + $0x60] sm:$0xf]  ;;  %v3824_v41 = vld [vmem:[%s4893_s4 + $0x6c] sm:$0xf0] }
  0x53   : > { %469 = vmatpush.bf16.msra.mxu3 %v2719_v56  ;;  %v3822_v42 = vld [vmem:[%s4893_s4 + $0x64] sm:$0xf]  ;;  %v2911_v43 = vor.u32 %v3827_v35, %v2908_v36  ;;  %v2884_v44 = vld [vmem:[%s4893_s4 + $0x70] sm:$0xf0]  ;;  %v2890_v45 = vld [vmem:[%s4893_s4 + $0x68] sm:$0xf]  ;;  %v2883_v49 = vor.u32 %v3824_v41, %v2882_v40 }
  0x54   : > { %431 = vmatmul.bf16.vlgmr.msra.gmra.mxu0 %v230_v10  ;;  %v3825_v46 = vld [vmem:[%s4893_s4 + $0x74] sm:$0xf0]  ;;  %v3823_v47 = vld [vmem:[%s4893_s4 + $0x6c] sm:$0xf]  ;;  %v2892_v48 = vld [vmem:[%s4893_s4 + $0x78] sm:$0xf0]  ;;  %v2887_v50 = vor.u32 %v3822_v42, %v2884_v44 }
  0x55   : > { %635 = vmatpush.bf16.msrb.mxu0 %v2947_v57  ;;  %444 = vmatmul.bf16.vlgmr.msra.gmra.mxu1 %v230_v10  ;;  %v2891_v51 = vor.u32 %v3825_v46, %v2890_v45  ;;  %v2866_v52 = vld [vmem:[%s4893_s4 + $0x40] sm:$0xf]  ;;  %v3820_v53 = vld [vmem:[%s4893_s4 + $0x4c] sm:$0xf0]  ;;  %v3818_v54 = vld [vmem:[%s4893_s4 + $0x44] sm:$0xf]  ;;  %v2895_v55 = vor.u32 %v3823_v47, %v2892_v48 }
  0x56   : > { %648 = vmatpush.bf16.msrb.mxu1 %v2951_v58  ;;  %661 = vmatpush.bf16.msrb.mxu2 %v2955_v59  ;;  %v2868_v56 = vld [vmem:[%s4893_s4 + $0x50] sm:$0xf0]  ;;  %v2874_v57 = vld [vmem:[%s4893_s4 + $0x48] sm:$0xf]  ;;  %v3821_v58 = vld [vmem:[%s4893_s4 + $0x54] sm:$0xf0]  ;;  %v2867_v61 = vor.u32 %v3820_v53, %v2866_v52 }
  0x57   : > { %674 = vmatpush.bf16.msrb.mxu3 %v2959_v63  ;;  %457 = vmatmul.bf16.vlgmr.msra.gmra.mxu2 %v230_v10  ;;  %v3819_v59 = vld [vmem:[%s4893_s4 + $0x4c] sm:$0xf]  ;;  %v2876_v60 = vld [vmem:[%s4893_s4 + $0x58] sm:$0xf0]  ;;  %v2871_v62 = vor.u32 %v3818_v54, %v2868_v56  ;;  %v2875_v63 = vor.u32 %v3821_v58, %v2874_v57  ;;  %v2850_v0 = vld [vmem:[%s4893_s4 + $0x20] sm:$0xf] }
  0x58   : > { %470 = vmatmul.bf16.vlgmr.msra.gmra.mxu3 %v230_v10  ;;  %v3816_v1 = vld [vmem:[%s4893_s4 + $0x2c] sm:$0xf0]  ;;  %v3814_v9 = vld [vmem:[%s4893_s4 + $0x24] sm:$0xf]  ;;  %v2879_v10 = vor.u32 %v3819_v59, %v2876_v60  ;;  %v2852_v11 = vld [vmem:[%s4893_s4 + $0x30] sm:$0xf0] }
  0x59   : > { %636 = vmatpush.bf16.msrb.mxu0 %v2931_v13  ;;  %v2858_v12 = vld [vmem:[%s4893_s4 + $0x28] sm:$0xf]  ;;  %v3817_v13 = vld [vmem:[%s4893_s4 + $0x34] sm:$0xf0]  ;;  %v2851_v16 = vor.u32 %v3816_v1, %v2850_v0  ;;  %v2855_v17 = vor.u32 %v3814_v9, %v2852_v11  ;;  %v3812_v20 = vld [vmem:[%s4893_s4 + $0xc] sm:$0xf0] }
  0x5a   : > { %649 = vmatpush.bf16.msrb.mxu1 %v2935_v14  ;;  %662 = vmatpush.bf16.msrb.mxu2 %v2939_v15  ;;  %v3815_v14 = vld [vmem:[%s4893_s4 + $0x2c] sm:$0xf]  ;;  %v2860_v15 = vld [vmem:[%s4893_s4 + $0x38] sm:$0xf0]  ;;  %v2859_v18 = vor.u32 %v3817_v13, %v2858_v12  ;;  %v3810_v21 = vld [vmem:[%s4893_s4 + $0x4] sm:$0xf] }
  0x5b   : > { %675 = vmatpush.bf16.msrb.mxu3 %v2943_v19  ;;  %v2834_v19 = vld [vmem:[%s4893_s4] sm:$0xf]  ;;  %v2863_v22 = vor.u32 %v3815_v14, %v2860_v15  ;;  %v2836_v23 = vld [vmem:[%s4893_s4 + $0x10] sm:$0xf0]  ;;  %v2842_v24 = vld [vmem:[%s4893_s4 + $0x8] sm:$0xf] }
  0x5c   : > { %v2835_v28 = vor.u32 %v3812_v20, %v2834_v19  ;;  %v2839_v29 = vor.u32 %v3810_v21, %v2836_v23  ;;  %s4914_s1 = sld [smem:[#allocation24_spill]]  ;;  %v3077_v33 = vld [vmem:[#allocation11 + $0xe0] sm:$0xf]  ;;  %v3936_v34 = vld [vmem:[#allocation11 + $0xec] sm:$0xf0]  ;;  %s192_s6 = sadd.s32 1, %s4374_s6  }
  0x5d   : > { %637 = vmatpush.bf16.msrb.mxu0 %v2915_v25  ;;  %v3813_v25 = vld [vmem:[%s4893_s4 + $0x14] sm:$0xf0]  ;;  %v3934_v35 = vld [vmem:[#allocation11 + $0xe4] sm:$0xf]  ;;  %v3078_v36 = vor.u32 %v3936_v34, %v3077_v33  ;;  %v3935_v42 = vld [vmem:[#allocation11 + $0xec] sm:$0xf] }
  0x5e   : > { %650 = vmatpush.bf16.msrb.mxu1 %v2919_v26  ;;  %663 = vmatpush.bf16.msrb.mxu2 %v2923_v27  ;;  %v3811_v26 = vld [vmem:[%s4893_s4 + $0xc] sm:$0xf]  ;;  %v2844_v27 = vld [vmem:[%s4893_s4 + $0x18] sm:$0xf0]  ;;  %v2843_v30 = vor.u32 %v3813_v25, %v2842_v24  ;;  %v3061_v44 = vld [vmem:[#allocation11 + $0xc0] sm:$0xf] }
  0x5f   : > { %676 = vmatpush.bf16.msrb.mxu3 %v2927_v31  ;;  %v2847_v31 = vor.u32 %v3811_v26, %v2844_v27  ;;  %v3932_v46 = vld [vmem:[#allocation11 + $0xcc] sm:$0xf0]  ;;  %v3930_v47 = vld [vmem:[#allocation11 + $0xc4] sm:$0xf]  ;;  %v3063_v48 = vld [vmem:[#allocation11 + $0xd0] sm:$0xf0] }
  0x60   : > { %v3933_v52 = vld [vmem:[#allocation11 + $0xd4] sm:$0xf0]  ;;  %v3931_v53 = vld [vmem:[#allocation11 + $0xcc] sm:$0xf]  ;;  %v3045_v57 = vld [vmem:[#allocation11 + $0xa0] sm:$0xf] }
  0x61   : > { %638 = vmatpush.bf16.msrb.mxu0 %v2899_v37  ;;  %v3079_v37 = vld [vmem:[#allocation11 + $0xf0] sm:$0xf0]  ;;  %v3928_v58 = vld [vmem:[#allocation11 + $0xac] sm:$0xf0]  ;;  %v3926_v59 = vld [vmem:[#allocation11 + $0xa4] sm:$0xf] }
  0x62   : > { %651 = vmatpush.bf16.msrb.mxu1 %v2903_v38  ;;  %664 = vmatpush.bf16.msrb.mxu2 %v2907_v39  ;;  %s194_s13 = scalar_lea.vmem %s4914_s1, %s2703_s22  ;;  %v3085_v38 = vld [vmem:[#allocation11 + $0xe8] sm:$0xf]  ;;  %v3937_v39 = vld [vmem:[#allocation11 + $0xf4] sm:$0xf0]  ;;  %v3082_v40 = vor.u32 %v3934_v35, %v3079_v37  ;;  %v3046_v60 = vor.u32 %v3928_v58, %v3045_v57  ;;  %v3927_v9 = vld [vmem:[#allocation11 + $0xac] sm:$0xf] }
  0x63   : > { %677 = vmatpush.bf16.msrb.mxu3 %v2911_v43  ;;  %v195_v32 = vld [vmem:[%s194_s13] sm:$0xf]  ;;  %v3086_v41 = vor.u32 %v3937_v39, %v3085_v38  ;;  %v3029_v12 = vld [vmem:[#allocation11 + $0x80] sm:$0xf]  ;;  %v3924_v13 = vld [vmem:[#allocation11 + $0x8c] sm:$0xf0] }
  0x64   : > { %v3087_v43 = vld [vmem:[#allocation11 + $0xf8] sm:$0xf0]  ;;  %v3922_v14 = vld [vmem:[#allocation11 + $0x84] sm:$0xf]  ;;  %v3030_v15 = vor.u32 %v3924_v13, %v3029_v12  ;;  %v3923_v21 = vld [vmem:[#allocation11 + $0x8c] sm:$0xf] }
  0x65   : > { %639 = vmatpush.bf16.msrb.mxu0 %v2883_v49  ;;  %v3090_v45 = vor.u32 %v3935_v42, %v3087_v43  ;;  %v3062_v49 = vor.u32 %v3932_v46, %v3061_v44  ;;  %v3013_v25 = vld [vmem:[#allocation11 + $0x60] sm:$0xf]  ;;  %v3920_v26 = vld [vmem:[#allocation11 + $0x6c] sm:$0xf0]  ;;  %v3921_v33 = vld [vmem:[#allocation11 + $0x74] sm:$0xf0] }
  0x66   : > { %652 = vmatpush.bf16.msrb.mxu1 %v2887_v50  ;;  %665 = vmatpush.bf16.msrb.mxu2 %v2891_v51  ;;  %v3066_v50 = vor.u32 %v3930_v47, %v3063_v48  ;;  %v3069_v51 = vld [vmem:[#allocation11 + $0xc8] sm:$0xf]  ;;  %v3919_v34 = vld [vmem:[#allocation11 + $0x6c] sm:$0xf]  ;;  %v3023_v35 = vld [vmem:[#allocation11 + $0x78] sm:$0xf0] }
  0x67   : > { %678 = vmatpush.bf16.msrb.mxu3 %v2895_v55  ;;  %v3070_v54 = vor.u32 %v3933_v52, %v3069_v51  ;;  %v3071_v55 = vld [vmem:[#allocation11 + $0xd8] sm:$0xf0]  ;;  %v3026_v37 = vor.u32 %v3919_v34, %v3023_v35  ;;  %v2997_v38 = vld [vmem:[#allocation11 + $0x40] sm:$0xf]  ;;  %v3916_v39 = vld [vmem:[#allocation11 + $0x4c] sm:$0xf0] }
  0x68   : > { %v3074_v56 = vor.u32 %v3931_v53, %v3071_v55  ;;  %v2999_v42 = vld [vmem:[#allocation11 + $0x50] sm:$0xf0]  ;;  %v3005_v43 = vld [vmem:[#allocation11 + $0x48] sm:$0xf]  ;;  %v3917_v44 = vld [vmem:[#allocation11 + $0x54] sm:$0xf0] }
  0x69   : > { %640 = vmatpush.bf16.msrb.mxu0 %v2867_v61  ;;  %v3047_v61 = vld [vmem:[#allocation11 + $0xb0] sm:$0xf0]  ;;  %v3006_v46 = vor.u32 %v3917_v44, %v3005_v43  ;;  %v3915_v47 = vld [vmem:[#allocation11 + $0x4c] sm:$0xf]  ;;  %v3007_v48 = vld [vmem:[#allocation11 + $0x58] sm:$0xf0] }
  0x6a   : > { %653 = vmatpush.bf16.msrb.mxu1 %v2871_v62  ;;  %666 = vmatpush.bf16.msrb.mxu2 %v2875_v63  ;;  %v3053_v62 = vld [vmem:[#allocation11 + $0xa8] sm:$0xf]  ;;  %v3929_v63 = vld [vmem:[#allocation11 + $0xb4] sm:$0xf0]  ;;  %v3050_v0 = vor.u32 %v3926_v59, %v3047_v61  ;;  %v2981_v53 = vld [vmem:[#allocation11 + $0x20] sm:$0xf] }
  0x6b   : > { %679 = vmatpush.bf16.msrb.mxu3 %v2879_v10  ;;  %v3054_v1 = vor.u32 %v3929_v63, %v3053_v62  ;;  %v3055_v10 = vld [vmem:[#allocation11 + $0xb8] sm:$0xf0]  ;;  %v3910_v55 = vld [vmem:[#allocation11 + $0x24] sm:$0xf]  ;;  %v2983_v58 = vld [vmem:[#allocation11 + $0x30] sm:$0xf0] }
  0x6c   : > { %v3058_v11 = vor.u32 %v3927_v9, %v3055_v10  ;;  %v2989_v59 = vld [vmem:[#allocation11 + $0x28] sm:$0xf]  ;;  %v2986_v61 = vor.u32 %v3910_v55, %v2983_v58  ;;  %v3911_v63 = vld [vmem:[#allocation11 + $0x2c] sm:$0xf]  ;;  %v2965_v9 = vld [vmem:[#allocation11] sm:$0xf] }
  0x6d   : > { %641 = vmatpush.bf16.msrb.mxu0 %v2851_v16  ;;  %v3031_v16 = vld [vmem:[#allocation11 + $0x90] sm:$0xf0]  ;;  %v3908_v10 = vld [vmem:[#allocation11 + $0xc] sm:$0xf0]  ;;  %v3215_v35 = vld [vmem:[#allocation9 + $0xf8] sm:$0xf0] }
  0x6e   : > { %654 = vmatpush.bf16.msrb.mxu1 %v2855_v17  ;;  %667 = vmatpush.bf16.msrb.mxu2 %v2859_v18  ;;  %v3037_v17 = vld [vmem:[#allocation11 + $0x88] sm:$0xf]  ;;  %v3925_v18 = vld [vmem:[#allocation11 + $0x94] sm:$0xf0]  ;;  %v3034_v19 = vor.u32 %v3922_v14, %v3031_v16  ;;  %v2966_v12 = vor.u32 %v3908_v10, %v2965_v9  ;;  %v2967_v13 = vld [vmem:[#allocation11 + $0x10] sm:$0xf0] }
  0x6f   : > { %680 = vmatpush.bf16.msrb.mxu3 %v2863_v22  ;;  %v3038_v20 = vor.u32 %v3925_v18, %v3037_v17  ;;  %v3039_v22 = vld [vmem:[#allocation11 + $0x98] sm:$0xf0]  ;;  %v2973_v14 = vld [vmem:[#allocation11 + $0x8] sm:$0xf]  ;;  %v3907_v18 = vld [vmem:[#allocation11 + $0xc] sm:$0xf] }
  0x70   : > { %v3042_v23 = vor.u32 %v3923_v21, %v3039_v22  ;;  %v3901_v44 = vld [vmem:[#allocation9 + $0xd4] sm:$0xf0]  ;;  %v3894_v55 = vld [vmem:[#allocation9 + $0xa4] sm:$0xf]  ;;  %v3181_v58 = vld [vmem:[#allocation9 + $0xa8] sm:$0xf] }
  0x71   : > { %642 = vmatpush.bf16.msrb.mxu0 %v2835_v28  ;;  %v3014_v28 = vor.u32 %v3920_v26, %v3013_v25  ;;  %v3902_v25 = vld [vmem:[#allocation9 + $0xe4] sm:$0xf]  ;;  %v3207_v26 = vld [vmem:[#allocation9 + $0xf0] sm:$0xf0]  ;;  %v3892_v9 = vld [vmem:[#allocation9 + $0x8c] sm:$0xf0] }
  0x72   : > { %655 = vmatpush.bf16.msrb.mxu1 %v2839_v29  ;;  %668 = vmatpush.bf16.msrb.mxu2 %v2843_v30  ;;  %v3918_v29 = vld [vmem:[#allocation11 + $0x64] sm:$0xf]  ;;  %v3015_v30 = vld [vmem:[#allocation11 + $0x70] sm:$0xf0]  ;;  %p189_p0 = scmp.ge.s32.totalorder %s192_s6, 6  }
  0x73   : > { %681 = vmatpush.bf16.msrb.mxu3 %v2847_v31  ;;  %v3021_v31 = vld [vmem:[#allocation11 + $0x68] sm:$0xf]  ;;  %s4915_s9 = sld [smem:[#allocation25_spill]] (%p189_p0)  ;;  %s4788_s12 = smov (%p189_p0), 0  }
  0x74   : > { %643 = vmatmul.bf16.vlgmr.msrb.gmra.mxu0 %v195_v32 }
  0x75   : > { %656 = vmatmul.bf16.vlgmr.msrb.gmra.mxu1 %v195_v32  ;;  %669 = vmatmul.bf16.vlgmr.msrb.gmra.mxu2 %v195_v32 }
  0x76   : > { %682 = vmatmul.bf16.vlgmr.msrb.gmra.mxu3 %v195_v32  ;;  %995 = vmatpush.bf16.msra.mxu0 %v3078_v36  ;;  %v3018_v32 = vor.u32 %v3918_v29, %v3015_v30  ;;  %v3022_v36 = vor.u32 %v3921_v33, %v3021_v31  ;;  %v3210_v30 = vor.u32 %v3902_v25, %v3207_v26  ;;  %v3213_v31 = vld [vmem:[#allocation9 + $0xe8] sm:$0xf]  ;;  %v3903_v33 = vld [vmem:[#allocation9 + $0xec] sm:$0xf]  ;;  %v3888_v25 = vld [vmem:[#allocation9 + $0x6c] sm:$0xf0] }
  0x77   : > { %1008 = vmatpush.bf16.msra.mxu1 %v3082_v40  ;;  %1021 = vmatpush.bf16.msra.mxu2 %v3086_v41  ;;  %v3914_v40 = vld [vmem:[#allocation11 + $0x44] sm:$0xf]  ;;  %v2998_v41 = vor.u32 %v3916_v39, %v2997_v38  ;;  %v3218_v38 = vor.u32 %v3903_v33, %v3215_v35  ;;  %v3889_v33 = vld [vmem:[#allocation9 + $0x74] sm:$0xf0] }
  0x78   : > { %1034 = vmatpush.bf16.msra.mxu3 %v3090_v45  ;;  %v3002_v45 = vor.u32 %v3914_v40, %v2999_v42  ;;  %v3898_v40 = vld [vmem:[#allocation9 + $0xc4] sm:$0xf]  ;;  %v3197_v42 = vld [vmem:[#allocation9 + $0xc8] sm:$0xf] }
  0x79   : > { %v3886_v26 = vld [vmem:[#allocation9 + $0x64] sm:$0xf] }
  0x7a   : > { %996 = vmatpush.bf16.msra.mxu0 %v3062_v49 }
  0x7b   : > { %1009 = vmatpush.bf16.msra.mxu1 %v3066_v50  ;;  %1022 = vmatpush.bf16.msra.mxu2 %v3070_v54  ;;  %v3010_v50 = vor.u32 %v3915_v47, %v3007_v48  ;;  %v3912_v54 = vld [vmem:[#allocation11 + $0x2c] sm:$0xf0]  ;;  %v3198_v47 = vor.u32 %v3901_v44, %v3197_v42  ;;  %v3125_v42 = vld [vmem:[#allocation9 + $0x40] sm:$0xf]  ;;  %v3882_v44 = vld [vmem:[#allocation9 + $0x44] sm:$0xf] }
  0x7c   : > { %1035 = vmatpush.bf16.msra.mxu3 %v3074_v56  ;;  %v2982_v57 = vor.u32 %v3912_v54, %v2981_v53  ;;  %v3173_v53 = vld [vmem:[#allocation9 + $0xa0] sm:$0xf]  ;;  %v3896_v54 = vld [vmem:[#allocation9 + $0xac] sm:$0xf0] }
  0x7e   : > { %997 = vmatpush.bf16.msra.mxu0 %v3046_v60  ;;  %v3913_v60 = vld [vmem:[#allocation11 + $0x34] sm:$0xf0] }
  0x7f   : > { %1010 = vmatpush.bf16.msra.mxu1 %v3050_v0  ;;  %1023 = vmatpush.bf16.msra.mxu2 %v3054_v1  ;;  %v2990_v62 = vor.u32 %v3913_v60, %v2989_v59  ;;  %v2991_v0 = vld [vmem:[#allocation11 + $0x38] sm:$0xf0]  ;;  %v3897_v59 = vld [vmem:[#allocation9 + $0xb4] sm:$0xf0] }
  0x80   : > { %1036 = vmatpush.bf16.msra.mxu3 %v3058_v11  ;;  %v2994_v1 = vor.u32 %v3911_v63, %v2991_v0  ;;  %v3906_v11 = vld [vmem:[#allocation11 + $0x4] sm:$0xf]  ;;  %v3183_v63 = vld [vmem:[#allocation9 + $0xb8] sm:$0xf0] }
  0x81   : > { %v2970_v16 = vor.u32 %v3906_v11, %v2967_v13  ;;  %v3890_v11 = vld [vmem:[#allocation9 + $0x84] sm:$0xf]  ;;  %v3165_v13 = vld [vmem:[#allocation9 + $0x88] sm:$0xf] }
  0x82   : > { %998 = vmatpush.bf16.msra.mxu0 %v3030_v15  ;;  %v3909_v15 = vld [vmem:[#allocation11 + $0x14] sm:$0xf0] }
  0x83   : > { %1011 = vmatpush.bf16.msra.mxu1 %v3034_v19  ;;  %1024 = vmatpush.bf16.msra.mxu2 %v3038_v20  ;;  %v2974_v17 = vor.u32 %v3909_v15, %v2973_v14  ;;  %v2975_v19 = vld [vmem:[#allocation11 + $0x18] sm:$0xf0]  ;;  %v3205_v20 = vld [vmem:[#allocation9 + $0xe0] sm:$0xf]  ;;  %v3893_v15 = vld [vmem:[#allocation9 + $0x94] sm:$0xf0] }
  0x84   : > { %1037 = vmatpush.bf16.msra.mxu3 %v3042_v23  ;;  %v2978_v22 = vor.u32 %v3907_v18, %v2975_v19  ;;  %v3904_v23 = vld [vmem:[#allocation9 + $0xec] sm:$0xf0]  ;;  %v688_v18 = vperm.slane %v4539_v4, 0  ;;  %v689_v19 = vperm.slane %v4539_v4, 1 }
  0x85   : > { %v3206_v29 = vor.u32 %v3904_v23, %v3205_v20  ;;  %v3166_v20 = vor.u32 %v3893_v15, %v3165_v13  ;;  %v3141_v23 = vld [vmem:[#allocation9 + $0x60] sm:$0xf]  ;;  %v3879_v13 = vld [vmem:[#allocation9 + $0x2c] sm:$0xf] }
  0x86   : > { %999 = vmatpush.bf16.msra.mxu0 %v3014_v28 }
  0x87   : > { %1012 = vmatpush.bf16.msra.mxu1 %v3018_v32  ;;  %1025 = vmatpush.bf16.msra.mxu2 %v3022_v36  ;;  %v3905_v32 = vld [vmem:[#allocation9 + $0xf4] sm:$0xf0]  ;;  %v3189_v36 = vld [vmem:[#allocation9 + $0xc0] sm:$0xf] }
  0x88   : > { %1038 = vmatpush.bf16.msra.mxu3 %v3026_v37  ;;  %v3214_v34 = vor.u32 %v3905_v32, %v3213_v31  ;;  %v3900_v37 = vld [vmem:[#allocation9 + $0xcc] sm:$0xf0]  ;;  %v3143_v31 = vld [vmem:[#allocation9 + $0x70] sm:$0xf0]  ;;  %v3149_v32 = vld [vmem:[#allocation9 + $0x68] sm:$0xf] }
  0x89   : > { %v3190_v39 = vor.u32 %v3900_v37, %v3189_v36  ;;  %v3146_v35 = vor.u32 %v3886_v26, %v3143_v31  ;;  %v3150_v36 = vor.u32 %v3889_v33, %v3149_v32  ;;  %v3887_v37 = vld [vmem:[#allocation9 + $0x6c] sm:$0xf] }
  0x8a   : > { %1000 = vmatpush.bf16.msra.mxu0 %v2998_v41  ;;  %v3191_v41 = vld [vmem:[#allocation9 + $0xd0] sm:$0xf0] }
  0x8b   : > { %1013 = vmatpush.bf16.msra.mxu1 %v3002_v45  ;;  %1026 = vmatpush.bf16.msra.mxu2 %v3006_v46  ;;  %v3194_v43 = vor.u32 %v3898_v40, %v3191_v41  ;;  %v3899_v45 = vld [vmem:[#allocation9 + $0xcc] sm:$0xf]  ;;  %v3199_v46 = vld [vmem:[#allocation9 + $0xd8] sm:$0xf0]  ;;  %v691_v40 = vperm.slane %v4539_v4, 3 }
  0x8c   : > { %1039 = vmatpush.bf16.msra.mxu3 %v3010_v50  ;;  %v3202_v48 = vor.u32 %v3899_v45, %v3199_v46  ;;  %v767_v50 = vld [vmem:[#allocation2 + $0x8] sm:$0xff] }
  0x8e   : > { %1001 = vmatpush.bf16.msra.mxu0 %v2982_v57  ;;  %v3175_v57 = vld [vmem:[#allocation9 + $0xb0] sm:$0xf0] }
  0x8f   : > { %1014 = vmatpush.bf16.msra.mxu1 %v2986_v61  ;;  %1027 = vmatpush.bf16.msra.mxu2 %v2990_v62  ;;  %v3178_v60 = vor.u32 %v3894_v55, %v3175_v57  ;;  %v3182_v61 = vor.u32 %v3897_v59, %v3181_v58  ;;  %v3895_v62 = vld [vmem:[#allocation9 + $0xac] sm:$0xf]  ;;  %v3109_v57 = vld [vmem:[#allocation9 + $0x20] sm:$0xf]  ;;  %v3880_v58 = vld [vmem:[#allocation9 + $0x2c] sm:$0xf0] }
  0x90   : > { %1040 = vmatpush.bf16.msra.mxu3 %v2994_v1  ;;  %v3186_v0 = vor.u32 %v3895_v62, %v3183_v63  ;;  %v3157_v1 = vld [vmem:[#allocation9 + $0x80] sm:$0xf]  ;;  %v3878_v62 = vld [vmem:[#allocation9 + $0x24] sm:$0xf]  ;;  %v3111_v63 = vld [vmem:[#allocation9 + $0x30] sm:$0xf0] }
  0x91   : > { %v3158_v10 = vor.u32 %v3892_v9, %v3157_v1 }
  0x92   : > { %1002 = vmatpush.bf16.msra.mxu0 %v2966_v12  ;;  %v3159_v12 = vld [vmem:[#allocation9 + $0x90] sm:$0xf0] }
  0x93   : > { %1015 = vmatpush.bf16.msra.mxu1 %v2970_v16  ;;  %1028 = vmatpush.bf16.msra.mxu2 %v2974_v17  ;;  %v3162_v14 = vor.u32 %v3890_v11, %v3159_v12  ;;  %v3891_v16 = vld [vmem:[#allocation9 + $0x8c] sm:$0xf]  ;;  %v3167_v17 = vld [vmem:[#allocation9 + $0x98] sm:$0xf0]  ;;  %v3114_v11 = vor.u32 %v3878_v62, %v3111_v63  ;;  %v3881_v12 = vld [vmem:[#allocation9 + $0x34] sm:$0xf0] }
  0x94   : > { %1041 = vmatpush.bf16.msra.mxu3 %v2978_v22 }
  0x96   : > { %1207 = vmatpush.bf16.msrb.mxu0 %v3206_v29 }
  0x97   : > { %1220 = vmatpush.bf16.msrb.mxu1 %v3210_v30  ;;  %1233 = vmatpush.bf16.msrb.mxu2 %v3214_v34  ;;  %v3142_v30 = vor.u32 %v3888_v25, %v3141_v23  ;;  %v3877_v23 = vld [vmem:[#allocation9 + $0x14] sm:$0xf0]  ;;  %v3103_v25 = vld [vmem:[#allocation9 + $0x18] sm:$0xf0] }
  0x98   : > { %1246 = vmatpush.bf16.msrb.mxu3 %v3218_v38  ;;  %v3151_v38 = vld [vmem:[#allocation9 + $0x78] sm:$0xf0] }
  0x99   : > { %v3154_v41 = vor.u32 %v3887_v37, %v3151_v38 }
  0x9a   : > { %1208 = vmatpush.bf16.msrb.mxu0 %v3190_v39 }
  0x9b   : > { %1221 = vmatpush.bf16.msrb.mxu1 %v3194_v43  ;;  %1234 = vmatpush.bf16.msrb.mxu2 %v3198_v47  ;;  %v3884_v43 = vld [vmem:[#allocation9 + $0x4c] sm:$0xf0]  ;;  %v3127_v47 = vld [vmem:[#allocation9 + $0x50] sm:$0xf0] }
  0x9c   : > { %1247 = vmatpush.bf16.msrb.mxu3 %v3202_v48  ;;  %v3126_v46 = vor.u32 %v3884_v43, %v3125_v42 }
  0x9f   : > { %1222 = vmatpush.bf16.msrb.mxu1 %v3178_v60  ;;  %1235 = vmatpush.bf16.msrb.mxu2 %v3182_v61 }
  0xa0   : > { %1248 = vmatpush.bf16.msrb.mxu3 %v3186_v0  ;;  %v3117_v0 = vld [vmem:[#allocation9 + $0x28] sm:$0xf] }
  0xa1   : > { %v3118_v15 = vor.u32 %v3881_v12, %v3117_v0 }
  0xa3   : > { %1223 = vmatpush.bf16.msrb.mxu1 %v3162_v14  ;;  %1236 = vmatpush.bf16.msrb.mxu2 %v3166_v20  ;;  %v3119_v14 = vld [vmem:[#allocation9 + $0x38] sm:$0xf0] }
  0xa4   : > { %v3122_v20 = vor.u32 %v3879_v13, %v3119_v14 }
  0xa7   : > { %1224 = vmatpush.bf16.msrb.mxu1 %v3146_v35  ;;  %1237 = vmatpush.bf16.msrb.mxu2 %v3150_v36 }
  0xd1   : > { %v4762_v24 = vpop.f32.mrf.mxu0 }
  0xd2   : > { %v4764_v27 = vpop.f32.mrf.mxu1 }
  0xd9   : > { %v434_v51 = vpop.f32.mrf.mxu0 }
  0xda   : > { %v4768_v52 = vpop.f32.mrf.mxu2  ;;  %v447_v56 = vpop.f32.mrf.mxu1  ;;  %v802_v51 = vpack.c.bf16 %v767_v50, %v767_v50  ;;  %v3130_v50 = vor.u32 %v3882_v44, %v3127_v47 }
  0xdb   : > { %v4766_v49 = vpop.f32.mrf.mxu3  ;;  %v3174_v56 = vor.u32 %v3896_v54, %v3173_v53  ;;  %v3883_v53 = vld [vmem:[#allocation9 + $0x4c] sm:$0xf] }
  0xdc   : > { %1003 = vmatmul.bf16.vlgmr.msra.gmra.mxu0 %v802_v51  ;;  %1016 = vmatmul.bf16.vlgmr.msra.gmra.mxu1 %v802_v51 }
  0xdd   : > { %1042 = vmatmul.bf16.vlgmr.msra.gmra.mxu3 %v802_v51  ;;  %1029 = vmatmul.bf16.vlgmr.msra.gmra.mxu2 %v802_v51  ;;  %v3885_v51 = vld [vmem:[#allocation9 + $0x54] sm:$0xf0] }
  0xde   : > { %1209 = vmatpush.bf16.msrb.mxu0 %v3174_v56  ;;  %v3135_v56 = vld [vmem:[#allocation9 + $0x58] sm:$0xf0]  ;;  %1225 = vmatpush.bf16.msrb.mxu1 %v3130_v50 }
  0xdf   : > { %v3138_v61 = vor.u32 %v3883_v53, %v3135_v56 }
  0xe2   : > { %v460_v28 = vpop.f32.mrf.mxu2  ;;  %1210 = vmatpush.bf16.msrb.mxu0 %v3158_v10  ;;  %v3110_v10 = vor.u32 %v3880_v58, %v3109_v57  ;;  %1226 = vmatpush.bf16.msrb.mxu1 %v3114_v11 }
  0xe3   : > { %v473_v21 = vpop.f32.mrf.mxu3 }
  0xe4   : > { %v3170_v21 = vor.u32 %v3891_v16, %v3167_v17  ;;  %v3093_v16 = vld [vmem:[#allocation9] sm:$0xf]  ;;  %v3876_v17 = vld [vmem:[#allocation9 + $0xc] sm:$0xf0] }
  0xe6   : > { %1249 = vmatpush.bf16.msrb.mxu3 %v3170_v21  ;;  %1211 = vmatpush.bf16.msrb.mxu0 %v3142_v30  ;;  %v3095_v21 = vld [vmem:[#allocation9 + $0x10] sm:$0xf0] }
  0xea   : > { %1250 = vmatpush.bf16.msrb.mxu3 %v3154_v41  ;;  %1212 = vmatpush.bf16.msrb.mxu0 %v3126_v46 }
  0xee   : > { %1251 = vmatpush.bf16.msrb.mxu3 %v3138_v61  ;;  %1213 = vmatpush.bf16.msrb.mxu0 %v3110_v10 }
  0xf1   : > { %v644_v22 = vpop.f32.mrf.mxu0 }
  0xf2   : > { %v645_v28 = vadd.f32 %v644_v22, %v4762_v24  ;;  %v657_v29 = vpop.f32.mrf.mxu1  ;;  %v3101_v22 = vld [vmem:[#allocation9 + $0x8] sm:$0xf]  ;;  %1252 = vmatpush.bf16.msrb.mxu3 %v3122_v20 }
  0xf3   : > { %v658_v34 = vadd.f32 %v657_v29, %v4764_v27  ;;  %v3133_v27 = vld [vmem:[#allocation9 + $0x48] sm:$0xf]  ;;  %v3094_v29 = vor.u32 %v3876_v17, %v3093_v16  ;;  %v3102_v33 = vor.u32 %v3877_v23, %v3101_v22 }
  0xf4   : > { %v696_v39 = vadd.f32 %v688_v18, %v645_v28  ;;  %v3134_v55 = vor.u32 %v3885_v51, %v3133_v27  ;;  %v3874_v18 = vld [vmem:[#allocation9 + $0x4] sm:$0xf] }
  0xf5   : > { %v697_v24 = vadd.f32 %v689_v19, %v658_v34  ;;  %v3098_v30 = vor.u32 %v3874_v18, %v3095_v21  ;;  %1214 = vmatpush.bf16.msrb.mxu0 %v3094_v29 }
  0xf6   : > { %v2960_v45 = vmul.f32 -1.442695, %v696_v39  ;;  %1238 = vmatpush.bf16.msrb.mxu2 %v3134_v55  ;;  %v690_v39 = vperm.slane %v4539_v4, 2 }
  0xf7   : > { %v2961_v48 = vmul.f32 -1.442695, %v697_v24  ;;  %1227 = vmatpush.bf16.msrb.mxu1 %v3098_v30 }
  0xf8   : > { %4110 = vpow2.f32 %v2960_v45  ;;  %v670_v54 = vpop.f32.mrf.mxu2 }
  0xf9   : > { %4112 = vpow2.f32 %v2961_v48  ;;  %v683_v59 = vpop.f32.mrf.mxu3  ;;  %v646_v60 = vpop.f32.mrf.mxu0  ;;  %v671_v38 = vadd.f32 %v670_v54, %v4768_v52 }
  0xfa   : > { %v684_v1 = vadd.f32 %v683_v59, %v4766_v49  ;;  %v659_v9 = vpop.f32.mrf.mxu1  ;;  %v3875_v49 = vld [vmem:[#allocation9 + $0xc] sm:$0xf]  ;;  %1239 = vmatpush.bf16.msrb.mxu2 %v3118_v15  ;;  %v197_v59 = vld [vmem:[#allocation3 + $0x8] sm:$0xff] }
  0xfb   : > { %v3106_v36 = vor.u32 %v3875_v49, %v3103_v25  ;;  %v698_v24 = vadd.f32 %v690_v39, %v671_v38 }
  0xfc   : > { %v699_v19 = vadd.f32 %v691_v40, %v684_v1 }
  0xfd   : > { %1253 = vmatpush.bf16.msrb.mxu3 %v3106_v36 }
  0xfe   : > { %v4111_v26 = vpop.eup %4110  ;;  %v2962_v28 = vmul.f32 -1.442695, %v699_v19  ;;  %1240 = vmatpush.bf16.msrb.mxu2 %v3102_v33  ;;  %v1261_v33 = vperm.slane %v4544_v5, 1 }
  0xff   : > { %v4113_v31 = vpop.eup %4112  ;;  %v703_v32 = vadd.f32 1.0, %v4111_v26 }
 0x100   : > { %v722_v34 = vadd.f32 1.0, %v4113_v31  ;;  %4114 = vpow2.f32 %v2962_v28  ;;  %v672_v35 = vpop.f32.mrf.mxu2 }
 0x101   : > { %4116 = vrcp.f32 %v703_v32  ;;  %v685_v37 = vpop.f32.mrf.mxu3  ;;  %v715_v27 = vand.u32 2147483648, %v703_v32  ;;  %v713_v52 = vand.u32 2147483647, %v703_v32  ;;  %vm709_vm3 = vweird.f32 %v703_v32 }
 0x102   : > { %4118 = vrcp.f32 %v722_v34  ;;  %v734_v48 = vand.u32 2147483648, %v722_v34  ;;  %v732_v53 = vand.u32 2147483647, %v722_v34  ;;  %vm728_vm4 = vweird.f32 %v722_v34 }
 0x103   : > { %v716_v56 = vor.u32 1.1754944e-38, %v715_v27  ;;  %vm714_vm7 = vcmp.eq.f32.partialorder %v713_v52, 8.507059e+37 }
 0x104   : > { %v735_v58 = vor.u32 1.1754944e-38, %v734_v48  ;;  %vm733_vm8 = vcmp.eq.f32.partialorder %v732_v53, 8.507059e+37 }
 0x106   : > { %v4115_v40 = vpop.eup %4114 }
 0x107   : > { %v4117_v41 = vpop.eup %4116  ;;  %v742_v42 = vadd.f32 1.0, %v4115_v40 }
 0x108   : > { %v4119_v43 = vpop.eup %4118  ;;  %v705_v44 = vmul.f32 %v4117_v41, %v703_v32  ;;  %vm710_vm1 = vweird.f32 %v4117_v41  ;;  %v1260_v32 = vperm.slane %v4544_v5, 0 }
 0x109   : > { %v724_v45 = vmul.f32 %v4119_v43, %v722_v34  ;;  %4120 = vrcp.f32 %v742_v42  ;;  %vm729_vm2 = vweird.f32 %v4119_v43  ;;  %vm711_vm5 = vmor %vm709_vm3, %vm710_vm1  ;;  %v754_v15 = vand.u32 2147483648, %v742_v42 }
 0x10a   : > { %v706_v46 = vsub.f32 1.0, %v705_v44  ;;  %4122 = vtanh.f32 %v698_v24  ;;  %vm730_vm6 = vmor %vm728_vm4, %vm729_vm2  ;;  %vm748_vm10 = vweird.f32 %v742_v42  ;;  %v752_v16 = vand.u32 2147483647, %v742_v42 }
 0x10b   : > { %v725_v47 = vsub.f32 1.0, %v724_v45  ;;  %v755_v18 = vor.u32 1.1754944e-38, %v754_v15  ;;  %v1263_v24 = vperm.slane %v4544_v5, 3 }
 0x10c   : > { %v707_v50 = vmul.f32 %v4117_v41, %v706_v46  ;;  %vm753_vm12 = vcmp.eq.f32.partialorder %v752_v16, 8.507059e+37 }
 0x10d   : > { %v726_v51 = vmul.f32 %v4119_v43, %v725_v47 }
 0x10e   : > { %v708_v54 = vadd.f32 %v4117_v41, %v707_v50 }
 0x10f   : > { %v4121_v55 = vpop.eup %4120  ;;  %v727_v57 = vadd.f32 %v4119_v43, %v726_v51 }
 0x110   : > { %v712_v60 = vsel %vm711_vm5, %v4117_v41, %v708_v54  ;;  %v744_v61 = vmul.f32 %v4121_v55, %v742_v42  ;;  %v4123_v62 = vpop.eup %4122  ;;  %vm749_vm9 = vweird.f32 %v4121_v55 }
 0x111   : > { %v717_v63 = vsel %vm714_vm7, %v716_v56, %v712_v60  ;;  %v731_v0 = vsel %vm730_vm6, %v4119_v43, %v727_v57  ;;  %vm750_vm11 = vmor %vm748_vm10, %vm749_vm9  ;;  %v1262_v56 = vperm.slane %v4544_v5, 2 }
 0x112   : > { %v736_v1 = vsel %vm733_vm8, %v735_v58, %v731_v0  ;;  %v759_v9 = vmul.f32 %v4123_v62, %v717_v63  ;;  %v745_v10 = vsub.f32 1.0, %v744_v61 }
 0x113   : > { %v758_v11 = vmul.f32 %v736_v1, %v197_v59 }
 0x114   : > { %v746_v12 = vmul.f32 %v4121_v55, %v745_v10 }
 0x115   : > { %v760_v13 = vadd.f32 %v759_v9, %v758_v11 }
 0x116   : > { %v747_v14 = vadd.f32 %v4121_v55, %v746_v12 }
 0x117   : > { %4124 = vtanh.f32 %v760_v13  ;;  %764 = vst [vmem:[#allocation3 + $0x8] sm:$0xff] %v760_v13 }
 0x118   : > { %v751_v17 = vsel %vm750_vm11, %v4121_v55, %v747_v14 }
 0x119   : > { %v756_v20 = vsel %vm753_vm12, %v755_v18, %v751_v17 }
 0x11d   : > { %v4125_v19 = vpop.eup %4124 }
 0x11e   : > { %v762_v21 = vmul.f32 %v4125_v19, %v756_v20 }
 0x120   : > { %763 = vst [vmem:[#allocation2] sm:$0xff] %v762_v21  ;;  %v765_v22 = vpack.c.bf16 %v762_v21, %v762_v21  ;;  %v769_v21 = vld [vmem:[#allocation3] sm:$0xff] }
 0x122   : > { %1215 = vmatmul.bf16.vlgmr.msrb.gmra.mxu0 %v765_v22  ;;  %1228 = vmatmul.bf16.vlgmr.msrb.gmra.mxu1 %v765_v22 }
 0x123   : > { %1241 = vmatmul.bf16.vlgmr.msrb.gmra.mxu2 %v765_v22  ;;  %1254 = vmatmul.bf16.vlgmr.msrb.gmra.mxu3 %v765_v22 }
 0x159   : > { %v1004_v23 = vpop.f32.mrf.mxu0  ;;  %v1017_v49 = vpop.f32.mrf.mxu1 }
 0x160   : > { %v1043_v26 = vpop.f32.mrf.mxu3  ;;  %v1030_v29 = vpop.f32.mrf.mxu2 }
 0x161   : > { %v1006_v25 = vpop.f32.mrf.mxu0  ;;  %v1019_v28 = vpop.f32.mrf.mxu1 }
 0x168   : > { %v1045_v30 = vpop.f32.mrf.mxu3  ;;  %v1032_v31 = vpop.f32.mrf.mxu2 }
 0x19f   : > { %v1216_v34 = vpop.f32.mrf.mxu0  ;;  %v1229_v35 = vpop.f32.mrf.mxu1 }
 0x1a0   : > { %v1217_v36 = vadd.f32 %v1216_v34, %v1004_v23  ;;  %v1230_v37 = vadd.f32 %v1229_v35, %v1017_v49 }
 0x1a2   : > { %v1268_v38 = vadd.f32 %v1260_v32, %v1217_v36  ;;  %v1269_v39 = vadd.f32 %v1261_v33, %v1230_v37 }
 0x1a4   : > { %v3219_v40 = vmul.f32 -1.442695, %v1268_v38  ;;  %v3220_v41 = vmul.f32 -1.442695, %v1269_v39 }
 0x1a6   : > { %4126 = vpow2.f32 %v3219_v40  ;;  %v1242_v42 = vpop.f32.mrf.mxu2  ;;  %v1255_v43 = vpop.f32.mrf.mxu3 }
 0x1a7   : > { %4128 = vpow2.f32 %v3220_v41  ;;  %v1256_v44 = vadd.f32 %v1255_v43, %v1043_v26  ;;  %v1218_v45 = vpop.f32.mrf.mxu0  ;;  %v1231_v46 = vpop.f32.mrf.mxu1  ;;  %v1243_v55 = vadd.f32 %v1242_v42, %v1030_v29  ;;  %v1337_v41 = vld [vmem:[%s4915_s9] sm:$0xf] (%p189_p0) }
 0x1a8   :  { %1338 = vst [vmem:[#allocation4] sm:$0xf] (%p189_p0), %v1337_v41 }
 0x1a9   : > { %v1271_v47 = vadd.f32 %v1263_v24, %v1256_v44  ;;  %v1270_v60 = vadd.f32 %v1262_v56, %v1243_v55 }
 0x1ab   : > { %v3221_v27 = vmul.f32 -1.442695, %v1271_v47 }
 0x1ac   : > { %v4127_v48 = vpop.eup %4126 }
 0x1ad   : > { %v4129_v50 = vpop.eup %4128  ;;  %v1275_v52 = vadd.f32 1.0, %v4127_v48  ;;  %4130 = vpow2.f32 %v3221_v27 }
 0x1ae   : > { %v1294_v51 = vadd.f32 1.0, %v4129_v50  ;;  %v1244_v53 = vpop.f32.mrf.mxu2  ;;  %v1257_v54 = vpop.f32.mrf.mxu3 }
 0x1af   : > { %4132 = vrcp.f32 %v1275_v52  ;;  %v1287_v9 = vand.u32 2147483648, %v1275_v52  ;;  %v1285_v12 = vand.u32 2147483647, %v1275_v52  ;;  %vm1281_vm15 = vweird.f32 %v1275_v52 }
 0x1b0   : > { %4134 = vrcp.f32 %v1294_v51  ;;  %v1306_v10 = vand.u32 2147483648, %v1294_v51  ;;  %v1304_v14 = vand.u32 2147483647, %v1294_v51  ;;  %vm1300_vm1 = vweird.f32 %v1294_v51 }
 0x1b1   : > { %v1288_v17 = vor.u32 1.1754944e-38, %v1287_v9  ;;  %vm1286_vm4 = vcmp.eq.f32.partialorder %v1285_v12, 8.507059e+37 }
 0x1b2   : > { %v1307_v20 = vor.u32 1.1754944e-38, %v1306_v10  ;;  %vm1305_vm5 = vcmp.eq.f32.partialorder %v1304_v14, 8.507059e+37 }
 0x1b3   : > { %v4131_v57 = vpop.eup %4130 }
 0x1b4   : > { %v1314_v58 = vadd.f32 1.0, %v4131_v57 }
 0x1b5   : > { %v4133_v59 = vpop.eup %4132 }
 0x1b6   : > { %v4135_v61 = vpop.eup %4134  ;;  %v1277_v62 = vmul.f32 %v4133_v59, %v1275_v52  ;;  %4136 = vrcp.f32 %v1314_v58  ;;  %vm1282_vm13 = vweird.f32 %v4133_v59  ;;  %v1326_v34 = vand.u32 2147483648, %v1314_v58 }
 0x1b7   : > { %v1296_v63 = vmul.f32 %v4135_v61, %v1294_v51  ;;  %4138 = vtanh.f32 %v1270_v60  ;;  %vm1301_vm14 = vweird.f32 %v4135_v61  ;;  %vm1283_vm2 = vmor %vm1281_vm15, %vm1282_vm13  ;;  %vm1320_vm7 = vweird.f32 %v1314_v58 }
 0x1b8   : > { %v1278_v0 = vsub.f32 1.0, %v1277_v62  ;;  %vm1302_vm3 = vmor %vm1300_vm1, %vm1301_vm14  ;;  %v1324_v35 = vand.u32 2147483647, %v1314_v58  ;;  %v1327_v37 = vor.u32 1.1754944e-38, %v1326_v34 }
 0x1b9   : > { %v1297_v1 = vsub.f32 1.0, %v1296_v63 }
 0x1ba   : > { %v1279_v11 = vmul.f32 %v4133_v59, %v1278_v0  ;;  %vm1325_vm9 = vcmp.eq.f32.partialorder %v1324_v35, 8.507059e+37 }
 0x1bb   : > { %v1298_v13 = vmul.f32 %v4135_v61, %v1297_v1 }
 0x1bc   : > { %v4137_v15 = vpop.eup %4136  ;;  %v1280_v16 = vadd.f32 %v4133_v59, %v1279_v11 }
 0x1bd   : > { %v1299_v18 = vadd.f32 %v4135_v61, %v1298_v13  ;;  %v1316_v19 = vmul.f32 %v4137_v15, %v1314_v58  ;;  %v4139_v23 = vpop.eup %4138  ;;  %vm1321_vm6 = vweird.f32 %v4137_v15 }
 0x1be   : > { %v1284_v22 = vsel %vm1283_vm2, %v4133_v59, %v1280_v16  ;;  %vm1322_vm8 = vmor %vm1320_vm7, %vm1321_vm6 }
 0x1bf   : > { %v1289_v49 = vsel %vm1286_vm4, %v1288_v17, %v1284_v22  ;;  %v1303_v25 = vsel %vm1302_vm3, %v4135_v61, %v1299_v18  ;;  %v1317_v26 = vsub.f32 1.0, %v1316_v19 }
 0x1c0   : > { %v1308_v28 = vsel %vm1305_vm5, %v1307_v20, %v1303_v25  ;;  %v1331_v29 = vmul.f32 %v4139_v23, %v1289_v49 }
 0x1c1   : > { %v1330_v30 = vmul.f32 %v1308_v28, %v769_v21  ;;  %v1318_v31 = vmul.f32 %v4137_v15, %v1317_v26 }
 0x1c3   : > { %v1332_v32 = vadd.f32 %v1331_v29, %v1330_v30  ;;  %v1319_v33 = vadd.f32 %v4137_v15, %v1318_v31 }
 0x1c5   : > { %4140 = vtanh.f32 %v1332_v32  ;;  %1336 = vst [vmem:[#allocation3] sm:$0xff] %v1332_v32  ;;  %v1323_v36 = vsel %vm1322_vm8, %v4137_v15, %v1319_v33 }
 0x1c6   : > { %v1328_v39 = vsel %vm1325_vm9, %v1327_v37, %v1323_v36 }
 0x1ca   :  { %191 = sbr.rel (!%p189_p0) target bundleno = 50 (0x32), region = 145 }
 0x1cb   : > { %v4141_v38 = vpop.eup %4140 }
 0x1cc   : > { %v1334_v40 = vmul.f32 %v4141_v38, %v1328_v39 }
 0x1ce   : > { %1335 = vst [vmem:[#allocation2 + $0x8] sm:$0xff] %v1334_v40 }
 0x1cf LB: > { %v3336_v24 = vld [vmem:[#allocation14 + $0xe0] sm:$0xf]  ;;  %v4000_v42 = vld [vmem:[#allocation14 + $0xec] sm:$0xf0]  ;;  %v3998_v43 = vld [vmem:[#allocation14 + $0xe4] sm:$0xf]  ;;  %s4378_s12 = sphi %s4788_s12, %s4918_s12  }
 0x1d0   : > { %v3337_v44 = vor.u32 %v4000_v42, %v3336_v24  ;;  %v3338_v45 = vld [vmem:[#allocation14 + $0xf0] sm:$0xf0]  ;;  %v3344_v46 = vld [vmem:[#allocation14 + $0xe8] sm:$0xf]  ;;  %v4001_v47 = vld [vmem:[#allocation14 + $0xf4] sm:$0xf0] }
 0x1d1   : > { %v3341_v27 = vor.u32 %v3998_v43, %v3338_v45  ;;  %v3345_v4 = vor.u32 %v4001_v47, %v3344_v46  ;;  %v3999_v5 = vld [vmem:[#allocation14 + $0xec] sm:$0xf]  ;;  %v3346_v48 = vld [vmem:[#allocation14 + $0xf8] sm:$0xf0]  ;;  %v3320_v50 = vld [vmem:[#allocation14 + $0xc0] sm:$0xf] }
 0x1d2   : > { %1573 = vmatpush.bf16.msra.mxu0 %v3337_v44  ;;  %v3349_v52 = vor.u32 %v3999_v5, %v3346_v48  ;;  %v3996_v51 = vld [vmem:[#allocation14 + $0xcc] sm:$0xf0]  ;;  %v3994_v53 = vld [vmem:[#allocation14 + $0xc4] sm:$0xf]  ;;  %v3322_v54 = vld [vmem:[#allocation14 + $0xd0] sm:$0xf0] }
 0x1d3   : > { %1586 = vmatpush.bf16.msra.mxu1 %v3341_v27  ;;  %1599 = vmatpush.bf16.msra.mxu2 %v3345_v4  ;;  %v3321_v55 = vor.u32 %v3996_v51, %v3320_v50  ;;  %v3325_v56 = vor.u32 %v3994_v53, %v3322_v54  ;;  %v3328_v57 = vld [vmem:[#allocation14 + $0xc8] sm:$0xf]  ;;  %v3997_v58 = vld [vmem:[#allocation14 + $0xd4] sm:$0xf0]  ;;  %v3995_v59 = vld [vmem:[#allocation14 + $0xcc] sm:$0xf] }
 0x1d4   : > { %1612 = vmatpush.bf16.msra.mxu3 %v3349_v52  ;;  %v3329_v60 = vor.u32 %v3997_v58, %v3328_v57  ;;  %v3330_v61 = vld [vmem:[#allocation14 + $0xd8] sm:$0xf0]  ;;  %v3304_v62 = vld [vmem:[#allocation14 + $0xa0] sm:$0xf]  ;;  %v3992_v63 = vld [vmem:[#allocation14 + $0xac] sm:$0xf0] }
 0x1d5   : > { %v3333_v0 = vor.u32 %v3995_v59, %v3330_v61  ;;  %v3990_v1 = vld [vmem:[#allocation14 + $0xa4] sm:$0xf]  ;;  %v3306_v9 = vld [vmem:[#allocation14 + $0xb0] sm:$0xf0]  ;;  %v3312_v10 = vld [vmem:[#allocation14 + $0xa8] sm:$0xf]  ;;  %v3305_v11 = vor.u32 %v3992_v63, %v3304_v62 }
 0x1d6   : > { %1574 = vmatpush.bf16.msra.mxu0 %v3321_v55  ;;  %v3993_v12 = vld [vmem:[#allocation14 + $0xb4] sm:$0xf0]  ;;  %v3991_v13 = vld [vmem:[#allocation14 + $0xac] sm:$0xf]  ;;  %v3314_v14 = vld [vmem:[#allocation14 + $0xb8] sm:$0xf0]  ;;  %v3309_v15 = vor.u32 %v3990_v1, %v3306_v9 }
 0x1d7   : > { %1587 = vmatpush.bf16.msra.mxu1 %v3325_v56  ;;  %1600 = vmatpush.bf16.msra.mxu2 %v3329_v60  ;;  %v3313_v16 = vor.u32 %v3993_v12, %v3312_v10  ;;  %v3288_v17 = vld [vmem:[#allocation14 + $0x80] sm:$0xf]  ;;  %v3988_v18 = vld [vmem:[#allocation14 + $0x8c] sm:$0xf0]  ;;  %v3986_v19 = vld [vmem:[#allocation14 + $0x84] sm:$0xf]  ;;  %v3317_v20 = vor.u32 %v3991_v13, %v3314_v14 }
 0x1d8   : > { %1613 = vmatpush.bf16.msra.mxu3 %v3333_v0  ;;  %v3290_v21 = vld [vmem:[#allocation14 + $0x90] sm:$0xf0]  ;;  %v3296_v22 = vld [vmem:[#allocation14 + $0x88] sm:$0xf]  ;;  %v3989_v23 = vld [vmem:[#allocation14 + $0x94] sm:$0xf0]  ;;  %v3289_v26 = vor.u32 %v3988_v18, %v3288_v17 }
 0x1d9   : > { %v3987_v49 = vld [vmem:[#allocation14 + $0x8c] sm:$0xf]  ;;  %v3298_v25 = vld [vmem:[#allocation14 + $0x98] sm:$0xf0]  ;;  %v3293_v28 = vor.u32 %v3986_v19, %v3290_v21  ;;  %v3297_v29 = vor.u32 %v3989_v23, %v3296_v22  ;;  %v3272_v30 = vld [vmem:[#allocation14 + $0x60] sm:$0xf] }
 0x1da   : > { %1575 = vmatpush.bf16.msra.mxu0 %v3305_v11  ;;  %v3984_v31 = vld [vmem:[#allocation14 + $0x6c] sm:$0xf0]  ;;  %v3982_v32 = vld [vmem:[#allocation14 + $0x64] sm:$0xf]  ;;  %v3301_v33 = vor.u32 %v3987_v49, %v3298_v25  ;;  %v3274_v34 = vld [vmem:[#allocation14 + $0x70] sm:$0xf0] }
 0x1db   : > { %1588 = vmatpush.bf16.msra.mxu1 %v3309_v15  ;;  %1601 = vmatpush.bf16.msra.mxu2 %v3313_v16  ;;  %v3280_v35 = vld [vmem:[#allocation14 + $0x68] sm:$0xf]  ;;  %v3985_v36 = vld [vmem:[#allocation14 + $0x74] sm:$0xf0]  ;;  %v3983_v37 = vld [vmem:[#allocation14 + $0x6c] sm:$0xf]  ;;  %v3273_v39 = vor.u32 %v3984_v31, %v3272_v30  ;;  %v3277_v40 = vor.u32 %v3982_v32, %v3274_v34 }
 0x1dc   : > { %1614 = vmatpush.bf16.msra.mxu3 %v3317_v20  ;;  %v3282_v38 = vld [vmem:[#allocation14 + $0x78] sm:$0xf0]  ;;  %v3281_v41 = vor.u32 %v3985_v36, %v3280_v35  ;;  %v3256_v24 = vld [vmem:[#allocation14 + $0x40] sm:$0xf]  ;;  %v3980_v42 = vld [vmem:[#allocation14 + $0x4c] sm:$0xf0] }
 0x1dd   : > { %v3978_v43 = vld [vmem:[#allocation14 + $0x44] sm:$0xf]  ;;  %v3285_v44 = vor.u32 %v3983_v37, %v3282_v38  ;;  %v3258_v45 = vld [vmem:[#allocation14 + $0x50] sm:$0xf0]  ;;  %v3264_v46 = vld [vmem:[#allocation14 + $0x48] sm:$0xf]  ;;  %v3257_v5 = vor.u32 %v3980_v42, %v3256_v24 }
 0x1de   : > { %1576 = vmatpush.bf16.msra.mxu0 %v3289_v26  ;;  %v3981_v47 = vld [vmem:[#allocation14 + $0x54] sm:$0xf0]  ;;  %v3979_v27 = vld [vmem:[#allocation14 + $0x4c] sm:$0xf]  ;;  %v3266_v4 = vld [vmem:[#allocation14 + $0x58] sm:$0xf0]  ;;  %v3261_v48 = vor.u32 %v3978_v43, %v3258_v45 }
 0x1df   : > { %1589 = vmatpush.bf16.msra.mxu1 %v3293_v28  ;;  %1602 = vmatpush.bf16.msra.mxu2 %v3297_v29  ;;  %v3265_v50 = vor.u32 %v3981_v47, %v3264_v46  ;;  %v3240_v52 = vld [vmem:[#allocation14 + $0x20] sm:$0xf]  ;;  %v3976_v51 = vld [vmem:[#allocation14 + $0x2c] sm:$0xf0]  ;;  %v3974_v53 = vld [vmem:[#allocation14 + $0x24] sm:$0xf]  ;;  %v3269_v54 = vor.u32 %v3979_v27, %v3266_v4 }
 0x1e0   : > { %1615 = vmatpush.bf16.msra.mxu3 %v3301_v33  ;;  %v3242_v55 = vld [vmem:[#allocation14 + $0x30] sm:$0xf0]  ;;  %v3248_v56 = vld [vmem:[#allocation14 + $0x28] sm:$0xf]  ;;  %v3977_v57 = vld [vmem:[#allocation14 + $0x34] sm:$0xf0]  ;;  %v3241_v60 = vor.u32 %v3976_v51, %v3240_v52 }
 0x1e1   : > { %v3975_v58 = vld [vmem:[#allocation14 + $0x2c] sm:$0xf]  ;;  %v3250_v59 = vld [vmem:[#allocation14 + $0x38] sm:$0xf0]  ;;  %v3224_v61 = vld [vmem:[#allocation14] sm:$0xf]  ;;  %v3245_v63 = vor.u32 %v3974_v53, %v3242_v55  ;;  %v3249_v0 = vor.u32 %v3977_v57, %v3248_v56 }
 0x1e2   : > { %1577 = vmatpush.bf16.msra.mxu0 %v3273_v39  ;;  %v3972_v62 = vld [vmem:[#allocation14 + $0xc] sm:$0xf0]  ;;  %v3970_v1 = vld [vmem:[#allocation14 + $0x4] sm:$0xf]  ;;  %v3226_v9 = vld [vmem:[#allocation14 + $0x10] sm:$0xf0]  ;;  %v3253_v11 = vor.u32 %v3975_v58, %v3250_v59 }
 0x1e3   : > { %1590 = vmatpush.bf16.msra.mxu1 %v3277_v40  ;;  %1603 = vmatpush.bf16.msra.mxu2 %v3281_v41  ;;  %v3232_v10 = vld [vmem:[#allocation14 + $0x8] sm:$0xf]  ;;  %v3973_v12 = vld [vmem:[#allocation14 + $0x14] sm:$0xf0]  ;;  %v3971_v13 = vld [vmem:[#allocation14 + $0xc] sm:$0xf]  ;;  %v3225_v18 = vor.u32 %v3972_v62, %v3224_v61  ;;  %v3229_v22 = vor.u32 %v3970_v1, %v3226_v9 }
 0x1e4   : > { %1616 = vmatpush.bf16.msra.mxu3 %v3285_v44  ;;  %v3234_v14 = vld [vmem:[#allocation14 + $0x18] sm:$0xf0]  ;;  %v3464_v15 = vld [vmem:[#allocation12 + $0xe0] sm:$0xf]  ;;  %v3968_v16 = vld [vmem:[#allocation12 + $0xec] sm:$0xf0]  ;;  %v3233_v23 = vor.u32 %v3973_v12, %v3232_v10 }
 0x1e5   : > { %v3966_v17 = vld [vmem:[#allocation12 + $0xe4] sm:$0xf]  ;;  %v3466_v19 = vld [vmem:[#allocation12 + $0xf0] sm:$0xf0]  ;;  %v3472_v20 = vld [vmem:[#allocation12 + $0xe8] sm:$0xf]  ;;  %v3237_v28 = vor.u32 %v3971_v13, %v3234_v14  ;;  %v3465_v29 = vor.u32 %v3968_v16, %v3464_v15 }
 0x1e6   : > { %1578 = vmatpush.bf16.msra.mxu0 %v3257_v5  ;;  %v3969_v21 = vld [vmem:[#allocation12 + $0xf4] sm:$0xf0]  ;;  %v3967_v49 = vld [vmem:[#allocation12 + $0xec] sm:$0xf]  ;;  %v3474_v25 = vld [vmem:[#allocation12 + $0xf8] sm:$0xf0]  ;;  %v3469_v30 = vor.u32 %v3966_v17, %v3466_v19 }
 0x1e7   : > { %1591 = vmatpush.bf16.msra.mxu1 %v3261_v48  ;;  %1604 = vmatpush.bf16.msra.mxu2 %v3265_v50  ;;  %v1346_v26 = vld [vmem:[#allocation2] sm:$0xff]  ;;  %v3473_v31 = vor.u32 %v3969_v21, %v3472_v20  ;;  %v3964_v33 = vld [vmem:[#allocation12 + $0xcc] sm:$0xf0]  ;;  %v3962_v34 = vld [vmem:[#allocation12 + $0xc4] sm:$0xf]  ;;  %v3477_v35 = vor.u32 %v3967_v49, %v3474_v25  ;;  %s4838_s29 = sadd.s32 1, %s4378_s12  }
 0x1e8   : > { %1617 = vmatpush.bf16.msra.mxu3 %v3269_v54  ;;  %v3448_v32 = vld [vmem:[#allocation12 + $0xc0] sm:$0xf]  ;;  %v3450_v36 = vld [vmem:[#allocation12 + $0xd0] sm:$0xf0]  ;;  %v3456_v37 = vld [vmem:[#allocation12 + $0xc8] sm:$0xf]  ;;  %v1380_v39 = vpack.c.bf16 %v1346_v26, %v1346_v26 }
 0x1e9   : > { %v3965_v38 = vld [vmem:[#allocation12 + $0xd4] sm:$0xf0]  ;;  %v3963_v40 = vld [vmem:[#allocation12 + $0xcc] sm:$0xf]  ;;  %v3458_v41 = vld [vmem:[#allocation12 + $0xd8] sm:$0xf0]  ;;  %v3449_v24 = vor.u32 %v3964_v33, %v3448_v32  ;;  %v3453_v42 = vor.u32 %v3962_v34, %v3450_v36 }
 0x1ea   : > { %1579 = vmatpush.bf16.msra.mxu0 %v3241_v60  ;;  %v3457_v43 = vor.u32 %v3965_v38, %v3456_v37  ;;  %v3432_v44 = vld [vmem:[#allocation12 + $0xa0] sm:$0xf]  ;;  %v3960_v45 = vld [vmem:[#allocation12 + $0xac] sm:$0xf0]  ;;  %v3958_v46 = vld [vmem:[#allocation12 + $0xa4] sm:$0xf]  ;;  %v3461_v47 = vor.u32 %v3963_v40, %v3458_v41 }
 0x1eb   : > { %1592 = vmatpush.bf16.msra.mxu1 %v3245_v63  ;;  %1605 = vmatpush.bf16.msra.mxu2 %v3249_v0  ;;  %v3434_v27 = vld [vmem:[#allocation12 + $0xb0] sm:$0xf0]  ;;  %v3440_v4 = vld [vmem:[#allocation12 + $0xa8] sm:$0xf]  ;;  %v3961_v5 = vld [vmem:[#allocation12 + $0xb4] sm:$0xf0]  ;;  %v3433_v52 = vor.u32 %v3960_v45, %v3432_v44 }
 0x1ec   : > { %1618 = vmatpush.bf16.msra.mxu3 %v3253_v11  ;;  %v3959_v48 = vld [vmem:[#allocation12 + $0xac] sm:$0xf]  ;;  %v3442_v50 = vld [vmem:[#allocation12 + $0xb8] sm:$0xf0]  ;;  %v3437_v51 = vor.u32 %v3958_v46, %v3434_v27  ;;  %v3441_v53 = vor.u32 %v3961_v5, %v3440_v4  ;;  %v3416_v54 = vld [vmem:[#allocation12 + $0x80] sm:$0xf] }
 0x1ed   : > { %v3956_v55 = vld [vmem:[#allocation12 + $0x8c] sm:$0xf0]  ;;  %v3954_v56 = vld [vmem:[#allocation12 + $0x84] sm:$0xf]  ;;  %v3445_v57 = vor.u32 %v3959_v48, %v3442_v50  ;;  %v3418_v58 = vld [vmem:[#allocation12 + $0x90] sm:$0xf0] }
 0x1ee   : > { %1580 = vmatpush.bf16.msra.mxu0 %v3225_v18  ;;  %v3424_v59 = vld [vmem:[#allocation12 + $0x88] sm:$0xf]  ;;  %v3957_v60 = vld [vmem:[#allocation12 + $0x94] sm:$0xf0]  ;;  %v3955_v61 = vld [vmem:[#allocation12 + $0x8c] sm:$0xf]  ;;  %v3417_v63 = vor.u32 %v3956_v55, %v3416_v54  ;;  %v3421_v0 = vor.u32 %v3954_v56, %v3418_v58 }
 0x1ef   : > { %1593 = vmatpush.bf16.msra.mxu1 %v3229_v22  ;;  %1606 = vmatpush.bf16.msra.mxu2 %v3233_v23  ;;  %v3426_v62 = vld [vmem:[#allocation12 + $0x98] sm:$0xf0]  ;;  %v3425_v1 = vor.u32 %v3957_v60, %v3424_v59  ;;  %v3400_v9 = vld [vmem:[#allocation12 + $0x60] sm:$0xf]  ;;  %v3952_v10 = vld [vmem:[#allocation12 + $0x6c] sm:$0xf0] }
 0x1f0   : > { %1619 = vmatpush.bf16.msra.mxu3 %v3237_v28  ;;  %v3950_v11 = vld [vmem:[#allocation12 + $0x64] sm:$0xf]  ;;  %v3429_v12 = vor.u32 %v3955_v61, %v3426_v62  ;;  %v3402_v13 = vld [vmem:[#allocation12 + $0x70] sm:$0xf0]  ;;  %v3408_v14 = vld [vmem:[#allocation12 + $0x68] sm:$0xf]  ;;  %v3401_v18 = vor.u32 %v3952_v10, %v3400_v9 }
 0x1f1   : > { %1581 = vmatmul.bf16.vlgmr.msra.gmra.mxu0 %v1380_v39  ;;  %v3953_v15 = vld [vmem:[#allocation12 + $0x74] sm:$0xf0]  ;;  %v3951_v16 = vld [vmem:[#allocation12 + $0x6c] sm:$0xf]  ;;  %v3410_v17 = vld [vmem:[#allocation12 + $0x78] sm:$0xf0]  ;;  %v3405_v19 = vor.u32 %v3950_v11, %v3402_v13 }
 0x1f2   : > { %1785 = vmatpush.bf16.msrb.mxu0 %v3465_v29  ;;  %1594 = vmatmul.bf16.vlgmr.msra.gmra.mxu1 %v1380_v39  ;;  %v3409_v20 = vor.u32 %v3953_v15, %v3408_v14  ;;  %v3384_v21 = vld [vmem:[#allocation12 + $0x40] sm:$0xf]  ;;  %v3948_v22 = vld [vmem:[#allocation12 + $0x4c] sm:$0xf0]  ;;  %v3946_v23 = vld [vmem:[#allocation12 + $0x44] sm:$0xf]  ;;  %v3413_v49 = vor.u32 %v3951_v16, %v3410_v17 }
 0x1f3   : > { %1798 = vmatpush.bf16.msrb.mxu1 %v3469_v30  ;;  %1811 = vmatpush.bf16.msrb.mxu2 %v3473_v31  ;;  %v3386_v25 = vld [vmem:[#allocation12 + $0x50] sm:$0xf0]  ;;  %v3392_v26 = vld [vmem:[#allocation12 + $0x48] sm:$0xf]  ;;  %v3949_v28 = vld [vmem:[#allocation12 + $0x54] sm:$0xf0]  ;;  %v3385_v31 = vor.u32 %v3948_v22, %v3384_v21 }
 0x1f4   : > { %1824 = vmatpush.bf16.msrb.mxu3 %v3477_v35  ;;  %1607 = vmatmul.bf16.vlgmr.msra.gmra.mxu2 %v1380_v39  ;;  %v3947_v29 = vld [vmem:[#allocation12 + $0x4c] sm:$0xf]  ;;  %v3394_v30 = vld [vmem:[#allocation12 + $0x58] sm:$0xf0]  ;;  %v3389_v32 = vor.u32 %v3946_v23, %v3386_v25  ;;  %v3393_v33 = vor.u32 %v3949_v28, %v3392_v26  ;;  %v3368_v34 = vld [vmem:[#allocation12 + $0x20] sm:$0xf] }
 0x1f5   : > { %1620 = vmatmul.bf16.vlgmr.msra.gmra.mxu3 %v1380_v39  ;;  %v3944_v35 = vld [vmem:[#allocation12 + $0x2c] sm:$0xf0]  ;;  %v3942_v36 = vld [vmem:[#allocation12 + $0x24] sm:$0xf]  ;;  %v3397_v37 = vor.u32 %v3947_v29, %v3394_v30  ;;  %v3370_v38 = vld [vmem:[#allocation12 + $0x30] sm:$0xf0] }
 0x1f6   : > { %1786 = vmatpush.bf16.msrb.mxu0 %v3449_v24  ;;  %v3376_v39 = vld [vmem:[#allocation12 + $0x28] sm:$0xf]  ;;  %v3945_v40 = vld [vmem:[#allocation12 + $0x34] sm:$0xf0]  ;;  %v3943_v41 = vld [vmem:[#allocation12 + $0x2c] sm:$0xf] }
 0x1f7   : > { %1799 = vmatpush.bf16.msrb.mxu1 %v3453_v42  ;;  %1812 = vmatpush.bf16.msrb.mxu2 %v3457_v43  ;;  %v3378_v24 = vld [vmem:[#allocation12 + $0x38] sm:$0xf0]  ;;  %v3369_v42 = vor.u32 %v3944_v35, %v3368_v34  ;;  %v3373_v43 = vor.u32 %v3942_v36, %v3370_v38  ;;  %v3377_v44 = vor.u32 %v3945_v40, %v3376_v39  ;;  %v3352_v45 = vld [vmem:[#allocation12] sm:$0xf]  ;;  %v3940_v46 = vld [vmem:[#allocation12 + $0xc] sm:$0xf0] }
 0x1f8   : > { %1825 = vmatpush.bf16.msrb.mxu3 %v3461_v47  ;;  %v3938_v47 = vld [vmem:[#allocation12 + $0x4] sm:$0xf]  ;;  %v3381_v27 = vor.u32 %v3943_v41, %v3378_v24  ;;  %v3354_v4 = vld [vmem:[#allocation12 + $0x10] sm:$0xf0]  ;;  %v3360_v5 = vld [vmem:[#allocation12 + $0x8] sm:$0xf] }
 0x1f9   : > { %v3941_v48 = vld [vmem:[#allocation12 + $0x14] sm:$0xf0]  ;;  %v3939_v50 = vld [vmem:[#allocation12 + $0xc] sm:$0xf]  ;;  %v1345_v56 = vld [vmem:[#allocation4] sm:$0xf] }
 0x1fa   : > { %1787 = vmatpush.bf16.msrb.mxu0 %v3433_v52  ;;  %v3362_v52 = vld [vmem:[#allocation12 + $0x18] sm:$0xf0]  ;;  %v3361_v54 = vor.u32 %v3941_v48, %v3360_v5  ;;  %v4064_v58 = vld [vmem:[#allocation17 + $0xec] sm:$0xf0]  ;;  %v4062_v59 = vld [vmem:[#allocation17 + $0xe4] sm:$0xf] }
 0x1fb   : > { %1800 = vmatpush.bf16.msrb.mxu1 %v3437_v51  ;;  %1813 = vmatpush.bf16.msrb.mxu2 %v3441_v53  ;;  %v3353_v51 = vor.u32 %v3940_v46, %v3352_v45  ;;  %v3357_v53 = vor.u32 %v3938_v47, %v3354_v4  ;;  %v3365_v55 = vor.u32 %v3939_v50, %v3362_v52  ;;  %v3597_v61 = vld [vmem:[#allocation17 + $0xf0] sm:$0xf0]  ;;  %v3603_v62 = vld [vmem:[#allocation17 + $0xe8] sm:$0xf]  ;;  %v4063_v9 = vld [vmem:[#allocation17 + $0xec] sm:$0xf] }
 0x1fc   : > { %1826 = vmatpush.bf16.msrb.mxu3 %v3445_v57  ;;  %v3595_v57 = vld [vmem:[#allocation17 + $0xe0] sm:$0xf]  ;;  %v3605_v10 = vld [vmem:[#allocation17 + $0xf8] sm:$0xf0]  ;;  %v4060_v13 = vld [vmem:[#allocation17 + $0xcc] sm:$0xf0] }
 0x1fd   : > { %v3596_v60 = vor.u32 %v4064_v58, %v3595_v57  ;;  %v3579_v11 = vld [vmem:[#allocation17 + $0xc0] sm:$0xf]  ;;  %v4058_v14 = vld [vmem:[#allocation17 + $0xc4] sm:$0xf]  ;;  %v3581_v15 = vld [vmem:[#allocation17 + $0xd0] sm:$0xf0] }
 0x1fe   : > { %1788 = vmatpush.bf16.msrb.mxu0 %v3417_v63  ;;  %v4065_v63 = vld [vmem:[#allocation17 + $0xf4] sm:$0xf0]  ;;  %v3580_v16 = vor.u32 %v4060_v13, %v3579_v11  ;;  %v3584_v17 = vor.u32 %v4058_v14, %v3581_v15  ;;  %v3589_v22 = vld [vmem:[#allocation17 + $0xd8] sm:$0xf0]  ;;  %v4056_v25 = vld [vmem:[#allocation17 + $0xac] sm:$0xf0] }
 0x1ff   : > { %1801 = vmatpush.bf16.msrb.mxu1 %v3421_v0  ;;  %1814 = vmatpush.bf16.msrb.mxu2 %v3425_v1  ;;  %v3600_v0 = vor.u32 %v4062_v59, %v3597_v61  ;;  %v3604_v1 = vor.u32 %v4065_v63, %v3603_v62  ;;  %v4054_v26 = vld [vmem:[#allocation17 + $0xa4] sm:$0xf]  ;;  %v3565_v29 = vld [vmem:[#allocation17 + $0xb0] sm:$0xf0]  ;;  %v3571_v30 = vld [vmem:[#allocation17 + $0xa8] sm:$0xf] }
 0x200   : > { %1827 = vmatpush.bf16.msrb.mxu3 %v3429_v12  ;;  %v3608_v12 = vor.u32 %v4063_v9, %v3605_v10  ;;  %v4055_v34 = vld [vmem:[#allocation17 + $0xac] sm:$0xf]  ;;  %v3573_v35 = vld [vmem:[#allocation17 + $0xb8] sm:$0xf0]  ;;  %v4052_v38 = vld [vmem:[#allocation17 + $0x8c] sm:$0xf0] }
 0x201   : > { %v3576_v36 = vor.u32 %v4055_v34, %v3573_v35  ;;  %v4050_v39 = vld [vmem:[#allocation17 + $0x84] sm:$0xf]  ;;  %v3549_v41 = vld [vmem:[#allocation17 + $0x90] sm:$0xf0]  ;;  %v3555_v24 = vld [vmem:[#allocation17 + $0x88] sm:$0xf] }
 0x202   : > { %1789 = vmatpush.bf16.msrb.mxu0 %v3401_v18  ;;  %v3587_v18 = vld [vmem:[#allocation17 + $0xc8] sm:$0xf]  ;;  %v4051_v45 = vld [vmem:[#allocation17 + $0x8c] sm:$0xf]  ;;  %v3557_v46 = vld [vmem:[#allocation17 + $0x98] sm:$0xf0] }
 0x203   : > { %1802 = vmatpush.bf16.msrb.mxu1 %v3405_v19  ;;  %1815 = vmatpush.bf16.msrb.mxu2 %v3409_v20  ;;  %v4061_v19 = vld [vmem:[#allocation17 + $0xd4] sm:$0xf0]  ;;  %v4059_v20 = vld [vmem:[#allocation17 + $0xcc] sm:$0xf]  ;;  %v3560_v47 = vor.u32 %v4051_v45, %v3557_v46  ;;  %v3531_v4 = vld [vmem:[#allocation17 + $0x60] sm:$0xf] }
 0x204   : > { %1828 = vmatpush.bf16.msrb.mxu3 %v3413_v49  ;;  %v3588_v21 = vor.u32 %v4061_v19, %v3587_v18  ;;  %v3592_v23 = vor.u32 %v4059_v20, %v3589_v22  ;;  %v3563_v49 = vld [vmem:[#allocation17 + $0xa0] sm:$0xf]  ;;  %v4048_v5 = vld [vmem:[#allocation17 + $0x6c] sm:$0xf0]  ;;  %v4046_v52 = vld [vmem:[#allocation17 + $0x64] sm:$0xf] }
 0x205   : > { %v3564_v28 = vor.u32 %v4056_v25, %v3563_v49  ;;  %v3532_v50 = vor.u32 %v4048_v5, %v3531_v4  ;;  %v3541_v57 = vld [vmem:[#allocation17 + $0x78] sm:$0xf0]  ;;  %v4044_v61 = vld [vmem:[#allocation17 + $0x4c] sm:$0xf0]  ;;  %v4042_v62 = vld [vmem:[#allocation17 + $0x44] sm:$0xf] }
 0x206   : > { %1790 = vmatpush.bf16.msrb.mxu0 %v3385_v31  ;;  %v4057_v31 = vld [vmem:[#allocation17 + $0xb4] sm:$0xf0]  ;;  %v3525_v13 = vld [vmem:[#allocation17 + $0x58] sm:$0xf0]  ;;  %v3499_v18 = vld [vmem:[#allocation17 + $0x20] sm:$0xf] }
 0x207   : > { %1803 = vmatpush.bf16.msrb.mxu1 %v3389_v32  ;;  %1816 = vmatpush.bf16.msrb.mxu2 %v3393_v33  ;;  %v3568_v32 = vor.u32 %v4054_v26, %v3565_v29  ;;  %v3572_v33 = vor.u32 %v4057_v31, %v3571_v30  ;;  %v4045_v9 = vld [vmem:[#allocation17 + $0x54] sm:$0xf0]  ;;  %v4040_v19 = vld [vmem:[#allocation17 + $0x2c] sm:$0xf0]  ;;  %v4038_v20 = vld [vmem:[#allocation17 + $0x24] sm:$0xf] }
 0x208   : > { %1829 = vmatpush.bf16.msrb.mxu3 %v3397_v37  ;;  %v3547_v37 = vld [vmem:[#allocation17 + $0x80] sm:$0xf]  ;;  %v3500_v22 = vor.u32 %v4040_v19, %v3499_v18  ;;  %v3507_v49 = vld [vmem:[#allocation17 + $0x28] sm:$0xf]  ;;  %v4041_v25 = vld [vmem:[#allocation17 + $0x34] sm:$0xf0] }
 0x209   : > { %v3548_v40 = vor.u32 %v4052_v38, %v3547_v37  ;;  %v4039_v29 = vld [vmem:[#allocation17 + $0x2c] sm:$0xf]  ;;  %v3509_v30 = vld [vmem:[#allocation17 + $0x38] sm:$0xf0]  ;;  %v4034_v34 = vld [vmem:[#allocation17 + $0x4] sm:$0xf] }
 0x20a   : > { %1791 = vmatpush.bf16.msrb.mxu0 %v3369_v42  ;;  %v4053_v42 = vld [vmem:[#allocation17 + $0x94] sm:$0xf0]  ;;  %v3512_v31 = vor.u32 %v4039_v29, %v3509_v30  ;;  %v3491_v37 = vld [vmem:[#allocation17 + $0x8] sm:$0xf]  ;;  %v4032_v45 = vld [vmem:[#allocation15 + $0xec] sm:$0xf0] }
 0x20b   : > { %1804 = vmatpush.bf16.msrb.mxu1 %v3373_v43  ;;  %1817 = vmatpush.bf16.msrb.mxu2 %v3377_v44  ;;  %v3552_v43 = vor.u32 %v4050_v39, %v3549_v41  ;;  %v3556_v44 = vor.u32 %v4053_v42, %v3555_v24  ;;  %v4037_v38 = vld [vmem:[#allocation17 + $0x14] sm:$0xf0]  ;;  %v4035_v41 = vld [vmem:[#allocation17 + $0xc] sm:$0xf]  ;;  %v3493_v24 = vld [vmem:[#allocation17 + $0x18] sm:$0xf0] }
 0x20c   : > { %1830 = vmatpush.bf16.msrb.mxu3 %v3381_v27  ;;  %v3723_v42 = vld [vmem:[#allocation15 + $0xe0] sm:$0xf]  ;;  %v4030_v46 = vld [vmem:[#allocation15 + $0xe4] sm:$0xf]  ;;  %v4020_v30 = vld [vmem:[#allocation15 + $0x8c] sm:$0xf0] }
 0x20d   : > { %v3724_v5 = vor.u32 %v4032_v45, %v3723_v42  ;;  %v4022_v18 = vld [vmem:[#allocation15 + $0xa4] sm:$0xf]  ;;  %v3675_v29 = vld [vmem:[#allocation15 + $0x80] sm:$0xf]  ;;  %s2573_s14 = sld [smem:[#allocation6 + %s4838_s29]]  ;;  %p2572_p1 = scmp.lt.s32.totalorder %s4378_s12, 6 }
 0x20e   : > { %1792 = vmatpush.bf16.msrb.mxu0 %v3353_v51  ;;  %v3533_v51 = vld [vmem:[#allocation17 + $0x70] sm:$0xf0]  ;;  %v4014_v45 = vld [vmem:[#allocation15 + $0x64] sm:$0xf]  ;;  %s3772_s3 = sshll.u32 %s4378_s12, 3 }
 0x20f   : > { %1805 = vmatpush.bf16.msrb.mxu1 %v3357_v53  ;;  %1818 = vmatpush.bf16.msrb.mxu2 %v3361_v54  ;;  %v3539_v53 = vld [vmem:[#allocation17 + $0x68] sm:$0xf]  ;;  %v3536_v54 = vor.u32 %v4046_v52, %v3533_v51  ;;  %v4033_v51 = vld [vmem:[#allocation15 + $0xf4] sm:$0xf0]  ;;  %s2569_s0 = scalar_lea.vmem %s4907_s18, %s3772_s3 }
 0x210   : > { %1831 = vmatpush.bf16.msrb.mxu3 %v3365_v55  ;;  %v4049_v55 = vld [vmem:[#allocation17 + $0x74] sm:$0xf0]  ;;  %v3731_v52 = vld [vmem:[#allocation15 + $0xe8] sm:$0xf] }
 0x211   : > { %1793 = vmatmul.bf16.vlgmr.msrb.gmra.mxu0 %v1345_v56  ;;  %v3540_v58 = vor.u32 %v4049_v55, %v3539_v53  ;;  %v4031_v53 = vld [vmem:[#allocation15 + $0xec] sm:$0xf]  ;;  %v3733_v55 = vld [vmem:[#allocation15 + $0xf8] sm:$0xf0] }
 0x212   : > { %1806 = vmatmul.bf16.vlgmr.msrb.gmra.mxu1 %v1345_v56  ;;  %1819 = vmatmul.bf16.vlgmr.msrb.gmra.mxu2 %v1345_v56 }
 0x213   : > { %1832 = vmatmul.bf16.vlgmr.msrb.gmra.mxu3 %v1345_v56  ;;  %2145 = vmatpush.bf16.msra.mxu0 %v3596_v60  ;;  %v4047_v56 = vld [vmem:[#allocation17 + $0x6c] sm:$0xf]  ;;  %v3515_v60 = vld [vmem:[#allocation17 + $0x40] sm:$0xf]  ;;  %p2574_p2 = scmp.ne.s32.totalorder %s2573_s14, 0 }
 0x214   : > { %2158 = vmatpush.bf16.msra.mxu1 %v3600_v0  ;;  %2171 = vmatpush.bf16.msra.mxu2 %v3604_v1  ;;  %v3544_v59 = vor.u32 %v4047_v56, %v3541_v57  ;;  %v3516_v63 = vor.u32 %v4044_v61, %v3515_v60  ;;  %v3517_v0 = vld [vmem:[#allocation17 + $0x50] sm:$0xf0]  ;;  %v3523_v1 = vld [vmem:[#allocation17 + $0x48] sm:$0xf]  ;;  %v3707_v56 = vld [vmem:[#allocation15 + $0xc0] sm:$0xf] }
 0x215   : > { %2184 = vmatpush.bf16.msra.mxu3 %v3608_v12  ;;  %v3520_v10 = vor.u32 %v4042_v62, %v3517_v0  ;;  %v3524_v11 = vor.u32 %v4045_v9, %v3523_v1  ;;  %v4043_v12 = vld [vmem:[#allocation17 + $0x4c] sm:$0xf]  ;;  %v4028_v57 = vld [vmem:[#allocation15 + $0xcc] sm:$0xf0]  ;;  %v4026_v60 = vld [vmem:[#allocation15 + $0xc4] sm:$0xf]  ;;  %p2575_p3 = pnand %p2574_p2, %p2572_p1 }
 0x216   : > { %v3528_v15 = vor.u32 %v4043_v12, %v3525_v13  ;;  %v3709_v61 = vld [vmem:[#allocation15 + $0xd0] sm:$0xf0]  ;;  %v3715_v62 = vld [vmem:[#allocation15 + $0xc8] sm:$0xf]  ;;  %v4029_v0 = vld [vmem:[#allocation15 + $0xd4] sm:$0xf0] }
 0x217   : > { %2146 = vmatpush.bf16.msra.mxu0 %v3580_v16  ;;  %v4027_v1 = vld [vmem:[#allocation15 + $0xcc] sm:$0xf]  ;;  %v3717_v9 = vld [vmem:[#allocation15 + $0xd8] sm:$0xf0]  ;;  %v1917_v12 = vld [vmem:[#allocation2 + $0x8] sm:$0xff]  ;;  %s3773_s19 = sshll.u32 (!%p2575_p3), %s4378_s12, 2 }
 0x218   : > { %2159 = vmatpush.bf16.msra.mxu1 %v3584_v17  ;;  %2172 = vmatpush.bf16.msra.mxu2 %v3588_v21  ;;  %v1952_v13 = vpack.c.bf16 %v1917_v12, %v1917_v12  ;;  %v4011_v12 = vld [vmem:[#allocation15 + $0x4c] sm:$0xf]  ;;  %s4916_s20 = sld [smem:[#allocation25_spill]] (!%p2575_p3) }
 0x219   : > { %2185 = vmatpush.bf16.msra.mxu3 %v3592_v23  ;;  %v3501_v23 = vld [vmem:[#allocation17 + $0x30] sm:$0xf0] }
 0x21a   : > { %v3504_v26 = vor.u32 %v4038_v20, %v3501_v23  ;;  %v3693_v20 = vld [vmem:[#allocation15 + $0xb0] sm:$0xf0] }
 0x21b   : > { %2147 = vmatpush.bf16.msra.mxu0 %v3564_v28  ;;  %v3508_v28 = vor.u32 %v4041_v25, %v3507_v49  ;;  %v3696_v23 = vor.u32 %v4022_v18, %v3693_v20  ;;  %v4023_v25 = vld [vmem:[#allocation15 + $0xac] sm:$0xf]  ;;  %v3627_v18 = vld [vmem:[#allocation15 + $0x20] sm:$0xf] }
 0x21c   : > { %2160 = vmatpush.bf16.msra.mxu1 %v3568_v32  ;;  %2173 = vmatpush.bf16.msra.mxu2 %v3572_v33  ;;  %v3483_v32 = vld [vmem:[#allocation17] sm:$0xf]  ;;  %v4036_v33 = vld [vmem:[#allocation17 + $0xc] sm:$0xf0] }
 0x21d   : > { %2186 = vmatpush.bf16.msra.mxu3 %v3576_v36  ;;  %v3484_v35 = vor.u32 %v4036_v33, %v3483_v32  ;;  %v3485_v36 = vld [vmem:[#allocation17 + $0x10] sm:$0xf0]  ;;  %v4018_v32 = vld [vmem:[#allocation15 + $0x84] sm:$0xf] }
 0x21e   : > { %v3488_v39 = vor.u32 %v4034_v34, %v3485_v36  ;;  %v3677_v33 = vld [vmem:[#allocation15 + $0x90] sm:$0xf0]  ;;  %v3683_v34 = vld [vmem:[#allocation15 + $0x88] sm:$0xf]  ;;  %v4021_v36 = vld [vmem:[#allocation15 + $0x94] sm:$0xf0]  ;;  %s2691_s21 = scalar_lea.vmem (!%p2575_p3), %s4916_s20, %s3773_s19 }
 0x21f   : > { %2148 = vmatpush.bf16.msra.mxu0 %v3548_v40  ;;  %v3492_v40 = vor.u32 %v4037_v38, %v3491_v37  ;;  %v4019_v37 = vld [vmem:[#allocation15 + $0x8c] sm:$0xf]  ;;  %v3685_v38 = vld [vmem:[#allocation15 + $0x98] sm:$0xf0] }
 0x220   : > { %2161 = vmatpush.bf16.msra.mxu1 %v3552_v43  ;;  %2174 = vmatpush.bf16.msra.mxu2 %v3556_v44  ;;  %v3496_v44 = vor.u32 %v4035_v41, %v3493_v24  ;;  %v3684_v41 = vor.u32 %v4021_v36, %v3683_v34  ;;  %v3688_v24 = vor.u32 %v4019_v37, %v3685_v38  ;;  %v4004_v36 = vld [vmem:[#allocation15 + $0xc] sm:$0xf0]  ;;  %v4002_v37 = vld [vmem:[#allocation15 + $0x4] sm:$0xf] }
 0x221   : > { %2187 = vmatpush.bf16.msra.mxu3 %v3560_v47  ;;  %v3725_v47 = vld [vmem:[#allocation15 + $0xf0] sm:$0xf0] }
 0x223   : > { %2149 = vmatpush.bf16.msra.mxu0 %v3532_v50  ;;  %v3728_v50 = vor.u32 %v4030_v46, %v3725_v47 }
 0x224   : > { %2162 = vmatpush.bf16.msra.mxu1 %v3536_v54  ;;  %2175 = vmatpush.bf16.msra.mxu2 %v3540_v58  ;;  %v3732_v54 = vor.u32 %v4033_v51, %v3731_v52  ;;  %v3736_v58 = vor.u32 %v4031_v53, %v3733_v55  ;;  %v4017_v52 = vld [vmem:[#allocation15 + $0x74] sm:$0xf0]  ;;  %v4015_v55 = vld [vmem:[#allocation15 + $0x6c] sm:$0xf] }
 0x225   : > { %2188 = vmatpush.bf16.msra.mxu3 %v3544_v59  ;;  %v3708_v59 = vor.u32 %v4028_v57, %v3707_v56  ;;  %v3669_v56 = vld [vmem:[#allocation15 + $0x78] sm:$0xf0] }
 0x227   : > { %2150 = vmatpush.bf16.msra.mxu0 %v3516_v63  ;;  %v3712_v63 = vor.u32 %v4026_v60, %v3709_v61  ;;  %v3643_v60 = vld [vmem:[#allocation15 + $0x40] sm:$0xf]  ;;  %v4012_v61 = vld [vmem:[#allocation15 + $0x4c] sm:$0xf0] }
 0x228   : > { %2163 = vmatpush.bf16.msra.mxu1 %v3520_v10  ;;  %2176 = vmatpush.bf16.msra.mxu2 %v3524_v11  ;;  %v3716_v10 = vor.u32 %v4029_v0, %v3715_v62  ;;  %v3720_v11 = vor.u32 %v4027_v1, %v3717_v9  ;;  %v4010_v62 = vld [vmem:[#allocation15 + $0x44] sm:$0xf]  ;;  %v3644_v0 = vor.u32 %v4012_v61, %v3643_v60  ;;  %v3645_v1 = vld [vmem:[#allocation15 + $0x50] sm:$0xf0] }
 0x229   : > { %2189 = vmatpush.bf16.msra.mxu3 %v3528_v15  ;;  %v3691_v15 = vld [vmem:[#allocation15 + $0xa0] sm:$0xf] }
 0x22b   : > { %2151 = vmatpush.bf16.msra.mxu0 %v3500_v22  ;;  %v4025_v22 = vld [vmem:[#allocation15 + $0xb4] sm:$0xf0] }
 0x22c   : > { %2164 = vmatpush.bf16.msra.mxu1 %v3504_v26  ;;  %2177 = vmatpush.bf16.msra.mxu2 %v3508_v28  ;;  %v3701_v26 = vld [vmem:[#allocation15 + $0xb8] sm:$0xf0] }
 0x22d   : > { %2190 = vmatpush.bf16.msra.mxu3 %v3512_v31  ;;  %v3704_v28 = vor.u32 %v4023_v25, %v3701_v26  ;;  %v3676_v31 = vor.u32 %v4020_v30, %v3675_v29  ;;  %v3635_v25 = vld [vmem:[#allocation15 + $0x28] sm:$0xf] }
 0x22f   : > { %2152 = vmatpush.bf16.msra.mxu0 %v3484_v35  ;;  %v3680_v35 = vor.u32 %v4018_v32, %v3677_v33  ;;  %v4007_v32 = vld [vmem:[#allocation15 + $0x2c] sm:$0xf]  ;;  %v3637_v33 = vld [vmem:[#allocation15 + $0x38] sm:$0xf0] }
 0x230   : > { %2165 = vmatpush.bf16.msra.mxu1 %v3488_v39  ;;  %2178 = vmatpush.bf16.msra.mxu2 %v3492_v40  ;;  %v1838_v39 = vperm.slane %v4549_v6, 0  ;;  %v1839_v40 = vperm.slane %v4549_v6, 1 }
 0x231   : > { %2191 = vmatpush.bf16.msra.mxu3 %v3496_v44  ;;  %v4016_v44 = vld [vmem:[#allocation15 + $0x6c] sm:$0xf0] }
 0x232   : > { %2153 = vmatmul.bf16.vlgmr.msra.gmra.mxu0 %v1952_v13 }
 0x233   : > { %2357 = vmatpush.bf16.msrb.mxu0 %v3724_v5  ;;  %2166 = vmatmul.bf16.vlgmr.msra.gmra.mxu1 %v1952_v13  ;;  %v3661_v5 = vld [vmem:[#allocation15 + $0x70] sm:$0xf0] }
 0x234   : > { %2370 = vmatpush.bf16.msrb.mxu1 %v3728_v50  ;;  %2383 = vmatpush.bf16.msrb.mxu2 %v3732_v54  ;;  %v3667_v50 = vld [vmem:[#allocation15 + $0x68] sm:$0xf]  ;;  %v3664_v53 = vor.u32 %v4014_v45, %v3661_v5 }
 0x235   : > { %2396 = vmatpush.bf16.msrb.mxu3 %v3736_v58  ;;  %2179 = vmatmul.bf16.vlgmr.msra.gmra.mxu2 %v1952_v13  ;;  %v3668_v54 = vor.u32 %v4017_v52, %v3667_v50  ;;  %v1841_v58 = vperm.slane %v4549_v6, 3 }
 0x236   : > { %2192 = vmatmul.bf16.vlgmr.msra.gmra.mxu3 %v1952_v13 }
 0x237   : > { %2358 = vmatpush.bf16.msrb.mxu0 %v3708_v59  ;;  %v3672_v59 = vor.u32 %v4015_v55, %v3669_v56  ;;  %v1840_v55 = vperm.slane %v4549_v6, 2 }
 0x238   : > { %2371 = vmatpush.bf16.msrb.mxu1 %v3712_v63  ;;  %2384 = vmatpush.bf16.msrb.mxu2 %v3716_v10  ;;  %v3648_v10 = vor.u32 %v4010_v62, %v3645_v1 }
 0x239   : > { %2397 = vmatpush.bf16.msrb.mxu3 %v3720_v11  ;;  %v4013_v11 = vld [vmem:[#allocation15 + $0x54] sm:$0xf0] }
 0x23c   : > { %2372 = vmatpush.bf16.msrb.mxu1 %v3696_v23  ;;  %v4006_v23 = vld [vmem:[#allocation15 + $0x24] sm:$0xf] }
 0x23d   : > { %2398 = vmatpush.bf16.msrb.mxu3 %v3704_v28 }
 0x240   : > { %2373 = vmatpush.bf16.msrb.mxu1 %v3680_v35  ;;  %v3611_v35 = vld [vmem:[#allocation15] sm:$0xf] }
 0x241   : > { %2399 = vmatpush.bf16.msrb.mxu3 %v3688_v24  ;;  %v4005_v24 = vld [vmem:[#allocation15 + $0x14] sm:$0xf0]  ;;  %v3612_v45 = vor.u32 %v4004_v36, %v3611_v35 }
 0x244   : > { %2374 = vmatpush.bf16.msrb.mxu1 %v3664_v53 }
 0x245   : > { %2400 = vmatpush.bf16.msrb.mxu3 %v3672_v59 }
 0x248   : > { %2375 = vmatpush.bf16.msrb.mxu1 %v3648_v10 }
 0x26e   : > { %v4793_v27 = vpop.f32.mrf.mxu0 }
 0x26f   : > { %v4795_v48 = vpop.f32.mrf.mxu1 }
 0x276   : > { %v1584_v16 = vpop.f32.mrf.mxu0 }
 0x277   : > { %v4799_v17 = vpop.f32.mrf.mxu2  ;;  %v1597_v21 = vpop.f32.mrf.mxu1  ;;  %v4024_v16 = vld [vmem:[#allocation15 + $0xac] sm:$0xf0] }
 0x278   : > { %v4797_v14 = vpop.f32.mrf.mxu3  ;;  %v3692_v19 = vor.u32 %v4024_v16, %v3691_v15  ;;  %v3699_v21 = vld [vmem:[#allocation15 + $0xa8] sm:$0xf]  ;;  %v3653_v16 = vld [vmem:[#allocation15 + $0x58] sm:$0xf0] }
 0x279   : > { %v3700_v49 = vor.u32 %v4025_v22, %v3699_v21  ;;  %v3656_v22 = vor.u32 %v4011_v12, %v3653_v16 }
 0x27a   : > { %2359 = vmatpush.bf16.msrb.mxu0 %v3692_v19  ;;  %v4008_v19 = vld [vmem:[#allocation15 + $0x2c] sm:$0xf0] }
 0x27b   : > { %2385 = vmatpush.bf16.msrb.mxu2 %v3700_v49  ;;  %v3629_v49 = vld [vmem:[#allocation15 + $0x30] sm:$0xf0]  ;;  %v3628_v29 = vor.u32 %v4008_v19, %v3627_v18  ;;  %2401 = vmatpush.bf16.msrb.mxu3 %v3656_v22 }
 0x27c   : > { %v3632_v30 = vor.u32 %v4006_v23, %v3629_v49  ;;  %v1347_v18 = vld [vmem:[#allocation3 + $0x8] sm:$0xff] }
 0x27e   : > { %2360 = vmatpush.bf16.msrb.mxu0 %v3676_v31  ;;  %v4009_v31 = vld [vmem:[#allocation15 + $0x34] sm:$0xf0]  ;;  %2376 = vmatpush.bf16.msrb.mxu1 %v3632_v30 }
 0x27f   : > { %v1610_v4 = vpop.f32.mrf.mxu2  ;;  %2386 = vmatpush.bf16.msrb.mxu2 %v3684_v41  ;;  %v3636_v34 = vor.u32 %v4009_v31, %v3635_v25  ;;  %v3619_v41 = vld [vmem:[#allocation15 + $0x8] sm:$0xf] }
 0x280   : > { %v1623_v43 = vpop.f32.mrf.mxu3  ;;  %v3620_v5 = vor.u32 %v4005_v24, %v3619_v41 }
 0x281   : > { %v3659_v43 = vld [vmem:[#allocation15 + $0x60] sm:$0xf] }
 0x282   : > { %v3660_v4 = vor.u32 %v4016_v44, %v3659_v43 }
 0x283   : > { %2387 = vmatpush.bf16.msrb.mxu2 %v3668_v54 }
 0x284   : > { %2361 = vmatpush.bf16.msrb.mxu0 %v3660_v4 }
 0x288   : > { %2362 = vmatpush.bf16.msrb.mxu0 %v3644_v0 }
 0x28c   : > { %2363 = vmatpush.bf16.msrb.mxu0 %v3628_v29 }
 0x28e   : > { %v1794_v42 = vpop.f32.mrf.mxu0 }
 0x28f   : > { %v1795_v46 = vadd.f32 %v1794_v42, %v4793_v27  ;;  %v1807_v47 = vpop.f32.mrf.mxu1  ;;  %v3621_v42 = vld [vmem:[#allocation15 + $0x18] sm:$0xf0] }
 0x290   : > { %v1808_v51 = vadd.f32 %v1807_v47, %v4795_v48  ;;  %v3651_v48 = vld [vmem:[#allocation15 + $0x48] sm:$0xf]  ;;  %2364 = vmatpush.bf16.msrb.mxu0 %v3612_v45 }
 0x291   : > { %v1846_v57 = vadd.f32 %v1838_v39, %v1795_v46  ;;  %v3652_v15 = vor.u32 %v4013_v11, %v3651_v48  ;;  %v3640_v39 = vor.u32 %v4007_v32, %v3637_v33 }
 0x292   : > { %v1847_v27 = vadd.f32 %v1839_v40, %v1808_v51  ;;  %v3613_v40 = vld [vmem:[#allocation15 + $0x10] sm:$0xf0] }
 0x293   : > { %v3478_v63 = vmul.f32 -1.442695, %v1846_v57  ;;  %2388 = vmatpush.bf16.msrb.mxu2 %v3652_v15  ;;  %v3616_v46 = vor.u32 %v4002_v37, %v3613_v40  ;;  %2402 = vmatpush.bf16.msrb.mxu3 %v3640_v39 }
 0x294   : > { %v3479_v9 = vmul.f32 -1.442695, %v1847_v27 }
 0x295   : > { %4142 = vpow2.f32 %v3478_v63  ;;  %v1820_v13 = vpop.f32.mrf.mxu2  ;;  %2377 = vmatpush.bf16.msrb.mxu1 %v3616_v46  ;;  %v4073_v46 = vld [vmem:[%s4905_s16 + $0x38] sm:$0xff] }
 0x296   : > { %4144 = vpow2.f32 %v3479_v9  ;;  %v1833_v20 = vpop.f32.mrf.mxu3  ;;  %v1796_v21 = vpop.f32.mrf.mxu0  ;;  %v1821_v54 = vadd.f32 %v1820_v13, %v4799_v17  ;;  %2555 = vmatpush.bf16.msra.mxu0 %v4073_v46 }
 0x297   : > { %v1834_v26 = vadd.f32 %v1833_v20, %v4797_v14  ;;  %v1809_v28 = vpop.f32.mrf.mxu1  ;;  %v4003_v14 = vld [vmem:[#allocation15 + $0xc] sm:$0xf]  ;;  %2389 = vmatpush.bf16.msrb.mxu2 %v3636_v34 }
 0x298   : > { %v3624_v51 = vor.u32 %v4003_v14, %v3621_v42 }
 0x299   : > { %v1849_v38 = vadd.f32 %v1841_v58, %v1834_v26  ;;  %v1848_v58 = vadd.f32 %v1840_v55, %v1821_v54 }
 0x29a   : > { %2403 = vmatpush.bf16.msrb.mxu3 %v3624_v51 }
 0x29b   : > { %v4143_v43 = vpop.eup %4142  ;;  %v3480_v44 = vmul.f32 -1.442695, %v1849_v38  ;;  %2390 = vmatpush.bf16.msrb.mxu2 %v3620_v5  ;;  %v4070_v5 = vld [vmem:[%s4905_s16 + $0x20] sm:$0xff] }
 0x29c   : > { %v4145_v47 = vpop.eup %4144  ;;  %v1853_v4 = vadd.f32 1.0, %v4143_v43 }
 0x29d   : > { %v1872_v50 = vadd.f32 1.0, %v4145_v47  ;;  %4146 = vpow2.f32 %v3480_v44  ;;  %v1822_v52 = vpop.f32.mrf.mxu2  ;;  %v4072_v47 = vld [vmem:[%s4905_s16 + $0x30] sm:$0xff] }
 0x29e   : > { %4148 = vrcp.f32 %v1853_v4  ;;  %v1835_v53 = vpop.f32.mrf.mxu3  ;;  %v1865_v0 = vand.u32 2147483648, %v1853_v4  ;;  %v1863_v17 = vand.u32 2147483647, %v1853_v4  ;;  %vm1859_vm12 = vweird.f32 %v1853_v4  ;;  %2556 = vmatpush.bf16.msra.mxu0 %v4072_v47 }
 0x29f   : > { %4150 = vrcp.f32 %v1872_v50  ;;  %v1884_v1 = vand.u32 2147483648, %v1872_v50  ;;  %v1882_v10 = vand.u32 2147483647, %v1872_v50  ;;  %vm1878_vm13 = vweird.f32 %v1872_v50 }
 0x2a0   : > { %v1866_v13 = vor.u32 1.1754944e-38, %v1865_v0  ;;  %vm1864_vm1 = vcmp.eq.f32.partialorder %v1863_v17, 8.507059e+37  ;;  %v2411_v52 = vperm.slane %v4554_v7, 1  ;;  %v4067_v0 = vld [vmem:[%s4905_s16 + $0x8] sm:$0xff] }
 0x2a1   : > { %v1885_v16 = vor.u32 1.1754944e-38, %v1884_v1  ;;  %vm1883_vm2 = vcmp.eq.f32.partialorder %v1882_v10, 8.507059e+37  ;;  %v4066_v10 = vld [vmem:[%s4905_s16] sm:$0xff] }
 0x2a3   : > { %v4147_v56 = vpop.eup %4146 }
 0x2a4   : > { %v4149_v57 = vpop.eup %4148  ;;  %v1892_v59 = vadd.f32 1.0, %v4147_v56  ;;  %v4069_v56 = vld [vmem:[%s4905_s16 + $0x18] sm:$0xff] }
 0x2a5   : > { %v4151_v27 = vpop.eup %4150  ;;  %v1855_v60 = vmul.f32 %v4149_v57, %v1853_v4  ;;  %vm1860_vm10 = vweird.f32 %v4149_v57  ;;  %v4071_v4 = vld [vmem:[%s4905_s16 + $0x28] sm:$0xff] }
 0x2a6   : > { %v1874_v61 = vmul.f32 %v4151_v27, %v1872_v50  ;;  %4152 = vrcp.f32 %v1892_v59  ;;  %vm1879_vm11 = vweird.f32 %v4151_v27  ;;  %vm1861_vm14 = vmor %vm1859_vm12, %vm1860_vm10  ;;  %v1904_v32 = vand.u32 2147483648, %v1892_v59  ;;  %2557 = vmatpush.bf16.msra.mxu0 %v4071_v4 }
 0x2a7   : > { %v1856_v62 = vsub.f32 1.0, %v1855_v60  ;;  %4154 = vtanh.f32 %v1848_v58  ;;  %vm1880_vm15 = vmor %vm1878_vm13, %vm1879_vm11  ;;  %vm1898_vm4 = vweird.f32 %v1892_v59  ;;  %v1902_v33 = vand.u32 2147483647, %v1892_v59  ;;  %v4068_v60 = vld [vmem:[%s4905_s16 + $0x10] sm:$0xff] }
 0x2a8   : > { %v1875_v63 = vsub.f32 1.0, %v1874_v61  ;;  %v1905_v35 = vor.u32 1.1754944e-38, %v1904_v32  ;;  %v2410_v50 = vperm.slane %v4554_v7, 0  ;;  %v2413_v61 = vperm.slane %v4554_v7, 3 }
 0x2a9   : > { %v1857_v48 = vmul.f32 %v4149_v57, %v1856_v62  ;;  %vm1903_vm6 = vcmp.eq.f32.partialorder %v1902_v33, 8.507059e+37 }
 0x2aa   : > { %v1876_v9 = vmul.f32 %v4151_v27, %v1875_v63  ;;  %2558 = vmatpush.bf16.msra.mxu0 %v4070_v5 }
 0x2ab   : > { %v1858_v11 = vadd.f32 %v4149_v57, %v1857_v48 }
 0x2ac   : > { %v4153_v12 = vpop.eup %4152  ;;  %v1877_v15 = vadd.f32 %v4151_v27, %v1876_v9 }
 0x2ad   : > { %v1862_v19 = vsel %vm1861_vm14, %v4149_v57, %v1858_v11  ;;  %v1894_v20 = vmul.f32 %v4153_v12, %v1892_v59  ;;  %v4155_v21 = vpop.eup %4154  ;;  %vm1899_vm3 = vweird.f32 %v4153_v12 }
 0x2ae   : > { %v1867_v22 = vsel %vm1864_vm1, %v1866_v13, %v1862_v19  ;;  %v1881_v23 = vsel %vm1880_vm15, %v4151_v27, %v1877_v15  ;;  %vm1900_vm5 = vmor %vm1898_vm4, %vm1899_vm3  ;;  %2559 = vmatpush.bf16.msra.mxu0 %v4069_v56 }
 0x2af   : > { %v1886_v49 = vsel %vm1883_vm2, %v1885_v16, %v1881_v23  ;;  %v1909_v25 = vmul.f32 %v4155_v21, %v1867_v22  ;;  %v1895_v26 = vsub.f32 1.0, %v1894_v20  ;;  %v2154_v40 = vpop.f32.mrf.mxu0  ;;  %v2412_v21 = vperm.slane %v4554_v7, 2 }
 0x2b0   : > { %v1908_v28 = vmul.f32 %v1886_v49, %v1347_v18  ;;  %v2167_v41 = vpop.f32.mrf.mxu1 }
 0x2b1   : > { %v1896_v29 = vmul.f32 %v4153_v12, %v1895_v26 }
 0x2b2   : > { %v1910_v30 = vadd.f32 %v1909_v25, %v1908_v28  ;;  %2560 = vmatpush.bf16.msra.mxu0 %v4068_v60 }
 0x2b3   : > { %v1897_v31 = vadd.f32 %v4153_v12, %v1896_v29 }
 0x2b4   : > { %4156 = vtanh.f32 %v1910_v30  ;;  %1914 = vst [vmem:[#allocation3 + $0x8] sm:$0xff] %v1910_v30 }
 0x2b5   : > { %v1901_v34 = vsel %vm1900_vm5, %v4153_v12, %v1897_v31 }
 0x2b6   : > { %v1906_v37 = vsel %vm1903_vm6, %v1905_v35, %v1901_v34  ;;  %2561 = vmatpush.bf16.msra.mxu0 %v4067_v0 }
 0x2b7   : > { %v2156_v24 = vpop.f32.mrf.mxu0 }
 0x2b8   : > { %v2169_v42 = vpop.f32.mrf.mxu1  ;;  %v2180_v43 = vpop.f32.mrf.mxu2 }
 0x2b9   : > { %v2193_v14 = vpop.f32.mrf.mxu3  ;;  %v1919_v42 = vld [vmem:[#allocation3] sm:$0xff] }
 0x2ba   : > { %v4157_v36 = vpop.eup %4156  ;;  %2562 = vmatpush.bf16.msra.mxu0 %v4066_v10 }
 0x2bb   : > { %v1912_v38 = vmul.f32 %v4157_v36, %v1906_v37 }
 0x2bd   : > { %1913 = vst [vmem:[#allocation2] sm:$0xff] %v1912_v38  ;;  %v1915_v39 = vpack.c.bf16 %v1912_v38, %v1912_v38 }
 0x2bf   : > { %2365 = vmatmul.bf16.vlgmr.msrb.gmra.mxu0 %v1915_v39  ;;  %2378 = vmatmul.bf16.vlgmr.msrb.gmra.mxu1 %v1915_v39 }
 0x2c0   : > { %2391 = vmatmul.bf16.vlgmr.msrb.gmra.mxu2 %v1915_v39  ;;  %2404 = vmatmul.bf16.vlgmr.msrb.gmra.mxu3 %v1915_v39  ;;  %v2182_v45 = vpop.f32.mrf.mxu2 }
 0x2c1   : > { %v2195_v44 = vpop.f32.mrf.mxu3 }
 0x33c   : > { %v2366_v51 = vpop.f32.mrf.mxu0  ;;  %v2379_v53 = vpop.f32.mrf.mxu1 }
 0x33d   : > { %v2367_v54 = vadd.f32 %v2366_v51, %v2154_v40  ;;  %v2380_v55 = vadd.f32 %v2379_v53, %v2167_v41 }
 0x33f   : > { %v2418_v57 = vadd.f32 %v2410_v50, %v2367_v54  ;;  %v2419_v58 = vadd.f32 %v2411_v52, %v2380_v55 }
 0x341   : > { %v3737_v59 = vmul.f32 -1.442695, %v2418_v57  ;;  %v3738_v27 = vmul.f32 -1.442695, %v2419_v58 }
 0x343   : > { %4158 = vpow2.f32 %v3737_v59  ;;  %v2392_v62 = vpop.f32.mrf.mxu2  ;;  %v2405_v63 = vpop.f32.mrf.mxu3 }
 0x344   : > { %4160 = vpow2.f32 %v3738_v27  ;;  %v2406_v1 = vadd.f32 %v2405_v63, %v2193_v14  ;;  %v2368_v48 = vpop.f32.mrf.mxu0  ;;  %v2381_v17 = vpop.f32.mrf.mxu1  ;;  %v2393_v20 = vadd.f32 %v2392_v62, %v2180_v43 }
 0x346   : > { %v2421_v9 = vadd.f32 %v2413_v61, %v2406_v1  ;;  %v2420_v25 = vadd.f32 %v2412_v21, %v2393_v20  ;;  %v2505_v61 = vperm.slane %v4559_v8, 0 }
 0x348   : > { %v3739_v11 = vmul.f32 -1.442695, %v2421_v9 }
 0x349   : > { %v4159_v12 = vpop.eup %4158 }
 0x34a   : > { %v4161_v13 = vpop.eup %4160  ;;  %v2425_v15 = vadd.f32 1.0, %v4159_v12  ;;  %4162 = vpow2.f32 %v3739_v11 }
 0x34b   : > { %v2444_v16 = vadd.f32 1.0, %v4161_v13  ;;  %v2394_v18 = vpop.f32.mrf.mxu2  ;;  %v2407_v19 = vpop.f32.mrf.mxu3 }
 0x34c   : > { %4164 = vrcp.f32 %v2425_v15  ;;  %v2437_v32 = vand.u32 2147483648, %v2425_v15  ;;  %v2435_v35 = vand.u32 2147483647, %v2425_v15  ;;  %vm2431_vm9 = vweird.f32 %v2425_v15 }
 0x34d   : > { %4166 = vrcp.f32 %v2444_v16  ;;  %v2456_v33 = vand.u32 2147483648, %v2444_v16  ;;  %v2454_v37 = vand.u32 2147483647, %v2444_v16  ;;  %vm2450_vm10 = vweird.f32 %v2444_v16 }
 0x34e   : > { %v2438_v40 = vor.u32 1.1754944e-38, %v2437_v32  ;;  %vm2436_vm13 = vcmp.eq.f32.partialorder %v2435_v35, 8.507059e+37 }
 0x34f   : > { %v2457_v14 = vor.u32 1.1754944e-38, %v2456_v33  ;;  %vm2455_vm14 = vcmp.eq.f32.partialorder %v2454_v37, 8.507059e+37 }
 0x350   : > { %v4163_v22 = vpop.eup %4162 }
 0x351   : > { %v2464_v23 = vadd.f32 1.0, %v4163_v22 }
 0x352   : > { %v4165_v49 = vpop.eup %4164 }
 0x353   : > { %v4167_v26 = vpop.eup %4166  ;;  %v2427_v28 = vmul.f32 %v4165_v49, %v2425_v15  ;;  %4168 = vrcp.f32 %v2464_v23  ;;  %vm2432_vm7 = vweird.f32 %v4165_v49  ;;  %v2476_v54 = vand.u32 2147483648, %v2464_v23 }
 0x354   : > { %v2446_v29 = vmul.f32 %v4167_v26, %v2444_v16  ;;  %4170 = vtanh.f32 %v2420_v25  ;;  %vm2451_vm8 = vweird.f32 %v4167_v26  ;;  %vm2433_vm11 = vmor %vm2431_vm9, %vm2432_vm7  ;;  %vm2470_vm1 = vweird.f32 %v2464_v23 }
 0x355   : > { %v2428_v30 = vsub.f32 1.0, %v2427_v28  ;;  %vm2452_vm12 = vmor %vm2450_vm10, %vm2451_vm8  ;;  %v2474_v55 = vand.u32 2147483647, %v2464_v23  ;;  %v2477_v57 = vor.u32 1.1754944e-38, %v2476_v54 }
 0x356   : > { %v2447_v31 = vsub.f32 1.0, %v2446_v29 }
 0x357   : > { %v2429_v34 = vmul.f32 %v4165_v49, %v2428_v30  ;;  %vm2475_vm3 = vcmp.eq.f32.partialorder %v2474_v55, 8.507059e+37 }
 0x358   : > { %v2448_v36 = vmul.f32 %v4167_v26, %v2447_v31 }
 0x359   : > { %v4169_v38 = vpop.eup %4168  ;;  %v2430_v39 = vadd.f32 %v4165_v49, %v2429_v34 }
 0x35a   : > { %v2449_v41 = vadd.f32 %v4167_v26, %v2448_v36  ;;  %v2466_v24 = vmul.f32 %v4169_v38, %v2464_v23  ;;  %v4171_v44 = vpop.eup %4170  ;;  %vm2471_vm15 = vweird.f32 %v4169_v38 }
 0x35b   : > { %v2434_v43 = vsel %vm2433_vm11, %v4165_v49, %v2430_v39  ;;  %vm2472_vm2 = vmor %vm2470_vm1, %vm2471_vm15 }
 0x35c   : > { %v2439_v45 = vsel %vm2436_vm13, %v2438_v40, %v2434_v43  ;;  %v2453_v46 = vsel %vm2452_vm12, %v4167_v26, %v2449_v41  ;;  %v2467_v47 = vsub.f32 1.0, %v2466_v24 }
 0x35d   : > { %v2458_v4 = vsel %vm2455_vm14, %v2457_v14, %v2453_v46  ;;  %v2481_v5 = vmul.f32 %v4171_v44, %v2439_v45 }
 0x35e   : > { %v2480_v50 = vmul.f32 %v2458_v4, %v1919_v42  ;;  %v2468_v52 = vmul.f32 %v4169_v38, %v2467_v47 }
 0x360   : > { %v2482_v51 = vadd.f32 %v2481_v5, %v2480_v50  ;;  %v2469_v53 = vadd.f32 %v4169_v38, %v2468_v52 }
 0x362   : > { %4172 = vtanh.f32 %v2482_v51  ;;  %2486 = vst [vmem:[#allocation3] sm:$0xff] %v2482_v51  ;;  %v2473_v56 = vsel %vm2472_vm2, %v4169_v38, %v2469_v53 }
 0x363   : > { %v2478_v59 = vsel %vm2475_vm3, %v2477_v57, %v2473_v56 }
 0x368   : > { %v4173_v58 = vpop.eup %4172 }
 0x369   : > { %v2484_v27 = vmul.f32 %v4173_v58, %v2478_v59 }
 0x36b   : > { %2485 = vst [vmem:[#allocation2 + $0x8] sm:$0xff] %v2484_v27  ;;  %v2487_v60 = vpack.c.bf16 %v2484_v27, %v2484_v27 }
 0x36d   : > { %2563 = vmatmul.bf16.vlgmr.msra.gmra.mxu0 %v2487_v60 }
 0x3ea   : > { %v2564_v62 = vpop.f32.mrf.mxu0 }
 0x3eb   : > { %v2565_v63 = vadd.f32 %v2564_v62, %v2505_v61 }
 0x3ed   : > { %2570 = vst [vmem:[%s2569_s0] sm:$0xff] %v2565_v63 }
 0x3ee   : > { %2578 = sbr.rel (%p2575_p3) target bundleno = 1013 (0x3f5), region = 115 }
 0x3f2   : > { %v2566_v0 = vpop.f32.mrf.mxu0 }
 0x3f3   : > { %v3774_v1 = vld [vmem:[%s2691_s21 + $0x4] sm:$0xf] }
 0x3f4   : > { %2582 = vst [vmem:[#allocation4] sm:$0xf] %v3774_v1 }
 0x3f5 PF: > { %p2583_p4 = scmp.eq.s32.totalorder %s2573_s14, 0 }
 0x3f7   : > { %p2584_p5 = pnand %p2583_p4, %p2572_p1 }
 0x3f8   : > { %s4917_s6 = sld [smem:[#allocation26_spill]] (!%p2584_p5) }
 0x3f9   : > { %2587 = sbr.rel (%p2584_p5) target bundleno = 1393 (0x571), region = 119 }
 0x3fe   : > { %v2588_v48 = vsel %vm182_vm0, %v2565_v63, -inf  ;;  %v4081_v17 = vld [vmem:[%s4917_s6 + $0x38] sm:$0xff]  ;;  %v4080_v9 = vld [vmem:[%s4917_s6 + $0x30] sm:$0xff]  ;;  %v4079_v10 = vld [vmem:[%s4917_s6 + $0x28] sm:$0xff]  ;;  %v4391_v21 = vmov 1.0|1.0  }
 0x3ff   : > { %2589 = vmax.xlane.f32.xlu0 %v2588_v48  ;;  %2663 = vmatpush.bf16.msra.mxu0 %v4081_v17  ;;  %v4078_v11 = vld [vmem:[%s4917_s6 + $0x20] sm:$0xff]  ;;  %v4077_v12 = vld [vmem:[%s4917_s6 + $0x18] sm:$0xff]  ;;  %v4076_v13 = vld [vmem:[%s4917_s6 + $0x10] sm:$0xff] }
 0x400   : > { %v4075_v15 = vld [vmem:[%s4917_s6 + $0x8] sm:$0xff]  ;;  %v4074_v16 = vld [vmem:[%s4917_s6] sm:$0xff] }
 0x403   : > { %2664 = vmatpush.bf16.msra.mxu0 %v4080_v9 }
 0x407   : > { %2665 = vmatpush.bf16.msra.mxu0 %v4079_v10 }
 0x40b   : > { %2666 = vmatpush.bf16.msra.mxu0 %v4078_v11 }
 0x40f   : > { %2667 = vmatpush.bf16.msra.mxu0 %v4077_v12 }
 0x413   : > { %2668 = vmatpush.bf16.msra.mxu0 %v4076_v13 }
 0x417   : > { %2669 = vmatpush.bf16.msra.mxu0 %v4075_v15 }
 0x41b   : > { %2670 = vmatpush.bf16.msra.mxu0 %v4074_v16 }
 0x472   : > { %v2590_v18 = vpop.xlane.xlu0 %2589 }
 0x473   : > { %vm2591_vm4 = vcmp.eq.f32.partialorder %v2588_v48, %v2590_v18 }
 0x474   : > { %v2592_v19 = vsel %vm2591_vm4, %v181_v3, 128.0 }
 0x475   : > { %2593 = vmin.xlane.f32.xlu0 %v2592_v19 }
 0x4e8   : > { %v2594_v20 = vpop.xlane.xlu0 %2593 }
 0x4e9   : > { %vm2595_vm5 = vcmp.eq.f32.partialorder %v181_v3, %v2594_v20 }
 0x4ea   : > { %vm3808_vm6 = vmpackc.low %vm2595_vm5, %vm2595_vm5 }
 0x4eb   : > { %3809 = vmatmul.msk.bf16.vlgmr.msra.gmra.mxu0 %vm3808_vm6, %v4391_v21 }
 0x568   : > { %v2672_v22 = vpop.f32.mrf.mxu0 }
 0x569   : > { %v2676_v23 = vpack.c.bf16 %v2672_v22, %v2672_v22 }
 0x56b   : > { %2677 = vst [vmem:[#allocation4] sm:$0xf] %v2676_v23 }
 0x570   : > { %v2674_v49 = vpop.f32.mrf.mxu0 }
 0x571 PF: > { %p1341_p6 = scmp.ge.s32.totalorder %s4838_s29, 7   ;;  %s4918_s12 = smov %s4838_s29 }
 0x573   :  { %1343 = sbr.rel (!%p1341_p6) target bundleno = 463 (0x1cf), region = 156 }
 0x578   :  { %2682 = vsyncpa [#allocation8], 1 }
 0x579   :  { %2683 = vsyncpa [#allocation10], 1 }
 0x57a   :  { %2684 = vsyncpa [#allocation13], 1 }
 0x57b   :  { %2685 = vsyncpa [#allocation16], 1 }

</bundles_post_ra>
